<compile_context>
chip_gen: v6e
topology: v6e:2x2x1
jax: 0.10.0
libtpu: 0.0.40
codegen_flags: <defaults>
</compile_context>

<pallas_src>
import jax
import jax.numpy as jnp
from jax import lax
from jax.experimental import pallas as pl
from jax.experimental.pallas import tpu as pltpu  # noqa: F401  (TPU backend)


# ----------------------------- Pallas kernels -----------------------------

def _conv_bn_lrelu_kernel(p_ref, w_ref, b_ref, g_ref, beta_ref, o_ref):
    """Fused ConvBlock: patches @ W + b -> BatchNorm(batch stats) -> LeakyReLU(0.2).

    Operands are bf16 (MXU fast path); accumulation and BN math are f32.
    The intermediate conv result stays in VMEM (never stored to HBM).
    """
    conv = jnp.dot(p_ref[...], w_ref[...],
                   preferred_element_type=jnp.float32) + b_ref[...]
    # training-mode BatchNorm2d: biased batch statistics over all rows (N*H*W)
    mean = jnp.mean(conv, axis=0, keepdims=True)
    var = jnp.mean(jnp.square(conv - mean), axis=0, keepdims=True)
    scale = g_ref[...] * lax.rsqrt(var + 1e-5)        # rsqrt -> EUP slot
    shift = beta_ref[...] - mean * scale
    y = conv * scale + shift
    o_ref[...] = jnp.where(y > 0, y, 0.2 * y).astype(o_ref.dtype)


def conv_bn_lrelu(patches, w, b, gamma, beta):
    m, k = patches.shape
    n = w.shape[1]
    return pl.pallas_call(
        _conv_bn_lrelu_kernel,
        out_shape=jax.ShapeDtypeStruct((m, n), jnp.bfloat16),
        grid=(1,),
        in_specs=[pl.BlockSpec((m, k), lambda i: (0, 0)),
                  pl.BlockSpec((k, n), lambda i: (0, 0)),
                  pl.BlockSpec((1, n), lambda i: (0, 0)),
                  pl.BlockSpec((1, n), lambda i: (0, 0)),
                  pl.BlockSpec((1, n), lambda i: (0, 0))],
        out_specs=pl.BlockSpec((m, n), lambda i: (0, 0)),
    )(patches, w, b, gamma, beta)


def _conv_bias_kernel(p_ref, w_ref, b_ref, o_ref):
    # tail: patches @ W + b   (no norm / activation)
    o_ref[...] = (jnp.dot(p_ref[...], w_ref[...],
                          preferred_element_type=jnp.float32)
                  + b_ref[...]).astype(o_ref.dtype)


def conv_bias(patches, w, b):
    m, k = patches.shape
    n = w.shape[1]
    return pl.pallas_call(
        _conv_bias_kernel,
        out_shape=jax.ShapeDtypeStruct((m, n), jnp.float32),
        grid=(1,),
        in_specs=[pl.BlockSpec((m, k), lambda i: (0, 0)),
                  pl.BlockSpec((k, n), lambda i: (0, 0)),
                  pl.BlockSpec((1, n), lambda i: (0, 0))],
        out_specs=pl.BlockSpec((m, n), lambda i: (0, 0)),
    )(patches, w, b)


# ------------------------------- glue (JAX) -------------------------------

def im2col(x_nhwc, kh, kw, pad):
    """Extract conv patches (stride 1). Returns (N*OH*OW, kh*kw*C) and (N, OH, OW).

    Kept in XLA (static slices + concat) in bf16; the 9x-expanded patch matrix is
    negligible at these shapes.  In-kernel shifted-matmul accumulation would remove
    it for very large inputs (see notes).
    """
    if pad > 0:
        x_nhwc = jnp.pad(x_nhwc, ((0, 0), (pad, pad), (pad, pad), (0, 0)))
    n, h, w, c = x_nhwc.shape
    oh, ow = h - kh + 1, w - kw + 1
    cols = []
    for i in range(kh):
        for j in range(kw):
            cols.append(x_nhwc[:, i:i + oh, j:j + ow, :])
    p = jnp.concatenate(cols, axis=-1)                # (n, oh, ow, kh*kw*c)
    return p.reshape(n * oh * ow, kh * kw * c), (n, oh, ow)


def conv_block(x_nhwc, params, ker, pad):
    """Conv2d -> BatchNorm2d (training-mode batch stats) -> LeakyReLU(0.2), one fused kernel."""
    cin = x_nhwc.shape[-1]
    cout = params['w'].shape[-1]
    patches, (n, oh, ow) = im2col(x_nhwc, ker, ker, pad)            # bf16
    w = params['w'].reshape(ker * ker * cin, cout).astype(jnp.bfloat16)
    out = conv_bn_lrelu(patches, w,
                        params['b'][None, :],
                        params['gamma'][None, :],
                        params['beta'][None, :])
    return out.reshape(n, oh, ow, cout)                             # bf16 NHWC


def my22w_discriminator_forward(params, x, opt):
    """x: NCHW float32.  Returns NCHW float32 (B, 1, OH, OW)."""
    ker, pad = opt['ker_size'], opt['padd_size']

    h = jnp.transpose(x, (0, 2, 3, 1)).astype(jnp.bfloat16)         # NCHW -> NHWC, bf16 operands

    # head ConvBlock
    h = conv_block(h, params['head'], ker, pad)

    # body ConvBlocks
    for blk in params['body']:
        h = conv_block(h, blk, ker, pad)

    # TODO(synk): opt['attn'] == True branch (AxialAttention + Linear FFN residual) not implemented;
    #             this kernel covers the default opt.attn == False path only.

    # tail: Conv2d -> 1 channel (fused matmul + bias)
    cin = h.shape[-1]
    patches, (n, oh, ow) = im2col(h, ker, ker, pad)
    w_t = params['tail']['w'].reshape(ker * ker * cin, 1).astype(jnp.bfloat16)
    out = conv_bias(patches, w_t, params['tail']['b'][None, :])     # (n*oh*ow, 1) f32
    out = out.reshape(n, oh, ow, 1)
    return jnp.transpose(out, (0, 3, 1, 2))                         # back to NCHW


# ----------------------------- parameter setup -----------------------------

def init_params(key, opt):
    ker = opt['ker_size']
    nc, nfc, min_nfc = opt['nc_im'], opt['nfc'], opt['min_nfc']
    num_layer = opt['num_layer']
    keys = iter(jax.random.split(key, 4 * num_layer + 8))

    def conv_w(cin, cout):
        return 0.02 * jax.random.normal(next(keys), (ker, ker, cin, cout), jnp.float32)

    def conv_b(cout):
        return 0.01 * jax.random.normal(next(keys), (cout,), jnp.float32)

    def bn(cout):
        return dict(gamma=jnp.ones((cout,), jnp.float32),
                    beta=jnp.zeros((cout,), jnp.float32))

    params = {}
    N = nfc
    params['head'] = dict(w=conv_w(nc, N), b=conv_b(N), **bn(N))
    body = []
    for i in range(num_layer - 2):
        N = int(nfc / 2 ** (i + 1))
        cin, cout = max(2 * N, min_nfc), max(N, min_nfc)
        body.append(dict(w=conv_w(cin, cout), b=conv_b(cout), **bn(cout)))
    params['body'] = body
    params['tail'] = dict(w=conv_w(max(N, min_nfc), 1), b=conv_b(1))
    return params


# ---------------------------------- main -----------------------------------

if __name__ == "__main__":
    # SinGAN-style opt: 3 image channels, nfc=min_nfc=32, 3x3 convs, no padding,
    # 5 layers total -> 3 body blocks, attn disabled.
    opt = dict(nc_im=3, nfc=32, min_nfc=32, ker_size=3, padd_size=0,
               num_layer=5, attn=False)

    key = jax.random.PRNGKey(0)
    kp, kx = jax.random.split(key)
    params = init_params(kp, opt)

    B, H, W = 2, 16, 16
    x = jax.random.normal(kx, (B, opt['nc_im'], H, W), jnp.float32)

    fwd = jax.jit(lambda p, xx: my22w_discriminator_forward(p, xx, opt))
    out = jax.block_until_ready(fwd(params, x))

    # spatial: head 16->14, body(3): 14->12->10->8, tail: 8->6 ; channels -> 1
    assert out.shape == (B, 1, 6, 6), out.shape
    assert bool(jnp.all(jnp.isfinite(out)))
    print("KERNEL_OK")
</pallas_src>

<mosaic_0001>
module attributes {stable_mosaic.version = 11 : i64} {
  func.func @_conv_bn_lrelu_kernel(%arg0: i32, %arg1: memref<392x27xbf16, #tpu.memory_space<vmem>>, %arg2: memref<27x32xbf16, #tpu.memory_space<vmem>>, %arg3: memref<1x32xf32, #tpu.memory_space<vmem>>, %arg4: memref<1x32xf32, #tpu.memory_space<vmem>>, %arg5: memref<1x32xf32, #tpu.memory_space<vmem>>, %arg6: memref<392x32xbf16, #tpu.memory_space<vmem>>) attributes {dimension_semantics = [#tpu.dimension_semantics<arbitrary>], iteration_bounds = array<i64: 1>, scalar_prefetch = 0 : i64, scratch_operands = 0 : i64, tpu.core_type = #tpu.core_type<tc>, window_params = [{pipeline_mode = #tpu.pipeline_mode<synchronous>, transform_indices = @transform_0, window_bounds = array<i64: 392, 27>}, {pipeline_mode = #tpu.pipeline_mode<synchronous>, transform_indices = @transform_1, window_bounds = array<i64: 27, 32>}, {pipeline_mode = #tpu.pipeline_mode<synchronous>, transform_indices = @transform_2, window_bounds = array<i64: 1, 32>}, {pipeline_mode = #tpu.pipeline_mode<synchronous>, transform_indices = @transform_3, window_bounds = array<i64: 1, 32>}, {pipeline_mode = #tpu.pipeline_mode<synchronous>, transform_indices = @transform_4, window_bounds = array<i64: 1, 32>}, {pipeline_mode = #tpu.pipeline_mode<synchronous>, transform_indices = @transform_5, window_bounds = array<i64: 392, 32>}]} {
    %c0 = arith.constant 0 : index
    %c0_0 = arith.constant 0 : index
    %0 = vector.load %arg1[%c0, %c0_0] : memref<392x27xbf16, #tpu.memory_space<vmem>>, vector<392x27xbf16>
    %c0_1 = arith.constant 0 : index
    %c0_2 = arith.constant 0 : index
    %1 = vector.load %arg2[%c0_1, %c0_2] : memref<27x32xbf16, #tpu.memory_space<vmem>>, vector<27x32xbf16>
    %cst = arith.constant dense<0.000000e+00> : vector<392x32xf32>
    %2 = tpu.matmul %0, %1, %cst {dimension_numbers = #tpu.dot_dimension_numbers<[1], [0], [0], [1], [0, 0, 1, 1], [], []>} : vector<392x27xbf16>, vector<27x32xbf16>, vector<392x32xf32> -> vector<392x32xf32>
    %c0_3 = arith.constant 0 : index
    %c0_4 = arith.constant 0 : index
    %3 = vector.load %arg3[%c0_3, %c0_4] : memref<1x32xf32, #tpu.memory_space<vmem>>, vector<1x32xf32>
    %4 = vector.broadcast %3 : vector<1x32xf32> to vector<392x32xf32>
    %5 = arith.addf %2, %4 : vector<392x32xf32>
    %cst_5 = arith.constant dense<0.000000e+00> : vector<32xf32>
    %6 = vector.multi_reduction <add>, %5, %cst_5 [0] : vector<392x32xf32> to vector<32xf32>
    %7 = vector.shape_cast %6 : vector<32xf32> to vector<1x32xf32>
    %cst_6 = arith.constant 3.920000e+02 : f32
    %8 = vector.broadcast %cst_6 : f32 to vector<1x32xf32>
    %9 = arith.divf %7, %8 : vector<1x32xf32>
    %10 = vector.broadcast %9 : vector<1x32xf32> to vector<392x32xf32>
    %11 = arith.subf %5, %10 : vector<392x32xf32>
    %12 = arith.mulf %11, %11 : vector<392x32xf32>
    %cst_7 = arith.constant dense<0.000000e+00> : vector<32xf32>
    %13 = vector.multi_reduction <add>, %12, %cst_7 [0] : vector<392x32xf32> to vector<32xf32>
    %14 = vector.shape_cast %13 : vector<32xf32> to vector<1x32xf32>
    %cst_8 = arith.constant 3.920000e+02 : f32
    %15 = vector.broadcast %cst_8 : f32 to vector<1x32xf32>
    %16 = arith.divf %14, %15 : vector<1x32xf32>
    %c0_9 = arith.constant 0 : index
    %c0_10 = arith.constant 0 : index
    %17 = vector.load %arg4[%c0_9, %c0_10] : memref<1x32xf32, #tpu.memory_space<vmem>>, vector<1x32xf32>
    %cst_11 = arith.constant 9.99999974E-6 : f32
    %18 = vector.broadcast %cst_11 : f32 to vector<1x32xf32>
    %19 = arith.addf %16, %18 : vector<1x32xf32>
    %20 = math.rsqrt %19 : vector<1x32xf32>
    %21 = arith.mulf %17, %20 : vector<1x32xf32>
    %c0_12 = arith.constant 0 : index
    %c0_13 = arith.constant 0 : index
    %22 = vector.load %arg5[%c0_12, %c0_13] : memref<1x32xf32, #tpu.memory_space<vmem>>, vector<1x32xf32>
    %23 = arith.mulf %9, %21 : vector<1x32xf32>
    %24 = arith.subf %22, %23 : vector<1x32xf32>
    %25 = vector.broadcast %21 : vector<1x32xf32> to vector<392x32xf32>
    %26 = arith.mulf %5, %25 : vector<392x32xf32>
    %27 = vector.broadcast %24 : vector<1x32xf32> to vector<392x32xf32>
    %28 = arith.addf %26, %27 : vector<392x32xf32>
    %cst_14 = arith.constant 0.000000e+00 : f32
    %29 = vector.broadcast %cst_14 : f32 to vector<392x32xf32>
    %30 = arith.cmpf ogt, %28, %29 : vector<392x32xf32>
    %cst_15 = arith.constant 2.000000e-01 : f32
    %31 = vector.broadcast %cst_15 : f32 to vector<392x32xf32>
    %32 = arith.mulf %31, %28 : vector<392x32xf32>
    %33 = arith.select %30, %28, %32 : vector<392x32xi1>, vector<392x32xf32>
    %34 = arith.truncf %33 : vector<392x32xf32> to vector<392x32xbf16>
    %c0_16 = arith.constant 0 : index
    %c0_17 = arith.constant 0 : index
    %35 = vector.load %arg6[%c0_16, %c0_17] : memref<392x32xbf16, #tpu.memory_space<vmem>>, vector<392x32xbf16>
    tpu.vector_store %arg6[%c0_16, %c0_17], %34 {strides = array<i32>} : memref<392x32xbf16, #tpu.memory_space<vmem>>, vector<392x32xbf16>,
    return
  }
  func.func @transform_0(%arg0: i32) -> (i32, i32) {
    %c0_i32 = arith.constant 0 : i32
    %c0_i32_0 = arith.constant 0 : i32
    %c0_i32_1 = arith.constant 0 : i32
    return %c0_i32, %c0_i32_0 : i32, i32
  }
  func.func @transform_1(%arg0: i32) -> (i32, i32) {
    %c0_i32 = arith.constant 0 : i32
    %c0_i32_0 = arith.constant 0 : i32
    %c0_i32_1 = arith.constant 0 : i32
    return %c0_i32, %c0_i32_0 : i32, i32
  }
  func.func @transform_2(%arg0: i32) -> (i32, i32) {
    %c0_i32 = arith.constant 0 : i32
    %c0_i32_0 = arith.constant 0 : i32
    %c0_i32_1 = arith.constant 0 : i32
    return %c0_i32, %c0_i32_0 : i32, i32
  }
  func.func @transform_3(%arg0: i32) -> (i32, i32) {
    %c0_i32 = arith.constant 0 : i32
    %c0_i32_0 = arith.constant 0 : i32
    %c0_i32_1 = arith.constant 0 : i32
    return %c0_i32, %c0_i32_0 : i32, i32
  }
  func.func @transform_4(%arg0: i32) -> (i32, i32) {
    %c0_i32 = arith.constant 0 : i32
    %c0_i32_0 = arith.constant 0 : i32
    %c0_i32_1 = arith.constant 0 : i32
    return %c0_i32, %c0_i32_0 : i32, i32
  }
  func.func @transform_5(%arg0: i32) -> (i32, i32) {
    %c0_i32 = arith.constant 0 : i32
    %c0_i32_0 = arith.constant 0 : i32
    %c0_i32_1 = arith.constant 0 : i32
    return %c0_i32, %c0_i32_0 : i32, i32
  }
}

module attributes {stable_mosaic.version = 11 : i64} {
  func.func @_conv_bn_lrelu_kernel(%arg0: i32, %arg1: memref<288x288xbf16, #tpu.memory_space<vmem>>, %arg2: memref<288x32xbf16, #tpu.memory_space<vmem>>, %arg3: memref<1x32xf32, #tpu.memory_space<vmem>>, %arg4: memref<1x32xf32, #tpu.memory_space<vmem>>, %arg5: memref<1x32xf32, #tpu.memory_space<vmem>>, %arg6: memref<288x32xbf16, #tpu.memory_space<vmem>>) attributes {dimension_semantics = [#tpu.dimension_semantics<arbitrary>], iteration_bounds = array<i64: 1>, scalar_prefetch = 0 : i64, scratch_operands = 0 : i64, tpu.core_type = #tpu.core_type<tc>, window_params = [{pipeline_mode = #tpu.pipeline_mode<synchronous>, transform_indices = @transform_0, window_bounds = array<i64: 288, 288>}, {pipeline_mode = #tpu.pipeline_mode<synchronous>, transform_indices = @transform_1, window_bounds = array<i64: 288, 32>}, {pipeline_mode = #tpu.pipeline_mode<synchronous>, transform_indices = @transform_2, window_bounds = array<i64: 1, 32>}, {pipeline_mode = #tpu.pipeline_mode<synchronous>, transform_indices = @transform_3, window_bounds = array<i64: 1, 32>}, {pipeline_mode = #tpu.pipeline_mode<synchronous>, transform_indices = @transform_4, window_bounds = array<i64: 1, 32>}, {pipeline_mode = #tpu.pipeline_mode<synchronous>, transform_indices = @transform_5, window_bounds = array<i64: 288, 32>}]} {
    %c0 = arith.constant 0 : index
    %c0_0 = arith.constant 0 : index
    %0 = vector.load %arg1[%c0, %c0_0] : memref<288x288xbf16, #tpu.memory_space<vmem>>, vector<288x288xbf16>
    %c0_1 = arith.constant 0 : index
    %c0_2 = arith.constant 0 : index
    %1 = vector.load %arg2[%c0_1, %c0_2] : memref<288x32xbf16, #tpu.memory_space<vmem>>, vector<288x32xbf16>
    %cst = arith.constant dense<0.000000e+00> : vector<288x32xf32>
    %2 = tpu.matmul %0, %1, %cst {dimension_numbers = #tpu.dot_dimension_numbers<[1], [0], [0], [1], [0, 0, 1, 1], [], []>} : vector<288x288xbf16>, vector<288x32xbf16>, vector<288x32xf32> -> vector<288x32xf32>
    %c0_3 = arith.constant 0 : index
    %c0_4 = arith.constant 0 : index
    %3 = vector.load %arg3[%c0_3, %c0_4] : memref<1x32xf32, #tpu.memory_space<vmem>>, vector<1x32xf32>
    %4 = vector.broadcast %3 : vector<1x32xf32> to vector<288x32xf32>
    %5 = arith.addf %2, %4 : vector<288x32xf32>
    %cst_5 = arith.constant dense<0.000000e+00> : vector<32xf32>
    %6 = vector.multi_reduction <add>, %5, %cst_5 [0] : vector<288x32xf32> to vector<32xf32>
    %7 = vector.shape_cast %6 : vector<32xf32> to vector<1x32xf32>
    %cst_6 = arith.constant 2.880000e+02 : f32
    %8 = vector.broadcast %cst_6 : f32 to vector<1x32xf32>
    %9 = arith.divf %7, %8 : vector<1x32xf32>
    %10 = vector.broadcast %9 : vector<1x32xf32> to vector<288x32xf32>
    %11 = arith.subf %5, %10 : vector<288x32xf32>
    %12 = arith.mulf %11, %11 : vector<288x32xf32>
    %cst_7 = arith.constant dense<0.000000e+00> : vector<32xf32>
    %13 = vector.multi_reduction <add>, %12, %cst_7 [0] : vector<288x32xf32> to vector<32xf32>
    %14 = vector.shape_cast %13 : vector<32xf32> to vector<1x32xf32>
    %cst_8 = arith.constant 2.880000e+02 : f32
    %15 = vector.broadcast %cst_8 : f32 to vector<1x32xf32>
    %16 = arith.divf %14, %15 : vector<1x32xf32>
    %c0_9 = arith.constant 0 : index
    %c0_10 = arith.constant 0 : index
    %17 = vector.load %arg4[%c0_9, %c0_10] : memref<1x32xf32, #tpu.memory_space<vmem>>, vector<1x32xf32>
    %cst_11 = arith.constant 9.99999974E-6 : f32
    %18 = vector.broadcast %cst_11 : f32 to vector<1x32xf32>
    %19 = arith.addf %16, %18 : vector<1x32xf32>
    %20 = math.rsqrt %19 : vector<1x32xf32>
    %21 = arith.mulf %17, %20 : vector<1x32xf32>
    %c0_12 = arith.constant 0 : index
    %c0_13 = arith.constant 0 : index
    %22 = vector.load %arg5[%c0_12, %c0_13] : memref<1x32xf32, #tpu.memory_space<vmem>>, vector<1x32xf32>
    %23 = arith.mulf %9, %21 : vector<1x32xf32>
    %24 = arith.subf %22, %23 : vector<1x32xf32>
    %25 = vector.broadcast %21 : vector<1x32xf32> to vector<288x32xf32>
    %26 = arith.mulf %5, %25 : vector<288x32xf32>
    %27 = vector.broadcast %24 : vector<1x32xf32> to vector<288x32xf32>
    %28 = arith.addf %26, %27 : vector<288x32xf32>
    %cst_14 = arith.constant 0.000000e+00 : f32
    %29 = vector.broadcast %cst_14 : f32 to vector<288x32xf32>
    %30 = arith.cmpf ogt, %28, %29 : vector<288x32xf32>
    %cst_15 = arith.constant 2.000000e-01 : f32
    %31 = vector.broadcast %cst_15 : f32 to vector<288x32xf32>
    %32 = arith.mulf %31, %28 : vector<288x32xf32>
    %33 = arith.select %30, %28, %32 : vector<288x32xi1>, vector<288x32xf32>
    %34 = arith.truncf %33 : vector<288x32xf32> to vector<288x32xbf16>
    %c0_16 = arith.constant 0 : index
    %c0_17 = arith.constant 0 : index
    %35 = vector.load %arg6[%c0_16, %c0_17] : memref<288x32xbf16, #tpu.memory_space<vmem>>, vector<288x32xbf16>
    tpu.vector_store %arg6[%c0_16, %c0_17], %34 {strides = array<i32>} : memref<288x32xbf16, #tpu.memory_space<vmem>>, vector<288x32xbf16>,
    return
  }
  func.func @transform_0(%arg0: i32) -> (i32, i32) {
    %c0_i32 = arith.constant 0 : i32
    %c0_i32_0 = arith.constant 0 : i32
    %c0_i32_1 = arith.constant 0 : i32
    return %c0_i32, %c0_i32_0 : i32, i32
  }
  func.func @transform_1(%arg0: i32) -> (i32, i32) {
    %c0_i32 = arith.constant 0 : i32
    %c0_i32_0 = arith.constant 0 : i32
    %c0_i32_1 = arith.constant 0 : i32
    return %c0_i32, %c0_i32_0 : i32, i32
  }
  func.func @transform_2(%arg0: i32) -> (i32, i32) {
    %c0_i32 = arith.constant 0 : i32
    %c0_i32_0 = arith.constant 0 : i32
    %c0_i32_1 = arith.constant 0 : i32
    return %c0_i32, %c0_i32_0 : i32, i32
  }
  func.func @transform_3(%arg0: i32) -> (i32, i32) {
    %c0_i32 = arith.constant 0 : i32
    %c0_i32_0 = arith.constant 0 : i32
    %c0_i32_1 = arith.constant 0 : i32
    return %c0_i32, %c0_i32_0 : i32, i32
  }
  func.func @transform_4(%arg0: i32) -> (i32, i32) {
    %c0_i32 = arith.constant 0 : i32
    %c0_i32_0 = arith.constant 0 : i32
    %c0_i32_1 = arith.constant 0 : i32
    return %c0_i32, %c0_i32_0 : i32, i32
  }
  func.func @transform_5(%arg0: i32) -> (i32, i32) {
    %c0_i32 = arith.constant 0 : i32
    %c0_i32_0 = arith.constant 0 : i32
    %c0_i32_1 = arith.constant 0 : i32
    return %c0_i32, %c0_i32_0 : i32, i32
  }
}

module attributes {stable_mosaic.version = 11 : i64} {
  func.func @_conv_bn_lrelu_kernel(%arg0: i32, %arg1: memref<200x288xbf16, #tpu.memory_space<vmem>>, %arg2: memref<288x32xbf16, #tpu.memory_space<vmem>>, %arg3: memref<1x32xf32, #tpu.memory_space<vmem>>, %arg4: memref<1x32xf32, #tpu.memory_space<vmem>>, %arg5: memref<1x32xf32, #tpu.memory_space<vmem>>, %arg6: memref<200x32xbf16, #tpu.memory_space<vmem>>) attributes {dimension_semantics = [#tpu.dimension_semantics<arbitrary>], iteration_bounds = array<i64: 1>, scalar_prefetch = 0 : i64, scratch_operands = 0 : i64, tpu.core_type = #tpu.core_type<tc>, window_params = [{pipeline_mode = #tpu.pipeline_mode<synchronous>, transform_indices = @transform_0, window_bounds = array<i64: 200, 288>}, {pipeline_mode = #tpu.pipeline_mode<synchronous>, transform_indices = @transform_1, window_bounds = array<i64: 288, 32>}, {pipeline_mode = #tpu.pipeline_mode<synchronous>, transform_indices = @transform_2, window_bounds = array<i64: 1, 32>}, {pipeline_mode = #tpu.pipeline_mode<synchronous>, transform_indices = @transform_3, window_bounds = array<i64: 1, 32>}, {pipeline_mode = #tpu.pipeline_mode<synchronous>, transform_indices = @transform_4, window_bounds = array<i64: 1, 32>}, {pipeline_mode = #tpu.pipeline_mode<synchronous>, transform_indices = @transform_5, window_bounds = array<i64: 200, 32>}]} {
    %c0 = arith.constant 0 : index
    %c0_0 = arith.constant 0 : index
    %0 = vector.load %arg1[%c0, %c0_0] : memref<200x288xbf16, #tpu.memory_space<vmem>>, vector<200x288xbf16>
    %c0_1 = arith.constant 0 : index
    %c0_2 = arith.constant 0 : index
    %1 = vector.load %arg2[%c0_1, %c0_2] : memref<288x32xbf16, #tpu.memory_space<vmem>>, vector<288x32xbf16>
    %cst = arith.constant dense<0.000000e+00> : vector<200x32xf32>
    %2 = tpu.matmul %0, %1, %cst {dimension_numbers = #tpu.dot_dimension_numbers<[1], [0], [0], [1], [0, 0, 1, 1], [], []>} : vector<200x288xbf16>, vector<288x32xbf16>, vector<200x32xf32> -> vector<200x32xf32>
    %c0_3 = arith.constant 0 : index
    %c0_4 = arith.constant 0 : index
    %3 = vector.load %arg3[%c0_3, %c0_4] : memref<1x32xf32, #tpu.memory_space<vmem>>, vector<1x32xf32>
    %4 = vector.broadcast %3 : vector<1x32xf32> to vector<200x32xf32>
    %5 = arith.addf %2, %4 : vector<200x32xf32>
    %cst_5 = arith.constant dense<0.000000e+00> : vector<32xf32>
    %6 = vector.multi_reduction <add>, %5, %cst_5 [0] : vector<200x32xf32> to vector<32xf32>
    %7 = vector.shape_cast %6 : vector<32xf32> to vector<1x32xf32>
    %cst_6 = arith.constant 2.000000e+02 : f32
    %8 = vector.broadcast %cst_6 : f32 to vector<1x32xf32>
    %9 = arith.divf %7, %8 : vector<1x32xf32>
    %10 = vector.broadcast %9 : vector<1x32xf32> to vector<200x32xf32>
    %11 = arith.subf %5, %10 : vector<200x32xf32>
    %12 = arith.mulf %11, %11 : vector<200x32xf32>
    %cst_7 = arith.constant dense<0.000000e+00> : vector<32xf32>
    %13 = vector.multi_reduction <add>, %12, %cst_7 [0] : vector<200x32xf32> to vector<32xf32>
    %14 = vector.shape_cast %13 : vector<32xf32> to vector<1x32xf32>
    %cst_8 = arith.constant 2.000000e+02 : f32
    %15 = vector.broadcast %cst_8 : f32 to vector<1x32xf32>
    %16 = arith.divf %14, %15 : vector<1x32xf32>
    %c0_9 = arith.constant 0 : index
    %c0_10 = arith.constant 0 : index
    %17 = vector.load %arg4[%c0_9, %c0_10] : memref<1x32xf32, #tpu.memory_space<vmem>>, vector<1x32xf32>
    %cst_11 = arith.constant 9.99999974E-6 : f32
    %18 = vector.broadcast %cst_11 : f32 to vector<1x32xf32>
    %19 = arith.addf %16, %18 : vector<1x32xf32>
    %20 = math.rsqrt %19 : vector<1x32xf32>
    %21 = arith.mulf %17, %20 : vector<1x32xf32>
    %c0_12 = arith.constant 0 : index
    %c0_13 = arith.constant 0 : index
    %22 = vector.load %arg5[%c0_12, %c0_13] : memref<1x32xf32, #tpu.memory_space<vmem>>, vector<1x32xf32>
    %23 = arith.mulf %9, %21 : vector<1x32xf32>
    %24 = arith.subf %22, %23 : vector<1x32xf32>
    %25 = vector.broadcast %21 : vector<1x32xf32> to vector<200x32xf32>
    %26 = arith.mulf %5, %25 : vector<200x32xf32>
    %27 = vector.broadcast %24 : vector<1x32xf32> to vector<200x32xf32>
    %28 = arith.addf %26, %27 : vector<200x32xf32>
    %cst_14 = arith.constant 0.000000e+00 : f32
    %29 = vector.broadcast %cst_14 : f32 to vector<200x32xf32>
    %30 = arith.cmpf ogt, %28, %29 : vector<200x32xf32>
    %cst_15 = arith.constant 2.000000e-01 : f32
    %31 = vector.broadcast %cst_15 : f32 to vector<200x32xf32>
    %32 = arith.mulf %31, %28 : vector<200x32xf32>
    %33 = arith.select %30, %28, %32 : vector<200x32xi1>, vector<200x32xf32>
    %34 = arith.truncf %33 : vector<200x32xf32> to vector<200x32xbf16>
    %c0_16 = arith.constant 0 : index
    %c0_17 = arith.constant 0 : index
    %35 = vector.load %arg6[%c0_16, %c0_17] : memref<200x32xbf16, #tpu.memory_space<vmem>>, vector<200x32xbf16>
    tpu.vector_store %arg6[%c0_16, %c0_17], %34 {strides = array<i32>} : memref<200x32xbf16, #tpu.memory_space<vmem>>, vector<200x32xbf16>,
    return
  }
  func.func @transform_0(%arg0: i32) -> (i32, i32) {
    %c0_i32 = arith.constant 0 : i32
    %c0_i32_0 = arith.constant 0 : i32
    %c0_i32_1 = arith.constant 0 : i32
    return %c0_i32, %c0_i32_0 : i32, i32
  }
  func.func @transform_1(%arg0: i32) -> (i32, i32) {
    %c0_i32 = arith.constant 0 : i32
    %c0_i32_0 = arith.constant 0 : i32
    %c0_i32_1 = arith.constant 0 : i32
    return %c0_i32, %c0_i32_0 : i32, i32
  }
  func.func @transform_2(%arg0: i32) -> (i32, i32) {
    %c0_i32 = arith.constant 0 : i32
    %c0_i32_0 = arith.constant 0 : i32
    %c0_i32_1 = arith.constant 0 : i32
    return %c0_i32, %c0_i32_0 : i32, i32
  }
  func.func @transform_3(%arg0: i32) -> (i32, i32) {
    %c0_i32 = arith.constant 0 : i32
    %c0_i32_0 = arith.constant 0 : i32
    %c0_i32_1 = arith.constant 0 : i32
    return %c0_i32, %c0_i32_0 : i32, i32
  }
  func.func @transform_4(%arg0: i32) -> (i32, i32) {
    %c0_i32 = arith.constant 0 : i32
    %c0_i32_0 = arith.constant 0 : i32
    %c0_i32_1 = arith.constant 0 : i32
    return %c0_i32, %c0_i32_0 : i32, i32
  }
  func.func @transform_5(%arg0: i32) -> (i32, i32) {
    %c0_i32 = arith.constant 0 : i32
    %c0_i32_0 = arith.constant 0 : i32
    %c0_i32_1 = arith.constant 0 : i32
    return %c0_i32, %c0_i32_0 : i32, i32
  }
}

module attributes {stable_mosaic.version = 11 : i64} {
  func.func @_conv_bn_lrelu_kernel(%arg0: i32, %arg1: memref<128x288xbf16, #tpu.memory_space<vmem>>, %arg2: memref<288x32xbf16, #tpu.memory_space<vmem>>, %arg3: memref<1x32xf32, #tpu.memory_space<vmem>>, %arg4: memref<1x32xf32, #tpu.memory_space<vmem>>, %arg5: memref<1x32xf32, #tpu.memory_space<vmem>>, %arg6: memref<128x32xbf16, #tpu.memory_space<vmem>>) attributes {dimension_semantics = [#tpu.dimension_semantics<arbitrary>], iteration_bounds = array<i64: 1>, scalar_prefetch = 0 : i64, scratch_operands = 0 : i64, tpu.core_type = #tpu.core_type<tc>, window_params = [{pipeline_mode = #tpu.pipeline_mode<synchronous>, transform_indices = @transform_0, window_bounds = array<i64: 128, 288>}, {pipeline_mode = #tpu.pipeline_mode<synchronous>, transform_indices = @transform_1, window_bounds = array<i64: 288, 32>}, {pipeline_mode = #tpu.pipeline_mode<synchronous>, transform_indices = @transform_2, window_bounds = array<i64: 1, 32>}, {pipeline_mode = #tpu.pipeline_mode<synchronous>, transform_indices = @transform_3, window_bounds = array<i64: 1, 32>}, {pipeline_mode = #tpu.pipeline_mode<synchronous>, transform_indices = @transform_4, window_bounds = array<i64: 1, 32>}, {pipeline_mode = #tpu.pipeline_mode<synchronous>, transform_indices = @transform_5, window_bounds = array<i64: 128, 32>}]} {
    %c0 = arith.constant 0 : index
    %c0_0 = arith.constant 0 : index
    %0 = vector.load %arg1[%c0, %c0_0] : memref<128x288xbf16, #tpu.memory_space<vmem>>, vector<128x288xbf16>
    %c0_1 = arith.constant 0 : index
    %c0_2 = arith.constant 0 : index
    %1 = vector.load %arg2[%c0_1, %c0_2] : memref<288x32xbf16, #tpu.memory_space<vmem>>, vector<288x32xbf16>
    %cst = arith.constant dense<0.000000e+00> : vector<128x32xf32>
    %2 = tpu.matmul %0, %1, %cst {dimension_numbers = #tpu.dot_dimension_numbers<[1], [0], [0], [1], [0, 0, 1, 1], [], []>} : vector<128x288xbf16>, vector<288x32xbf16>, vector<128x32xf32> -> vector<128x32xf32>
    %c0_3 = arith.constant 0 : index
    %c0_4 = arith.constant 0 : index
    %3 = vector.load %arg3[%c0_3, %c0_4] : memref<1x32xf32, #tpu.memory_space<vmem>>, vector<1x32xf32>
    %4 = vector.broadcast %3 : vector<1x32xf32> to vector<128x32xf32>
    %5 = arith.addf %2, %4 : vector<128x32xf32>
    %cst_5 = arith.constant dense<0.000000e+00> : vector<32xf32>
    %6 = vector.multi_reduction <add>, %5, %cst_5 [0] : vector<128x32xf32> to vector<32xf32>
    %7 = vector.shape_cast %6 : vector<32xf32> to vector<1x32xf32>
    %cst_6 = arith.constant 1.280000e+02 : f32
    %8 = vector.broadcast %cst_6 : f32 to vector<1x32xf32>
    %9 = arith.divf %7, %8 : vector<1x32xf32>
    %10 = vector.broadcast %9 : vector<1x32xf32> to vector<128x32xf32>
    %11 = arith.subf %5, %10 : vector<128x32xf32>
    %12 = arith.mulf %11, %11 : vector<128x32xf32>
    %cst_7 = arith.constant dense<0.000000e+00> : vector<32xf32>
    %13 = vector.multi_reduction <add>, %12, %cst_7 [0] : vector<128x32xf32> to vector<32xf32>
    %14 = vector.shape_cast %13 : vector<32xf32> to vector<1x32xf32>
    %cst_8 = arith.constant 1.280000e+02 : f32
    %15 = vector.broadcast %cst_8 : f32 to vector<1x32xf32>
    %16 = arith.divf %14, %15 : vector<1x32xf32>
    %c0_9 = arith.constant 0 : index
    %c0_10 = arith.constant 0 : index
    %17 = vector.load %arg4[%c0_9, %c0_10] : memref<1x32xf32, #tpu.memory_space<vmem>>, vector<1x32xf32>
    %cst_11 = arith.constant 9.99999974E-6 : f32
    %18 = vector.broadcast %cst_11 : f32 to vector<1x32xf32>
    %19 = arith.addf %16, %18 : vector<1x32xf32>
    %20 = math.rsqrt %19 : vector<1x32xf32>
    %21 = arith.mulf %17, %20 : vector<1x32xf32>
    %c0_12 = arith.constant 0 : index
    %c0_13 = arith.constant 0 : index
    %22 = vector.load %arg5[%c0_12, %c0_13] : memref<1x32xf32, #tpu.memory_space<vmem>>, vector<1x32xf32>
    %23 = arith.mulf %9, %21 : vector<1x32xf32>
    %24 = arith.subf %22, %23 : vector<1x32xf32>
    %25 = vector.broadcast %21 : vector<1x32xf32> to vector<128x32xf32>
    %26 = arith.mulf %5, %25 : vector<128x32xf32>
    %27 = vector.broadcast %24 : vector<1x32xf32> to vector<128x32xf32>
    %28 = arith.addf %26, %27 : vector<128x32xf32>
    %cst_14 = arith.constant 0.000000e+00 : f32
    %29 = vector.broadcast %cst_14 : f32 to vector<128x32xf32>
    %30 = arith.cmpf ogt, %28, %29 : vector<128x32xf32>
    %cst_15 = arith.constant 2.000000e-01 : f32
    %31 = vector.broadcast %cst_15 : f32 to vector<128x32xf32>
    %32 = arith.mulf %31, %28 : vector<128x32xf32>
    %33 = arith.select %30, %28, %32 : vector<128x32xi1>, vector<128x32xf32>
    %34 = arith.truncf %33 : vector<128x32xf32> to vector<128x32xbf16>
    %c0_16 = arith.constant 0 : index
    %c0_17 = arith.constant 0 : index
    %35 = vector.load %arg6[%c0_16, %c0_17] : memref<128x32xbf16, #tpu.memory_space<vmem>>, vector<128x32xbf16>
    tpu.vector_store %arg6[%c0_16, %c0_17], %34 {strides = array<i32>} : memref<128x32xbf16, #tpu.memory_space<vmem>>, vector<128x32xbf16>,
    return
  }
  func.func @transform_0(%arg0: i32) -> (i32, i32) {
    %c0_i32 = arith.constant 0 : i32
    %c0_i32_0 = arith.constant 0 : i32
    %c0_i32_1 = arith.constant 0 : i32
    return %c0_i32, %c0_i32_0 : i32, i32
  }
  func.func @transform_1(%arg0: i32) -> (i32, i32) {
    %c0_i32 = arith.constant 0 : i32
    %c0_i32_0 = arith.constant 0 : i32
    %c0_i32_1 = arith.constant 0 : i32
    return %c0_i32, %c0_i32_0 : i32, i32
  }
  func.func @transform_2(%arg0: i32) -> (i32, i32) {
    %c0_i32 = arith.constant 0 : i32
    %c0_i32_0 = arith.constant 0 : i32
    %c0_i32_1 = arith.constant 0 : i32
    return %c0_i32, %c0_i32_0 : i32, i32
  }
  func.func @transform_3(%arg0: i32) -> (i32, i32) {
    %c0_i32 = arith.constant 0 : i32
    %c0_i32_0 = arith.constant 0 : i32
    %c0_i32_1 = arith.constant 0 : i32
    return %c0_i32, %c0_i32_0 : i32, i32
  }
  func.func @transform_4(%arg0: i32) -> (i32, i32) {
    %c0_i32 = arith.constant 0 : i32
    %c0_i32_0 = arith.constant 0 : i32
    %c0_i32_1 = arith.constant 0 : i32
    return %c0_i32, %c0_i32_0 : i32, i32
  }
  func.func @transform_5(%arg0: i32) -> (i32, i32) {
    %c0_i32 = arith.constant 0 : i32
    %c0_i32_0 = arith.constant 0 : i32
    %c0_i32_1 = arith.constant 0 : i32
    return %c0_i32, %c0_i32_0 : i32, i32
  }
}

module attributes {stable_mosaic.version = 11 : i64} {
  func.func @_conv_bias_kernel(%arg0: i32, %arg1: memref<72x288xbf16, #tpu.memory_space<vmem>>, %arg2: memref<288x1xbf16, #tpu.memory_space<vmem>>, %arg3: memref<1x1xf32, #tpu.memory_space<vmem>>, %arg4: memref<72x1xf32, #tpu.memory_space<vmem>>) attributes {dimension_semantics = [#tpu.dimension_semantics<arbitrary>], iteration_bounds = array<i64: 1>, scalar_prefetch = 0 : i64, scratch_operands = 0 : i64, tpu.core_type = #tpu.core_type<tc>, window_params = [{pipeline_mode = #tpu.pipeline_mode<synchronous>, transform_indices = @transform_0, window_bounds = array<i64: 72, 288>}, {pipeline_mode = #tpu.pipeline_mode<synchronous>, transform_indices = @transform_1, window_bounds = array<i64: 288, 1>}, {pipeline_mode = #tpu.pipeline_mode<synchronous>, transform_indices = @transform_2, window_bounds = array<i64: 1, 1>}, {pipeline_mode = #tpu.pipeline_mode<synchronous>, transform_indices = @transform_3, window_bounds = array<i64: 72, 1>}]} {
    %c0 = arith.constant 0 : index
    %c0_0 = arith.constant 0 : index
    %0 = vector.load %arg1[%c0, %c0_0] : memref<72x288xbf16, #tpu.memory_space<vmem>>, vector<72x288xbf16>
    %c0_1 = arith.constant 0 : index
    %c0_2 = arith.constant 0 : index
    %1 = vector.load %arg2[%c0_1, %c0_2] : memref<288x1xbf16, #tpu.memory_space<vmem>>, vector<288x1xbf16>
    %cst = arith.constant dense<0.000000e+00> : vector<72x1xf32>
    %2 = tpu.matmul %0, %1, %cst {dimension_numbers = #tpu.dot_dimension_numbers<[1], [0], [0], [1], [0, 0, 1, 1], [], []>} : vector<72x288xbf16>, vector<288x1xbf16>, vector<72x1xf32> -> vector<72x1xf32>
    %c0_3 = arith.constant 0 : index
    %c0_4 = arith.constant 0 : index
    %3 = vector.load %arg3[%c0_3, %c0_4] : memref<1x1xf32, #tpu.memory_space<vmem>>, vector<1x1xf32>
    %4 = vector.broadcast %3 : vector<1x1xf32> to vector<72x1xf32>
    %5 = arith.addf %2, %4 : vector<72x1xf32>
    %c0_5 = arith.constant 0 : index
    %c0_6 = arith.constant 0 : index
    %6 = vector.load %arg4[%c0_5, %c0_6] : memref<72x1xf32, #tpu.memory_space<vmem>>, vector<72x1xf32>
    tpu.vector_store %arg4[%c0_5, %c0_6], %5 {strides = array<i32>} : memref<72x1xf32, #tpu.memory_space<vmem>>, vector<72x1xf32>,
    return
  }
  func.func @transform_0(%arg0: i32) -> (i32, i32) {
    %c0_i32 = arith.constant 0 : i32
    %c0_i32_0 = arith.constant 0 : i32
    %c0_i32_1 = arith.constant 0 : i32
    return %c0_i32, %c0_i32_0 : i32, i32
  }
  func.func @transform_1(%arg0: i32) -> (i32, i32) {
    %c0_i32 = arith.constant 0 : i32
    %c0_i32_0 = arith.constant 0 : i32
    %c0_i32_1 = arith.constant 0 : i32
    return %c0_i32, %c0_i32_0 : i32, i32
  }
  func.func @transform_2(%arg0: i32) -> (i32, i32) {
    %c0_i32 = arith.constant 0 : i32
    %c0_i32_0 = arith.constant 0 : i32
    %c0_i32_1 = arith.constant 0 : i32
    return %c0_i32, %c0_i32_0 : i32, i32
  }
  func.func @transform_3(%arg0: i32) -> (i32, i32) {
    %c0_i32 = arith.constant 0 : i32
    %c0_i32_0 = arith.constant 0 : i32
    %c0_i32_1 = arith.constant 0 : i32
    return %c0_i32, %c0_i32_0 : i32, i32
  }
}

</mosaic_0001>

<bundles_post_ra>
// kernel: _lambda_.5
= control target key start
LH: loop header
LB: loop body
LE: loop exit
PB: predicated region body
PF: predicated region fallthrough
CT: control target
= control target key end

     0   :  { %vm291_vm0 = vcmask 1044480   ;;  %vm292_vm1 = vcmask 1045504   ;;  %v1671_v0 = vmov 0.0   ;;  %v1672_v2 = vmov 65535   ;;  %s3222_s1 = inlined_call_operand.vmem [shape: bf16[27,32], index: 1, kind: input, shape index: {}]   ;;  %s3223_s0 = inlined_call_operand.vmem [shape: bf16[392,27], index: 0, kind: input, shape index: {}]   ;;  %s3224_s2 = inlined_call_operand.vmem [shape: f32[1,32], index: 2, kind: input, shape index: {}]   ;;  %s3225_s3 = inlined_call_operand.vmem [shape: f32[1,32], index: 3, kind: input, shape index: {}]   ;;  %s3226_s4 = inlined_call_operand.vmem [shape: f32[1,32], index: 4, kind: input, shape index: {}]   ;;  %s3227_s5 = inlined_call_operand.vmem [shape: bf16[392,32], index: 5, kind: output, shape index: {}]  }
   0x1   :  { %1531 = vmatprep.subr.bf16.mxu0 %v1671_v0  ;;  %v1642_v1 = vld [vmem:[%s3222_s1 + $0x8] sm:$0x3f]   ;;  %1635 = vmatprep.subr.bf16.mxu1 %v1671_v0  ;;  %v293_v3 = vsel %vm291_vm0, 4294967295, %v1672_v2  ;;  %vm1673_vm2 = vmmov 0   ;;  %v1643_v6 = vld [vmem:[%s3222_s1] sm:$0xff]   ;;  %vm215_vm3 = vcmask 220160  }
   0x2   :  { %v294_v4 = vsel %vm292_vm1, %v293_v3, 0  ;;  %1535 = vmatprep.mubr.msk.bf16.mxu0 %vm1673_vm2, %v1671_v0  ;;  %1587 = vmatprep.mubr.msk.bf16.mxu1 %vm1673_vm2, %v1671_v0  ;;  %v1644_v7 = vld [vmem:[%s3223_s0] sm:$0xff]   ;;  %v1651_v8 = vld [vmem:[%s3223_s0 + $0x68] sm:$0xff]   ;;  %v1653_v10 = vld [vmem:[%s3223_s0 + $0x70] sm:$0xff]   ;;  %vm530_vm4 = vcmask 261120  }
   0x3   :  { %v296_v5 = vand.u32 %v1642_v1, %v294_v4  ;;  %v1645_v9 = vld [vmem:[%s3223_s0 + $0x8] sm:$0xff]   ;;  %v1646_v11 = vld [vmem:[%s3223_s0 + $0x10] sm:$0xff]   ;;  %v1655_v12 = vld [vmem:[%s3223_s0 + $0x78] sm:$0xff]  }
   0x4   :  { %v1647_v13 = vld [vmem:[%s3223_s0 + $0x18] sm:$0xff]   ;;  %v1657_v14 = vld [vmem:[%s3223_s0 + $0x80] sm:$0xff]   ;;  %v1659_v16 = vld [vmem:[%s3223_s0 + $0x88] sm:$0xff]  }
   0x5   :  { %1532 = vmatpush3.bf16.msra.mxu0 %v296_v5  ;;  %1637 = vmatpush3.bf16.msra.mxu1 %v296_v5  ;;  %v1648_v15 = vld [vmem:[%s3223_s0 + $0x20] sm:$0xff]   ;;  %v1649_v17 = vld [vmem:[%s3223_s0 + $0x28] sm:$0xff]   ;;  %v1661_v18 = vld [vmem:[%s3223_s0 + $0x90] sm:$0xff]  }
   0x6   :  { %1533 = vmatprep.subr.bf16.mxu0 %v1671_v0  ;;  %1636 = vmatprep.subr.bf16.mxu1 %v1671_v0  ;;  %v1650_v19 = vld [vmem:[%s3223_s0 + $0x30] sm:$0xff]   ;;  %v1663_v20 = vld [vmem:[%s3223_s0 + $0x98] sm:$0xff]   ;;  %v1664_v22 = vld [vmem:[%s3223_s0 + $0xa0] sm:$0xff]  }
   0x7   :  { %v1652_v21 = vld [vmem:[%s3223_s0 + $0x38] sm:$0xff]   ;;  %v1654_v23 = vld [vmem:[%s3223_s0 + $0x40] sm:$0xff]   ;;  %v1665_v24 = vld [vmem:[%s3223_s0 + $0xa8] sm:$0xff]  }
   0x8   :  { %v1656_v25 = vld [vmem:[%s3223_s0 + $0x48] sm:$0xff]   ;;  %v1666_v26 = vld [vmem:[%s3223_s0 + $0xb0] sm:$0xff]   ;;  %v1667_v28 = vld [vmem:[%s3223_s0 + $0xb8] sm:$0xff]  }
   0x9   :  { %1534 = vmatpush3.bf16.msra.mxu0 %v1643_v6  ;;  %1638 = vmatpush3.bf16.msra.mxu1 %v1643_v6  ;;  %v1658_v27 = vld [vmem:[%s3223_s0 + $0x50] sm:$0xff]   ;;  %v1660_v29 = vld [vmem:[%s3223_s0 + $0x58] sm:$0xff]   ;;  %v1668_v30 = vld [vmem:[%s3223_s0 + $0xc0] ss:$0 sps:$4 sm:$0xff]  }
   0xa   :  { %v1662_v31 = vld [vmem:[%s3223_s0 + $0x60] sm:$0xff]  }
   0xc   :  { %1536 = vmatmul.mubr.msk.bf16.vlgmr.msra.gmra.mxu0 %vm215_vm3, %v1644_v7  ;;  %1588 = vmatmul.mubr.msk.bf16.vlgmr.msra.gmra.mxu1 %vm215_vm3, %v1651_v8 }
   0xd   :  { %1539 = vmatprep.mubr.msk.bf16.mxu0 %vm1673_vm2, %v1671_v0  ;;  %1591 = vmatprep.mubr.msk.bf16.mxu1 %vm1673_vm2, %v1671_v0 }
  0x14   :  { %1540 = vmatmul.mubr.msk.bf16.gmra.mxu0 %vm215_vm3, %v1645_v9  ;;  %1592 = vmatmul.mubr.msk.bf16.gmra.mxu1 %vm215_vm3, %v1653_v10 }
  0x15   :  { %1543 = vmatprep.mubr.msk.bf16.mxu0 %vm1673_vm2, %v1671_v0  ;;  %1595 = vmatprep.mubr.msk.bf16.mxu1 %vm1673_vm2, %v1671_v0 }
  0x1c   :  { %1544 = vmatmul.mubr.msk.bf16.gmra.mxu0 %vm215_vm3, %v1646_v11  ;;  %1596 = vmatmul.mubr.msk.bf16.gmra.mxu1 %vm215_vm3, %v1655_v12 }
  0x1d   :  { %1547 = vmatprep.mubr.msk.bf16.mxu0 %vm1673_vm2, %v1671_v0  ;;  %1599 = vmatprep.mubr.msk.bf16.mxu1 %vm1673_vm2, %v1671_v0 }
  0x24   :  { %1548 = vmatmul.mubr.msk.bf16.gmra.mxu0 %vm215_vm3, %v1647_v13  ;;  %1600 = vmatmul.mubr.msk.bf16.gmra.mxu1 %vm215_vm3, %v1657_v14 }
  0x25   :  { %1551 = vmatprep.mubr.msk.bf16.mxu0 %vm1673_vm2, %v1671_v0  ;;  %1603 = vmatprep.mubr.msk.bf16.mxu1 %vm1673_vm2, %v1671_v0 }
  0x2c   :  { %1552 = vmatmul.mubr.msk.bf16.gmra.mxu0 %vm215_vm3, %v1648_v15  ;;  %1604 = vmatmul.mubr.msk.bf16.gmra.mxu1 %vm215_vm3, %v1659_v16  ;;  %v1891_v16 = vld [vmem:[%s3224_s2] ss:$0 sm:$0xff] }
  0x2d   :  { %1555 = vmatprep.mubr.msk.bf16.mxu0 %vm1673_vm2, %v1671_v0  ;;  %1607 = vmatprep.mubr.msk.bf16.mxu1 %vm1673_vm2, %v1671_v0 }
  0x34   :  { %1556 = vmatmul.mubr.msk.bf16.gmra.mxu0 %vm215_vm3, %v1649_v17  ;;  %1608 = vmatmul.mubr.msk.bf16.gmra.mxu1 %vm215_vm3, %v1661_v18 }
  0x35   :  { %1559 = vmatprep.mubr.msk.bf16.mxu0 %vm1673_vm2, %v1671_v0  ;;  %1611 = vmatprep.mubr.msk.bf16.mxu1 %vm1673_vm2, %v1671_v0 }
  0x3c   :  { %1560 = vmatmul.mubr.msk.bf16.gmra.mxu0 %vm215_vm3, %v1650_v19  ;;  %1612 = vmatmul.mubr.msk.bf16.gmra.mxu1 %vm215_vm3, %v1663_v20 }
  0x3d   :  { %1563 = vmatprep.mubr.msk.bf16.mxu0 %vm1673_vm2, %v1671_v0  ;;  %1615 = vmatprep.mubr.msk.bf16.mxu1 %vm1673_vm2, %v1671_v0 }
  0x44   :  { %1564 = vmatmul.mubr.msk.bf16.gmra.mxu0 %vm215_vm3, %v1652_v21  ;;  %1616 = vmatmul.mubr.msk.bf16.gmra.mxu1 %vm215_vm3, %v1664_v22 }
  0x45   :  { %1567 = vmatprep.mubr.msk.bf16.mxu0 %vm1673_vm2, %v1671_v0  ;;  %1619 = vmatprep.mubr.msk.bf16.mxu1 %vm1673_vm2, %v1671_v0 }
  0x4c   :  { %1568 = vmatmul.mubr.msk.bf16.gmra.mxu0 %vm215_vm3, %v1654_v23  ;;  %1620 = vmatmul.mubr.msk.bf16.gmra.mxu1 %vm215_vm3, %v1665_v24 }
  0x4d   :  { %1571 = vmatprep.mubr.msk.bf16.mxu0 %vm1673_vm2, %v1671_v0  ;;  %1623 = vmatprep.mubr.msk.bf16.mxu1 %vm1673_vm2, %v1671_v0 }
  0x54   :  { %1572 = vmatmul.mubr.msk.bf16.gmra.mxu0 %vm215_vm3, %v1656_v25  ;;  %1624 = vmatmul.mubr.msk.bf16.gmra.mxu1 %vm215_vm3, %v1666_v26 }
  0x55   :  { %1575 = vmatprep.mubr.msk.bf16.mxu0 %vm1673_vm2, %v1671_v0  ;;  %1627 = vmatprep.mubr.msk.bf16.mxu1 %vm1673_vm2, %v1671_v0 }
  0x5c   :  { %1576 = vmatmul.mubr.msk.bf16.gmra.mxu0 %vm215_vm3, %v1658_v27  ;;  %1628 = vmatmul.mubr.msk.bf16.gmra.mxu1 %vm215_vm3, %v1667_v28 }
  0x5d   :  { %1579 = vmatprep.mubr.msk.bf16.mxu0 %vm1673_vm2, %v1671_v0  ;;  %1631 = vmatprep.mubr.msk.bf16.mxu1 %vm1673_vm2, %v1671_v0 }
  0x64   :  { %1580 = vmatmul.mubr.msk.bf16.gmra.mxu0 %vm215_vm3, %v1660_v29  ;;  %1632 = vmatmul.mubr.msk.bf16.gmra.mxu1 %vm215_vm3, %v1668_v30 }
  0x65   :  { %1583 = vmatprep.mubr.msk.bf16.mxu0 %vm1673_vm2, %v1671_v0 }
  0x6c   :  { %1584 = vmatmul.mubr.msk.bf16.gmra.mxu0 %vm215_vm3, %v1662_v31 }
  0xcc   :  { %v332_v32 = vpop.f32.mrf.mxu0  ;;  %v1864_v33 = vpop.f32.mrf.mxu1 }
  0xcd   :  { %v1899_v22 = vadd.f32 %v1891_v16, %v332_v32 }
  0xce   :  { %v1537_v34 = vpop.f32.mrf.mxu0  ;;  %v1589_v35 = vpop.f32.mrf.mxu1 }
  0xcf   :  { %v531_v30 = vsel %vm530_vm4, %v1899_v22, 0.0 }
  0xd0   :  { %v335_v36 = vpop.f32.mrf.mxu0  ;;  %v1866_v37 = vpop.f32.mrf.mxu1 }
  0xd1   :  { %v1896_v19 = vadd.f32 %v1891_v16, %v335_v36 }
  0xd2   :  { %v1538_v38 = vpop.f32.mrf.mxu0  ;;  %v1590_v39 = vpop.f32.mrf.mxu1 }
  0xd3   :  { %v532_v26 = vsel %vm530_vm4, %v1896_v19, 0.0 }
  0xd4   :  { %v340_v40 = vpop.f32.mrf.mxu0  ;;  %v1868_v41 = vpop.f32.mrf.mxu1  ;;  %v533_v34 = vadd.f32 %v532_v26, %v531_v30 }
  0xd5   :  { %v1902_v23 = vadd.f32 %v1891_v16, %v340_v40 }
  0xd6   :  { %v1541_v42 = vpop.f32.mrf.mxu0  ;;  %v1593_v43 = vpop.f32.mrf.mxu1 }
  0xd7   :  { %v534_v31 = vsel %vm530_vm4, %v1902_v23, 0.0 }
  0xd8   :  { %v343_v44 = vpop.f32.mrf.mxu0  ;;  %v1870_v45 = vpop.f32.mrf.mxu1  ;;  %v535_v40 = vadd.f32 %v534_v31, %v533_v34 }
  0xd9   :  { %v1909_v27 = vadd.f32 %v1891_v16, %v343_v44 }
  0xda   :  { %v1542_v46 = vpop.f32.mrf.mxu0  ;;  %v1594_v47 = vpop.f32.mrf.mxu1 }
  0xdb   :  { %3259 = vst [vmem:[#allocation2_spill] sm:$0xff] %v1909_v27  ;;  %v536_v38 = vsel %vm530_vm4, %v1909_v27, 0.0 }
  0xdc   :  { %v348_v48 = vpop.f32.mrf.mxu0  ;;  %v1872_v49 = vpop.f32.mrf.mxu1  ;;  %v537_v47 = vadd.f32 %v536_v38, %v535_v40 }
  0xdd   :  { %v1916_v32 = vadd.f32 %v1891_v16, %v348_v48 }
  0xde   :  { %v1545_v50 = vpop.f32.mrf.mxu0  ;;  %v1597_v51 = vpop.f32.mrf.mxu1 }
  0xdf   :  { %3260 = vst [vmem:[#allocation3_spill] sm:$0xff] %v1916_v32  ;;  %v538_v44 = vsel %vm530_vm4, %v1916_v32, 0.0 }
  0xe0   :  { %v351_v52 = vpop.f32.mrf.mxu0  ;;  %v1874_v53 = vpop.f32.mrf.mxu1 }
  0xe1   :  { %v1923_v39 = vadd.f32 %v1891_v16, %v351_v52  ;;  %v539_v52 = vadd.f32 %v538_v44, %v537_v47 }
  0xe2   :  { %v1546_v54 = vpop.f32.mrf.mxu0  ;;  %v1598_v55 = vpop.f32.mrf.mxu1 }
  0xe3   :  { %3261 = vst [vmem:[#allocation4_spill] sm:$0xff] %v1923_v39  ;;  %v540_v51 = vsel %vm530_vm4, %v1923_v39, 0.0 }
  0xe4   :  { %v356_v56 = vpop.f32.mrf.mxu0  ;;  %v1876_v57 = vpop.f32.mrf.mxu1 }
  0xe5   :  { %v1928_v46 = vadd.f32 %v1891_v16, %v356_v56  ;;  %v541_v56 = vadd.f32 %v540_v51, %v539_v52 }
  0xe6   :  { %v1549_v58 = vpop.f32.mrf.mxu0  ;;  %v1601_v59 = vpop.f32.mrf.mxu1 }
  0xe7   :  { %v542_v59 = vsel %vm530_vm4, %v1928_v46, 0.0 }
  0xe8   :  { %v359_v60 = vpop.f32.mrf.mxu0  ;;  %v1878_v61 = vpop.f32.mrf.mxu1 }
  0xe9   :  { %v1935_v54 = vadd.f32 %v1891_v16, %v359_v60  ;;  %v543_v60 = vadd.f32 %v542_v59, %v541_v56 }
  0xea   :  { %v1550_v62 = vpop.f32.mrf.mxu0  ;;  %v1602_v63 = vpop.f32.mrf.mxu1 }
  0xec   :  { %v364_v0 = vpop.f32.mrf.mxu0  ;;  %v1880_v1 = vpop.f32.mrf.mxu1 }
  0xed   :  { %v1940_v62 = vadd.f32 %v1891_v16, %v364_v0 }
  0xee   :  { %v1553_v2 = vpop.f32.mrf.mxu0  ;;  %v1605_v3 = vpop.f32.mrf.mxu1 }
  0xef   :  { %v544_v3 = vsel %vm530_vm4, %v1935_v54, 0.0 }
  0xf0   :  { %v367_v4 = vpop.f32.mrf.mxu0  ;;  %v1882_v5 = vpop.f32.mrf.mxu1  ;;  %v545_v0 = vadd.f32 %v544_v3, %v543_v60 }
  0xf2   :  { %v1554_v6 = vpop.f32.mrf.mxu0  ;;  %v1606_v7 = vpop.f32.mrf.mxu1 }
  0xf3   :  { %v1947_v6 = vadd.f32 %v1891_v16, %v367_v4 }
  0xf4   :  { %v372_v8 = vpop.f32.mrf.mxu0  ;;  %v1884_v9 = vpop.f32.mrf.mxu1 }
  0xf6   :  { %v1557_v10 = vpop.f32.mrf.mxu0  ;;  %v1609_v11 = vpop.f32.mrf.mxu1 }
  0xf7   :  { %v546_v11 = vsel %vm530_vm4, %v1940_v62, 0.0 }
  0xf8   :  { %v375_v12 = vpop.f32.mrf.mxu0  ;;  %v1886_v13 = vpop.f32.mrf.mxu1  ;;  %v547_v4 = vadd.f32 %v546_v11, %v545_v0 }
  0xf9   :  { %v1959_v26 = vadd.f32 %v1891_v16, %v375_v12 }
  0xfa   :  { %v1558_v14 = vpop.f32.mrf.mxu0  ;;  %v1610_v15 = vpop.f32.mrf.mxu1 }
  0xfb   :  { %v1952_v14 = vadd.f32 %v1891_v16, %v372_v8  ;;  %v552_v40 = vsel %vm530_vm4, %v1959_v26, 0.0 }
  0xfc   :  { %v380_v17 = vpop.f32.mrf.mxu0  ;;  %v1893_v18 = vpop.f32.mrf.mxu1 }
  0xfd   :  { %v550_v30 = vsel %vm530_vm4, %v1952_v14, 0.0  ;;  %v1964_v31 = vadd.f32 %v1891_v16, %v380_v17 }
  0xfe   :  { %v1561_v20 = vpop.f32.mrf.mxu0  ;;  %v1613_v21 = vpop.f32.mrf.mxu1 }
  0xff   :  { %v548_v21 = vsel %vm530_vm4, %v1947_v6, 0.0  ;;  %v554_v47 = vsel %vm530_vm4, %v1964_v31, 0.0 }
 0x100   :  { %v383_v24 = vpop.f32.mrf.mxu0  ;;  %v1904_v25 = vpop.f32.mrf.mxu1  ;;  %v549_v8 = vadd.f32 %v548_v21, %v547_v4 }
 0x102   :  { %v1562_v28 = vpop.f32.mrf.mxu0  ;;  %v1614_v29 = vpop.f32.mrf.mxu1  ;;  %v551_v12 = vadd.f32 %v550_v30, %v549_v8 }
 0x104   :  { %v388_v35 = vpop.f32.mrf.mxu0  ;;  %v1918_v36 = vpop.f32.mrf.mxu1  ;;  %v553_v17 = vadd.f32 %v552_v40, %v551_v12 }
 0x105   :  { %v1976_v51 = vadd.f32 %v1891_v16, %v388_v35 }
 0x106   :  { %v1565_v42 = vpop.f32.mrf.mxu0  ;;  %v1617_v43 = vpop.f32.mrf.mxu1 }
 0x107   :  { %v1971_v42 = vadd.f32 %v1891_v16, %v383_v24  ;;  %v555_v24 = vadd.f32 %v554_v47, %v553_v17  ;;  %v558_v60 = vsel %vm530_vm4, %v1976_v51, 0.0 }
 0x108   :  { %v391_v48 = vpop.f32.mrf.mxu0  ;;  %v1930_v50 = vpop.f32.mrf.mxu1 }
 0x109   :  { %v1983_v59 = vadd.f32 %v1891_v16, %v391_v48 }
 0x10a   :  { %v1566_v55 = vpop.f32.mrf.mxu0  ;;  %v1618_v58 = vpop.f32.mrf.mxu1 }
 0x10b   :  { %v556_v58 = vsel %vm530_vm4, %v1971_v42, 0.0  ;;  %v560_v0 = vsel %vm530_vm4, %v1983_v59, 0.0 }
 0x10c   :  { %v396_v63 = vpop.f32.mrf.mxu0  ;;  %v1942_v2 = vpop.f32.mrf.mxu1  ;;  %v557_v35 = vadd.f32 %v556_v58, %v555_v24 }
 0x10e   :  { %v1569_v7 = vpop.f32.mrf.mxu0  ;;  %v1621_v10 = vpop.f32.mrf.mxu1  ;;  %v559_v48 = vadd.f32 %v558_v60, %v557_v35 }
 0x10f   :  { %v1988_v7 = vadd.f32 %v1891_v16, %v396_v63 }
 0x110   :  { %v399_v15 = vpop.f32.mrf.mxu0  ;;  %v1954_v20 = vpop.f32.mrf.mxu1  ;;  %v561_v63 = vadd.f32 %v560_v0, %v559_v48 }
 0x111   :  { %v1995_v21 = vadd.f32 %v1891_v16, %v399_v15 }
 0x112   :  { %v1570_v28 = vpop.f32.mrf.mxu0  ;;  %v1622_v29 = vpop.f32.mrf.mxu1 }
 0x113   :  { %v562_v29 = vsel %vm530_vm4, %v1988_v7, 0.0  ;;  %v564_v12 = vsel %vm530_vm4, %v1995_v21, 0.0 }
 0x114   :  { %v404_v34 = vpop.f32.mrf.mxu0  ;;  %v1966_v38 = vpop.f32.mrf.mxu1  ;;  %v563_v15 = vadd.f32 %v562_v29, %v561_v63 }
 0x115   :  { %v2000_v30 = vadd.f32 %v1891_v16, %v404_v34 }
 0x116   :  { %v1573_v43 = vpop.f32.mrf.mxu0  ;;  %v1625_v44 = vpop.f32.mrf.mxu1  ;;  %v565_v34 = vadd.f32 %v564_v12, %v563_v15 }
 0x117   :  { %v566_v17 = vsel %vm530_vm4, %v2000_v30, 0.0 }
 0x118   :  { %v407_v52 = vpop.f32.mrf.mxu0  ;;  %v1978_v55 = vpop.f32.mrf.mxu1 }
 0x119   :  { %v2007_v43 = vadd.f32 %v1891_v16, %v407_v52  ;;  %v567_v52 = vadd.f32 %v566_v17, %v565_v34 }
 0x11a   :  { %v1574_v56 = vpop.f32.mrf.mxu0  ;;  %v1626_v3 = vpop.f32.mrf.mxu1 }
 0x11b   :  { %v568_v3 = vsel %vm530_vm4, %v2007_v43, 0.0 }
 0x11c   :  { %v412_v10 = vpop.f32.mrf.mxu0  ;;  %v1990_v11 = vpop.f32.mrf.mxu1 }
 0x11d   :  { %v2012_v58 = vadd.f32 %v1891_v16, %v412_v10  ;;  %v569_v10 = vadd.f32 %v568_v3, %v567_v52 }
 0x11e   :  { %v1577_v4 = vpop.f32.mrf.mxu0  ;;  %v1629_v28 = vpop.f32.mrf.mxu1 }
 0x11f   :  { %v570_v48 = vsel %vm530_vm4, %v2012_v58, 0.0 }
 0x120   :  { %v415_v8 = vpop.f32.mrf.mxu0  ;;  %v2002_v40 = vpop.f32.mrf.mxu1 }
 0x121   :  { %v2019_v60 = vadd.f32 %v1891_v16, %v415_v8  ;;  %v571_v8 = vadd.f32 %v570_v48, %v569_v10  ;;  %v2042_v10 = vadd.f32 %v1891_v16, %v1864_v33  ;;  %v2057_v33 = vadd.f32 %v1891_v16, %v1868_v41 }
 0x122   :  { %v1578_v44 = vpop.f32.mrf.mxu0  ;;  %v1630_v47 = vpop.f32.mrf.mxu1 }
 0x123   :  { %v572_v63 = vsel %vm530_vm4, %v2019_v60, 0.0 }
 0x124   :  { %v420_v24 = vpop.f32.mrf.mxu0  ;;  %v2014_v56 = vpop.f32.mrf.mxu1  ;;  %v573_v17 = vadd.f32 %v572_v63, %v571_v8 }
 0x125   :  { %v2024_v4 = vadd.f32 %v1891_v16, %v420_v24 }
 0x126   :  { %v1581_v35 = vpop.f32.mrf.mxu0  ;;  %v1633_v0 = vpop.f32.mrf.mxu1 }
 0x127   :  { %v574_v47 = vsel %vm530_vm4, %v2024_v4, 0.0 }
 0x128   :  { %v423_v28 = vpop.f32.mrf.mxu0  ;;  %v527_v29 = vpop.f32.mrf.mxu1  ;;  %v575_v52 = vadd.f32 %v574_v47, %v573_v17  ;;  %v582_v17 = vsel %vm530_vm4, %v2042_v10, 0.0 }
 0x129   :  { %v2029_v12 = vadd.f32 %v1891_v16, %v423_v28 }
 0x12a   :  { %v1582_v15 = vpop.f32.mrf.mxu0  ;;  %v1634_v44 = vpop.f32.mrf.mxu1 }
 0x12b   :  { %v576_v24 = vsel %vm530_vm4, %v2029_v12, 0.0  ;;  %v2049_v15 = vadd.f32 %v1891_v16, %v1866_v37 }
 0x12c   :  { %v428_v34 = vpop.f32.mrf.mxu0  ;;  %v577_v28 = vadd.f32 %v576_v24, %v575_v52  ;;  %v2063_v52 = vadd.f32 %v1891_v16, %v1870_v45 }
 0x12d   :  { %v2036_v3 = vadd.f32 %v1891_v16, %v428_v34  ;;  %v584_v24 = vsel %vm530_vm4, %v2049_v15, 0.0 }
 0x12e   :  { %v1585_v35 = vpop.f32.mrf.mxu0  ;;  %v588_v41 = vsel %vm530_vm4, %v2063_v52, 0.0 }
 0x12f   :  { %v578_v0 = vsel %vm530_vm4, %v2036_v3, 0.0  ;;  %v586_v35 = vsel %vm530_vm4, %v2057_v33, 0.0 }
 0x130   :  { %v431_v48 = vpop.f32.mrf.mxu0  ;;  %v579_v63 = vadd.f32 %v578_v0, %v577_v28  ;;  %v2069_v0 = vadd.f32 %v1891_v16, %v1872_v49 }
 0x131   :  { %v2045_v29 = vadd.f32 %v1891_v16, %v431_v48  ;;  %v2075_v48 = vadd.f32 %v1891_v16, %v1874_v53 }
 0x132   :  { %v1586_v8 = vpop.f32.mrf.mxu0  ;;  %v590_v45 = vsel %vm530_vm4, %v2069_v0, 0.0 }
 0x133   :  { %v580_v44 = vsel %vm530_vm4, %v2045_v29, 0.0  ;;  %v2081_v8 = vadd.f32 %v1891_v16, %v1876_v57  ;;  %v592_v49 = vsel %vm530_vm4, %v2075_v48, 0.0 }
 0x134   :  { %v581_v47 = vadd.f32 %v580_v44, %v579_v63 }
 0x135   :  { %v594_v53 = vsel %vm530_vm4, %v2081_v8, 0.0 }
 0x136   :  { %v583_v34 = vadd.f32 %v582_v17, %v581_v47  ;;  %v2087_v47 = vadd.f32 %v1891_v16, %v1878_v61 }
 0x138   :  { %v585_v37 = vadd.f32 %v584_v24, %v583_v34  ;;  %v2093_v34 = vadd.f32 %v1891_v16, %v1880_v1  ;;  %v596_v57 = vsel %vm530_vm4, %v2087_v47, 0.0 }
 0x13a   :  { %v587_v28 = vadd.f32 %v586_v35, %v585_v37  ;;  %v2099_v37 = vadd.f32 %v1891_v16, %v1882_v5  ;;  %v598_v61 = vsel %vm530_vm4, %v2093_v34, 0.0 }
 0x13c   :  { %v589_v63 = vadd.f32 %v588_v41, %v587_v28  ;;  %v2105_v28 = vadd.f32 %v1891_v16, %v1884_v9  ;;  %v600_v1 = vsel %vm530_vm4, %v2099_v37, 0.0 }
 0x13e   :  { %v591_v44 = vadd.f32 %v590_v45, %v589_v63  ;;  %v2111_v63 = vadd.f32 %v1891_v16, %v1886_v13  ;;  %v602_v5 = vsel %vm530_vm4, %v2105_v28, 0.0 }
 0x140   :  { %v593_v17 = vadd.f32 %v592_v49, %v591_v44  ;;  %v2117_v44 = vadd.f32 %v1891_v16, %v1893_v18  ;;  %v604_v9 = vsel %vm530_vm4, %v2111_v63, 0.0 }
 0x142   :  { %v595_v24 = vadd.f32 %v594_v53, %v593_v17  ;;  %v2123_v17 = vadd.f32 %v1891_v16, %v1904_v25  ;;  %v606_v13 = vsel %vm530_vm4, %v2117_v44, 0.0 }
 0x144   :  { %v597_v35 = vadd.f32 %v596_v57, %v595_v24  ;;  %v2129_v24 = vadd.f32 %v1891_v16, %v1918_v36  ;;  %v608_v18 = vsel %vm530_vm4, %v2123_v17, 0.0 }
 0x146   :  { %v599_v41 = vadd.f32 %v598_v61, %v597_v35  ;;  %v2135_v35 = vadd.f32 %v1891_v16, %v1930_v50  ;;  %v610_v25 = vsel %vm530_vm4, %v2129_v24, 0.0 }
 0x148   :  { %v601_v45 = vadd.f32 %v600_v1, %v599_v41  ;;  %v2141_v41 = vadd.f32 %v1891_v16, %v1942_v2  ;;  %v612_v36 = vsel %vm530_vm4, %v2135_v35, 0.0 }
 0x14a   :  { %v603_v49 = vadd.f32 %v602_v5, %v601_v45  ;;  %3262 = vst [vmem:[#allocation5_spill] sm:$0xff] %v2141_v41  ;;  %v2147_v45 = vadd.f32 %v1891_v16, %v1954_v20  ;;  %v614_v50 = vsel %vm530_vm4, %v2141_v41, 0.0 }
 0x14c   :  { %v605_v53 = vadd.f32 %v604_v9, %v603_v49  ;;  %v2153_v49 = vadd.f32 %v1891_v16, %v1966_v38  ;;  %v616_v2 = vsel %vm530_vm4, %v2147_v45, 0.0 }
 0x14e   :  { %v607_v57 = vadd.f32 %v606_v13, %v605_v53  ;;  %v2159_v53 = vadd.f32 %v1891_v16, %v1978_v55  ;;  %v618_v20 = vsel %vm530_vm4, %v2153_v49, 0.0  ;;  %v2175_v55 = vadd.f32 %v1891_v16, %v2014_v56 }
 0x150   :  { %v609_v61 = vadd.f32 %v608_v18, %v607_v57  ;;  %3263 = vst [vmem:[#allocation6_spill] sm:$0xff] %v2159_v53  ;;  %v2165_v57 = vadd.f32 %v1891_v16, %v1990_v11  ;;  %v620_v38 = vsel %vm530_vm4, %v2159_v53, 0.0  ;;  %3266 = vst [vmem:[#allocation9_spill] sm:$0xff] %v2175_v55 }
 0x152   :  { %v611_v1 = vadd.f32 %v610_v25, %v609_v61  ;;  %3264 = vst [vmem:[#allocation7_spill] sm:$0xff] %v2165_v57  ;;  %v2171_v61 = vadd.f32 %v1891_v16, %v2002_v40 }
 0x154   :  { %v613_v5 = vadd.f32 %v612_v36, %v611_v1  ;;  %3265 = vst [vmem:[#allocation8_spill] sm:$0xff] %v2171_v61  ;;  %v622_v1 = vsel %vm530_vm4, %v2165_v57, 0.0  ;;  %v624_v11 = vsel %vm530_vm4, %v2171_v61, 0.0 }
 0x156   :  { %v615_v9 = vadd.f32 %v614_v50, %v613_v5  ;;  %v626_v5 = vsel %vm530_vm4, %v2175_v55, 0.0 }
 0x158   :  { %v617_v13 = vadd.f32 %v616_v2, %v615_v9 }
 0x15a   :  { %v619_v18 = vadd.f32 %v618_v20, %v617_v13 }
 0x15c   :  { %v621_v25 = vadd.f32 %v620_v38, %v619_v18 }
 0x15e   :  { %v623_v36 = vadd.f32 %v622_v1, %v621_v25 }
 0x160   :  { %v625_v50 = vadd.f32 %v624_v11, %v623_v36 }
 0x162   :  { %v627_v9 = vadd.f32 %v626_v5, %v625_v50 }
 0x164   :  { %v628_v2 = vrot.slane %v627_v9, 4 }
 0x166   :  { %v629_v40 = vadd.f32 %v628_v2, %v627_v9 }
 0x168   :  { %v630_v13 = vrot.slane %v629_v40, 2 }
 0x16a   :  { %v631_v20 = vadd.f32 %v630_v13, %v629_v40 }
 0x16c   :  { %v632_v53 = vrot.slane %v631_v20, 1 }
 0x16e   :  { %v633_v16 = vadd.f32 %v632_v53, %v631_v20 }
 0x170   :  { %v2183_v56 = vmul.f32 0.0025510204, %v633_v16 }
 0x172   :  { %v636_v18 = vsub.f32 %v1899_v22, %v2183_v56  ;;  %v637_v38 = vsub.f32 %v1896_v19, %v2183_v56  ;;  %v638_v25 = vsub.f32 %v1902_v23, %v2183_v56  ;;  %v639_v1 = vsub.f32 %v1909_v27, %v2183_v56 }
 0x173   :  { %v640_v5 = vsub.f32 %v1916_v32, %v2183_v56  ;;  %v641_v50 = vsub.f32 %v1923_v39, %v2183_v56  ;;  %v642_v20 = vsub.f32 %v1928_v46, %v2183_v56  ;;  %v643_v32 = vsub.f32 %v1935_v54, %v2183_v56 }
 0x174   :  { %v685_v36 = vmul.f32 %v636_v18, %v636_v18  ;;  %v686_v11 = vmul.f32 %v637_v38, %v637_v38  ;;  %v687_v53 = vmul.f32 %v638_v25, %v638_v25  ;;  %v688_v9 = vmul.f32 %v639_v1, %v639_v1 }
 0x175   :  { %v689_v16 = vmul.f32 %v640_v5, %v640_v5  ;;  %v690_v25 = vmul.f32 %v641_v50, %v641_v50  ;;  %v644_v1 = vsub.f32 %v1940_v62, %v2183_v56  ;;  %v645_v5 = vsub.f32 %v1947_v6, %v2183_v56 }
 0x176   :  { %v734_v2 = vsel %vm530_vm4, %v685_v36, 0.0  ;;  %v735_v40 = vsel %vm530_vm4, %v686_v11, 0.0  ;;  %v737_v18 = vsel %vm530_vm4, %v687_v53, 0.0  ;;  %v739_v27 = vsel %vm530_vm4, %v688_v9, 0.0 }
 0x177   :  { %v736_v13 = vadd.f32 %v735_v40, %v734_v2  ;;  %v691_v36 = vmul.f32 %v642_v20, %v642_v20  ;;  %v741_v11 = vsel %vm530_vm4, %v689_v16, 0.0  ;;  %v692_v40 = vmul.f32 %v643_v32, %v643_v32 }
 0x178   :  { %v743_v53 = vsel %vm530_vm4, %v690_v25, 0.0  ;;  %v646_v50 = vsub.f32 %v1952_v14, %v2183_v56  ;;  %v647_v20 = vsub.f32 %v1959_v26, %v2183_v56  ;;  %v648_v32 = vsub.f32 %v1964_v31, %v2183_v56 }
 0x179   :  { %v738_v38 = vadd.f32 %v737_v18, %v736_v13  ;;  %v693_v18 = vmul.f32 %v644_v1, %v644_v1  ;;  %v649_v1 = vsub.f32 %v1971_v42, %v2183_v56 }
 0x17b   :  { %v740_v39 = vadd.f32 %v739_v27, %v738_v38  ;;  %v745_v27 = vsel %vm530_vm4, %v691_v36, 0.0  ;;  %v694_v38 = vmul.f32 %v645_v5, %v645_v5  ;;  %v749_v25 = vsel %vm530_vm4, %v693_v18, 0.0 }
 0x17c   :  { %v650_v5 = vsub.f32 %v1976_v51, %v2183_v56 }
 0x17d   :  { %v742_v2 = vadd.f32 %v741_v11, %v740_v39  ;;  %v747_v39 = vsel %vm530_vm4, %v692_v40, 0.0  ;;  %v695_v11 = vmul.f32 %v646_v50, %v646_v50  ;;  %v751_v36 = vsel %vm530_vm4, %v694_v38, 0.0 }
 0x17e   :  { %v651_v50 = vsub.f32 %v1983_v59, %v2183_v56 }
 0x17f   :  { %v744_v13 = vadd.f32 %v743_v53, %v742_v2  ;;  %v696_v53 = vmul.f32 %v647_v20, %v647_v20  ;;  %v753_v40 = vsel %vm530_vm4, %v695_v11, 0.0  ;;  %v652_v20 = vsub.f32 %v1988_v7, %v2183_v56 }
 0x181   :  { %v746_v9 = vadd.f32 %v745_v27, %v744_v13  ;;  %v697_v27 = vmul.f32 %v648_v32, %v648_v32  ;;  %v755_v18 = vsel %vm530_vm4, %v696_v53, 0.0  ;;  %v653_v32 = vsub.f32 %v1995_v21, %v2183_v56 }
 0x183   :  { %v748_v16 = vadd.f32 %v747_v39, %v746_v9  ;;  %v698_v39 = vmul.f32 %v649_v1, %v649_v1  ;;  %v757_v38 = vsel %vm530_vm4, %v697_v27, 0.0  ;;  %v654_v1 = vsub.f32 %v2000_v30, %v2183_v56 }
 0x185   :  { %v750_v2 = vadd.f32 %v749_v25, %v748_v16  ;;  %v699_v25 = vmul.f32 %v650_v5, %v650_v5  ;;  %v759_v11 = vsel %vm530_vm4, %v698_v39, 0.0  ;;  %v655_v5 = vsub.f32 %v2007_v43, %v2183_v56 }
 0x187   :  { %v752_v13 = vadd.f32 %v751_v36, %v750_v2  ;;  %v700_v36 = vmul.f32 %v651_v50, %v651_v50  ;;  %v761_v53 = vsel %vm530_vm4, %v699_v25, 0.0  ;;  %v656_v50 = vsub.f32 %v2012_v58, %v2183_v56 }
 0x189   :  { %v754_v9 = vadd.f32 %v753_v40, %v752_v13  ;;  %v701_v40 = vmul.f32 %v652_v20, %v652_v20  ;;  %v763_v27 = vsel %vm530_vm4, %v700_v36, 0.0  ;;  %v657_v20 = vsub.f32 %v2019_v60, %v2183_v56 }
 0x18b   :  { %v756_v16 = vadd.f32 %v755_v18, %v754_v9  ;;  %v702_v18 = vmul.f32 %v653_v32, %v653_v32  ;;  %v765_v39 = vsel %vm530_vm4, %v701_v40, 0.0  ;;  %v658_v32 = vsub.f32 %v2024_v4, %v2183_v56 }
 0x18d   :  { %v758_v2 = vadd.f32 %v757_v38, %v756_v16  ;;  %v703_v38 = vmul.f32 %v654_v1, %v654_v1  ;;  %v767_v25 = vsel %vm530_vm4, %v702_v18, 0.0  ;;  %v659_v1 = vsub.f32 %v2029_v12, %v2183_v56 }
 0x18f   :  { %v760_v13 = vadd.f32 %v759_v11, %v758_v2  ;;  %v704_v11 = vmul.f32 %v655_v5, %v655_v5  ;;  %v769_v36 = vsel %vm530_vm4, %v703_v38, 0.0  ;;  %v660_v5 = vsub.f32 %v2036_v3, %v2183_v56 }
 0x191   :  { %v762_v9 = vadd.f32 %v761_v53, %v760_v13  ;;  %v705_v53 = vmul.f32 %v656_v50, %v656_v50  ;;  %v771_v40 = vsel %vm530_vm4, %v704_v11, 0.0  ;;  %v661_v50 = vsub.f32 %v2045_v29, %v2183_v56 }
 0x193   :  { %v764_v16 = vadd.f32 %v763_v27, %v762_v9  ;;  %v706_v27 = vmul.f32 %v657_v20, %v657_v20  ;;  %v773_v18 = vsel %vm530_vm4, %v705_v53, 0.0  ;;  %v662_v20 = vsub.f32 %v2042_v10, %v2183_v56 }
 0x195   :  { %v766_v2 = vadd.f32 %v765_v39, %v764_v16  ;;  %v707_v39 = vmul.f32 %v658_v32, %v658_v32  ;;  %v775_v38 = vsel %vm530_vm4, %v706_v27, 0.0  ;;  %v663_v32 = vsub.f32 %v2049_v15, %v2183_v56 }
 0x197   :  { %v768_v13 = vadd.f32 %v767_v25, %v766_v2  ;;  %v708_v25 = vmul.f32 %v659_v1, %v659_v1  ;;  %v777_v11 = vsel %vm530_vm4, %v707_v39, 0.0  ;;  %v664_v1 = vsub.f32 %v2057_v33, %v2183_v56 }
 0x199   :  { %v770_v9 = vadd.f32 %v769_v36, %v768_v13  ;;  %v709_v36 = vmul.f32 %v660_v5, %v660_v5  ;;  %v779_v53 = vsel %vm530_vm4, %v708_v25, 0.0  ;;  %v665_v5 = vsub.f32 %v2063_v52, %v2183_v56 }
 0x19b   :  { %v772_v16 = vadd.f32 %v771_v40, %v770_v9  ;;  %v710_v40 = vmul.f32 %v661_v50, %v661_v50  ;;  %v781_v27 = vsel %vm530_vm4, %v709_v36, 0.0  ;;  %v666_v50 = vsub.f32 %v2069_v0, %v2183_v56 }
 0x19d   :  { %v774_v2 = vadd.f32 %v773_v18, %v772_v16  ;;  %v711_v18 = vmul.f32 %v662_v20, %v662_v20  ;;  %v783_v39 = vsel %vm530_vm4, %v710_v40, 0.0  ;;  %v667_v20 = vsub.f32 %v2075_v48, %v2183_v56 }
 0x19f   :  { %v776_v13 = vadd.f32 %v775_v38, %v774_v2  ;;  %v712_v38 = vmul.f32 %v663_v32, %v663_v32  ;;  %v785_v25 = vsel %vm530_vm4, %v711_v18, 0.0  ;;  %v668_v32 = vsub.f32 %v2081_v8, %v2183_v56 }
 0x1a1   :  { %v778_v9 = vadd.f32 %v777_v11, %v776_v13  ;;  %v713_v11 = vmul.f32 %v664_v1, %v664_v1  ;;  %v787_v36 = vsel %vm530_vm4, %v712_v38, 0.0  ;;  %v669_v1 = vsub.f32 %v2087_v47, %v2183_v56 }
 0x1a3   :  { %v780_v16 = vadd.f32 %v779_v53, %v778_v9  ;;  %v714_v53 = vmul.f32 %v665_v5, %v665_v5  ;;  %v789_v40 = vsel %vm530_vm4, %v713_v11, 0.0  ;;  %v670_v5 = vsub.f32 %v2093_v34, %v2183_v56 }
 0x1a5   :  { %v782_v2 = vadd.f32 %v781_v27, %v780_v16  ;;  %v715_v27 = vmul.f32 %v666_v50, %v666_v50  ;;  %v791_v18 = vsel %vm530_vm4, %v714_v53, 0.0  ;;  %v671_v50 = vsub.f32 %v2099_v37, %v2183_v56 }
 0x1a7   :  { %v784_v13 = vadd.f32 %v783_v39, %v782_v2  ;;  %v716_v39 = vmul.f32 %v667_v20, %v667_v20  ;;  %v793_v38 = vsel %vm530_vm4, %v715_v27, 0.0  ;;  %v672_v20 = vsub.f32 %v2105_v28, %v2183_v56 }
 0x1a9   :  { %v786_v9 = vadd.f32 %v785_v25, %v784_v13  ;;  %v717_v25 = vmul.f32 %v668_v32, %v668_v32  ;;  %v795_v11 = vsel %vm530_vm4, %v716_v39, 0.0  ;;  %v673_v32 = vsub.f32 %v2111_v63, %v2183_v56 }
 0x1ab   :  { %v788_v16 = vadd.f32 %v787_v36, %v786_v9  ;;  %v718_v36 = vmul.f32 %v669_v1, %v669_v1  ;;  %v797_v53 = vsel %vm530_vm4, %v717_v25, 0.0  ;;  %v674_v1 = vsub.f32 %v2117_v44, %v2183_v56 }
 0x1ad   :  { %v790_v2 = vadd.f32 %v789_v40, %v788_v16  ;;  %v719_v40 = vmul.f32 %v670_v5, %v670_v5  ;;  %v799_v27 = vsel %vm530_vm4, %v718_v36, 0.0  ;;  %v675_v5 = vsub.f32 %v2123_v17, %v2183_v56 }
 0x1af   :  { %v792_v13 = vadd.f32 %v791_v18, %v790_v2  ;;  %v720_v18 = vmul.f32 %v671_v50, %v671_v50  ;;  %v801_v39 = vsel %vm530_vm4, %v719_v40, 0.0  ;;  %v676_v50 = vsub.f32 %v2129_v24, %v2183_v56 }
 0x1b1   :  { %v794_v9 = vadd.f32 %v793_v38, %v792_v13  ;;  %v721_v38 = vmul.f32 %v672_v20, %v672_v20  ;;  %v803_v25 = vsel %vm530_vm4, %v720_v18, 0.0  ;;  %v677_v20 = vsub.f32 %v2135_v35, %v2183_v56 }
 0x1b3   :  { %v796_v16 = vadd.f32 %v795_v11, %v794_v9  ;;  %v722_v11 = vmul.f32 %v673_v32, %v673_v32  ;;  %v805_v36 = vsel %vm530_vm4, %v721_v38, 0.0  ;;  %v678_v32 = vsub.f32 %v2141_v41, %v2183_v56 }
 0x1b5   :  { %v798_v2 = vadd.f32 %v797_v53, %v796_v16  ;;  %v723_v53 = vmul.f32 %v674_v1, %v674_v1  ;;  %v807_v40 = vsel %vm530_vm4, %v722_v11, 0.0  ;;  %v679_v1 = vsub.f32 %v2147_v45, %v2183_v56 }
 0x1b7   :  { %v800_v13 = vadd.f32 %v799_v27, %v798_v2  ;;  %v724_v27 = vmul.f32 %v675_v5, %v675_v5  ;;  %v809_v18 = vsel %vm530_vm4, %v723_v53, 0.0  ;;  %v680_v5 = vsub.f32 %v2153_v49, %v2183_v56 }
 0x1b8   :  { %v728_v41 = vmul.f32 %v679_v1, %v679_v1  ;;  %v684_v1 = vsub.f32 %v2175_v55, %v2183_v56 }
 0x1b9   :  { %v802_v9 = vadd.f32 %v801_v39, %v800_v13  ;;  %v725_v39 = vmul.f32 %v676_v50, %v676_v50  ;;  %v811_v38 = vsel %vm530_vm4, %v724_v27, 0.0 }
 0x1bb   :  { %v804_v16 = vadd.f32 %v803_v25, %v802_v9  ;;  %v726_v25 = vmul.f32 %v677_v20, %v677_v20  ;;  %v813_v11 = vsel %vm530_vm4, %v725_v39, 0.0  ;;  %v682_v20 = vsub.f32 %v2165_v57, %v2183_v56 }
 0x1bc   :  { %v819_v39 = vsel %vm530_vm4, %v728_v41, 0.0 }
 0x1bd   :  { %v806_v2 = vadd.f32 %v805_v36, %v804_v16  ;;  %v727_v36 = vmul.f32 %v678_v32, %v678_v32  ;;  %v815_v53 = vsel %vm530_vm4, %v726_v25, 0.0  ;;  %v683_v32 = vsub.f32 %v2171_v61, %v2183_v56 }
 0x1bf   :  { %v808_v13 = vadd.f32 %v807_v40, %v806_v2  ;;  %v3267_v40 = vld [vmem:[#allocation6_spill] sm:$0xff]  ;;  %v817_v27 = vsel %vm530_vm4, %v727_v36, 0.0  ;;  %v733_v36 = vmul.f32 %v684_v1, %v684_v1 }
 0x1c0   :  { %v681_v50 = vsub.f32 %v3267_v40, %v2183_v56 }
 0x1c1   :  { %v810_v9 = vadd.f32 %v809_v18, %v808_v13  ;;  %v729_v18 = vmul.f32 %v680_v5, %v680_v5  ;;  %v829_v41 = vsel %vm530_vm4, %v733_v36, 0.0 }
 0x1c3   :  { %v812_v16 = vadd.f32 %v811_v38, %v810_v9  ;;  %v730_v38 = vmul.f32 %v681_v50, %v681_v50  ;;  %v821_v25 = vsel %vm530_vm4, %v729_v18, 0.0 }
 0x1c5   :  { %v814_v2 = vadd.f32 %v813_v11, %v812_v16  ;;  %v731_v11 = vmul.f32 %v682_v20, %v682_v20  ;;  %v823_v5 = vsel %vm530_vm4, %v730_v38, 0.0  ;;  %v846_v38 = vlaneseq }
 0x1c7   :  { %v816_v13 = vadd.f32 %v815_v53, %v814_v2  ;;  %v732_v53 = vmul.f32 %v683_v32, %v683_v32  ;;  %v847_v1 = vshrl.u32 %v846_v38, 7 }
 0x1c9   :  { %v818_v9 = vadd.f32 %v817_v27, %v816_v13  ;;  %v825_v13 = vsel %vm530_vm4, %v731_v11, 0.0  ;;  %v827_v50 = vsel %vm530_vm4, %v732_v53, 0.0  ;;  %v848_v53 = vsub.s32 0, %v847_v1 }
 0x1cb   :  { %v820_v16 = vadd.f32 %v819_v39, %v818_v9 }
 0x1cd   :  { %v822_v2 = vadd.f32 %v821_v25, %v820_v16 }
 0x1cf   :  { %v824_v57 = vadd.f32 %v823_v5, %v822_v2 }
 0x1d1   :  { %v826_v27 = vadd.f32 %v825_v13, %v824_v57  ;;  %v838_v57 = vld [vmem:[%s3225_s3] sm:$0x1] }
 0x1d3   :  { %v828_v61 = vadd.f32 %v827_v50, %v826_v27  ;;  %v3268_v50 = vld [vmem:[#allocation2_spill] sm:$0xff] }
 0x1d5   :  { %v830_v9 = vadd.f32 %v829_v41, %v828_v61 }
 0x1d7   :  { %v831_v39 = vrot.slane %v830_v9, 4 }
 0x1d9   :  { %v832_v55 = vadd.f32 %v831_v39, %v830_v9  ;;  %v3269_v9 = vld [vmem:[#allocation3_spill] sm:$0xff] }
 0x1db   :  { %v833_v20 = vrot.slane %v832_v55, 2 }
 0x1dd   :  { %v834_v40 = vadd.f32 %v833_v20, %v832_v55  ;;  %v842_v55 = vld [vmem:[%s3226_s4] sm:$0x1]  ;;  %v3270_v20 = vld [vmem:[#allocation4_spill] sm:$0xff] }
 0x1df   :  { %v835_v18 = vrot.slane %v834_v40, 1 }
 0x1e1   :  { %v836_v16 = vadd.f32 %v835_v18, %v834_v40 }
 0x1e3   :  { %v837_v32 = vmul.f32 0.0025510204, %v836_v16 }
 0x1e5   :  { %v839_v25 = vadd.f32 1e-05, %v837_v32 }
 0x1e7   :  { %1669 = vrsqrt.f32 %v839_v25 }
 0x1f4   :  { %v1670_v2 = vpop.eup %1669 }
 0x1f5   :  { %v841_v11 = vmul.f32 %v1670_v2, %v838_v57 }
 0x1f7   :  { %v843_v61 = vmul.f32 %v841_v11, %v2183_v56  ;;  %v849_v5 = vrot.slane %v841_v11, %v848_v53  ;;  %v3272_v11 = vld [vmem:[#allocation6_spill] sm:$0xff] }
 0x1f9   :  { %v844_v40 = vsub.f32 %v842_v55, %v843_v61  ;;  %v851_v36 = vmul.f32 %v849_v5, %v1899_v22  ;;  %v852_v13 = vmul.f32 %v849_v5, %v1896_v19  ;;  %v853_v27 = vmul.f32 %v849_v5, %v1902_v23  ;;  %v3274_v55 = vld [vmem:[#allocation8_spill] sm:$0xff] }
 0x1fa   :  { %v854_v41 = vmul.f32 %v849_v5, %v3268_v50  ;;  %v855_v39 = vmul.f32 %v849_v5, %v3269_v9  ;;  %v856_v18 = vmul.f32 %v849_v5, %v3270_v20  ;;  %v857_v56 = vmul.f32 %v849_v5, %v1928_v46 }
 0x1fb   :  { %v858_v16 = vmul.f32 %v849_v5, %v1935_v54  ;;  %v859_v32 = vmul.f32 %v849_v5, %v1940_v62  ;;  %v860_v25 = vmul.f32 %v849_v5, %v1947_v6  ;;  %v861_v22 = vmul.f32 %v849_v5, %v1952_v14 }
 0x1fc   :  { %v862_v19 = vmul.f32 %v849_v5, %v1959_v26  ;;  %v863_v23 = vmul.f32 %v849_v5, %v1964_v31  ;;  %v864_v38 = vmul.f32 %v849_v5, %v1971_v42  ;;  %v865_v1 = vmul.f32 %v849_v5, %v1976_v51 }
 0x1fd   :  { %v866_v2 = vmul.f32 %v849_v5, %v1983_v59  ;;  %v867_v46 = vmul.f32 %v849_v5, %v1988_v7  ;;  %v868_v54 = vmul.f32 %v849_v5, %v1995_v21  ;;  %v869_v62 = vmul.f32 %v849_v5, %v2000_v30 }
 0x1fe   :  { %v870_v6 = vmul.f32 %v849_v5, %v2007_v43  ;;  %v871_v14 = vmul.f32 %v849_v5, %v2012_v58  ;;  %v872_v26 = vmul.f32 %v849_v5, %v2019_v60  ;;  %v873_v31 = vmul.f32 %v849_v5, %v2024_v4 }
 0x1ff   :  { %v874_v42 = vmul.f32 %v849_v5, %v2029_v12  ;;  %v875_v51 = vmul.f32 %v849_v5, %v2036_v3  ;;  %v876_v59 = vmul.f32 %v849_v5, %v2045_v29  ;;  %v877_v7 = vmul.f32 %v849_v5, %v2042_v10 }
 0x200   :  { %v878_v21 = vmul.f32 %v849_v5, %v2049_v15  ;;  %v879_v30 = vmul.f32 %v849_v5, %v2057_v33  ;;  %v880_v43 = vmul.f32 %v849_v5, %v2063_v52  ;;  %v881_v58 = vmul.f32 %v849_v5, %v2069_v0 }
 0x201   :  { %v882_v60 = vmul.f32 %v849_v5, %v2075_v48  ;;  %v883_v4 = vmul.f32 %v849_v5, %v2081_v8  ;;  %v884_v12 = vmul.f32 %v849_v5, %v2087_v47  ;;  %v885_v3 = vmul.f32 %v849_v5, %v2093_v34  ;;  %v3271_v8 = vld [vmem:[#allocation5_spill] sm:$0xff] }
 0x202   :  { %v886_v29 = vmul.f32 %v849_v5, %v2099_v37  ;;  %v887_v10 = vmul.f32 %v849_v5, %v2105_v28  ;;  %v2376_v57 = vrot.slane %v844_v40, %v848_v53  ;;  %v888_v15 = vmul.f32 %v849_v5, %v2111_v63  ;;  %v3273_v53 = vld [vmem:[#allocation7_spill] sm:$0xff]  ;;  %v3275_v40 = vld [vmem:[#allocation9_spill] sm:$0xff] }
 0x203   :  { %v889_v33 = vmul.f32 %v849_v5, %v2117_v44  ;;  %v890_v52 = vmul.f32 %v849_v5, %v2123_v17  ;;  %v891_v0 = vmul.f32 %v849_v5, %v2129_v24  ;;  %v892_v48 = vmul.f32 %v849_v5, %v2135_v35 }
 0x204   :  { %v893_v47 = vmul.f32 %v849_v5, %v3271_v8  ;;  %v894_v34 = vmul.f32 %v849_v5, %v2147_v45  ;;  %v895_v37 = vmul.f32 %v849_v5, %v2153_v49  ;;  %v896_v28 = vmul.f32 %v849_v5, %v3272_v11 }
 0x205   :  { %v897_v61 = vmul.f32 %v849_v5, %v3273_v53  ;;  %v898_v63 = vmul.f32 %v849_v5, %v3274_v55  ;;  %v899_v44 = vmul.f32 %v849_v5, %v3275_v40  ;;  %v2391_v17 = vadd.f32 %v2376_v57, %v851_v36 }
 0x206   :  { %v2394_v24 = vadd.f32 %v2376_v57, %v852_v13  ;;  %v2397_v35 = vadd.f32 %v2376_v57, %v853_v27  ;;  %v2400_v45 = vadd.f32 %v2376_v57, %v854_v41  ;;  %v2403_v49 = vadd.f32 %v2376_v57, %v855_v39 }
 0x207   :  { %v2406_v50 = vadd.f32 %v2376_v57, %v856_v18  ;;  %v2409_v5 = vadd.f32 %v2376_v57, %v857_v56  ;;  %v2412_v36 = vadd.f32 %v2376_v57, %v858_v16  ;;  %v2415_v13 = vadd.f32 %v2376_v57, %v859_v32 }
 0x208   :  { %v2418_v27 = vadd.f32 %v2376_v57, %v860_v25  ;;  %v2421_v41 = vadd.f32 %v2376_v57, %v861_v22  ;;  %v2424_v9 = vadd.f32 %v2376_v57, %v862_v19  ;;  %v2427_v39 = vadd.f32 %v2376_v57, %v863_v23 }
 0x209   :  { %v2430_v20 = vadd.f32 %v2376_v57, %v864_v38  ;;  %v2433_v18 = vadd.f32 %v2376_v57, %v865_v1  ;;  %v2436_v56 = vadd.f32 %v2376_v57, %v866_v2  ;;  %v2439_v16 = vadd.f32 %v2376_v57, %v867_v46 }
 0x20a   :  { %v2442_v32 = vadd.f32 %v2376_v57, %v868_v54  ;;  %v2445_v25 = vadd.f32 %v2376_v57, %v869_v62  ;;  %v2448_v22 = vadd.f32 %v2376_v57, %v870_v6  ;;  %v2451_v19 = vadd.f32 %v2376_v57, %v871_v14 }
 0x20b   :  { %v2454_v23 = vadd.f32 %v2376_v57, %v872_v26  ;;  %v2457_v38 = vadd.f32 %v2376_v57, %v873_v31  ;;  %v2460_v1 = vadd.f32 %v2376_v57, %v874_v42  ;;  %v2463_v2 = vadd.f32 %v2376_v57, %v875_v51 }
 0x20c   :  { %3276 = vst [vmem:[#allocation2_spill] sm:$0xff] %v2448_v22  ;;  %v2466_v46 = vadd.f32 %v2376_v57, %v876_v59  ;;  %v2469_v54 = vadd.f32 %v2376_v57, %v877_v7  ;;  %v2472_v62 = vadd.f32 %v2376_v57, %v878_v21  ;;  %v2475_v6 = vadd.f32 %v2376_v57, %v879_v30 }
 0x20d   :  { %3277 = vst [vmem:[#allocation3_spill] sm:$0xff] %v2457_v38  ;;  %v2478_v14 = vadd.f32 %v2376_v57, %v880_v43  ;;  %v2481_v26 = vadd.f32 %v2376_v57, %v881_v58  ;;  %v2484_v31 = vadd.f32 %v2376_v57, %v882_v60  ;;  %v2487_v42 = vadd.f32 %v2376_v57, %v883_v4 }
 0x20e   :  { %3278 = vst [vmem:[#allocation4_spill] sm:$0xff] %v2466_v46  ;;  %3279 = vst [vmem:[#allocation5_spill] sm:$0xff] %v2475_v6  ;;  %v2490_v51 = vadd.f32 %v2376_v57, %v884_v12  ;;  %v2493_v59 = vadd.f32 %v2376_v57, %v885_v3  ;;  %v2496_v7 = vadd.f32 %v2376_v57, %v886_v29  ;;  %vm955_vm5 = vcmp.gt.f32.partialorder %v2391_v17, 0.0 }
 0x20f   :  { %3280 = vst [vmem:[#allocation6_spill] sm:$0xff] %v2484_v31  ;;  %v2499_v21 = vadd.f32 %v2376_v57, %v887_v10  ;;  %v2502_v30 = vadd.f32 %v2376_v57, %v888_v15  ;;  %v2505_v43 = vadd.f32 %v2376_v57, %v889_v33  ;;  %v2508_v58 = vadd.f32 %v2376_v57, %v890_v52 }
 0x210   :  { %v2511_v60 = vadd.f32 %v2376_v57, %v891_v0  ;;  %v2514_v4 = vadd.f32 %v2376_v57, %v892_v48  ;;  %v2517_v12 = vadd.f32 %v2376_v57, %v893_v47  ;;  %v2520_v3 = vadd.f32 %v2376_v57, %v894_v34 }
 0x211   :  { %3281 = vst [vmem:[#allocation7_spill] sm:$0xff] %v2499_v21  ;;  %3282 = vst [vmem:[#allocation8_spill] sm:$0xff] %v2502_v30  ;;  %v2523_v29 = vadd.f32 %v2376_v57, %v895_v37  ;;  %v2526_v10 = vadd.f32 %v2376_v57, %v896_v28  ;;  %v2529_v15 = vadd.f32 %v2376_v57, %v897_v61  ;;  %vm956_vm6 = vcmp.gt.f32.partialorder %v2394_v24, 0.0 }
 0x212   :  { %3283 = vst [vmem:[#allocation9_spill] sm:$0xff] %v2505_v43  ;;  %3284 = vst [vmem:[#allocation10_spill] sm:$0xff] %v2508_v58  ;;  %v2532_v33 = vadd.f32 %v2376_v57, %v898_v63  ;;  %vm957_vm7 = vcmp.gt.f32.partialorder %v2397_v35, 0.0  ;;  %vm958_vm8 = vcmp.gt.f32.partialorder %v2400_v45, 0.0  ;;  %vm959_vm9 = vcmp.gt.f32.partialorder %v2403_v49, 0.0 }
 0x213   :  { %3285 = vst [vmem:[#allocation11_spill] sm:$0xff] %v2511_v60  ;;  %3286 = vst [vmem:[#allocation12_spill] sm:$0xff] %v2520_v3  ;;  %vm960_vm10 = vcmp.gt.f32.partialorder %v2406_v50, 0.0  ;;  %vm961_vm11 = vcmp.gt.f32.partialorder %v2409_v5, 0.0  ;;  %vm962_vm12 = vcmp.gt.f32.partialorder %v2412_v36, 0.0  ;;  %vm963_vm13 = vcmp.gt.f32.partialorder %v2415_v13, 0.0 }
 0x214   :  { %vm964_vm14 = vcmp.gt.f32.partialorder %v2418_v27, 0.0  ;;  %v1004_v52 = vmul.f32 0.2, %v2391_v17  ;;  %v1005_v0 = vmul.f32 0.2, %v2394_v24  ;;  %v2547_v48 = vadd.f32 %v2376_v57, %v899_v44 }
 0x215   :  { %vm965_vm15 = vcmp.gt.f32.partialorder %v2421_v41, 0.0  ;;  %v1006_v8 = vmul.f32 0.2, %v2397_v35  ;;  %v1007_v47 = vmul.f32 0.2, %v2400_v45  ;;  %vm966_vm0 = vcmp.gt.f32.partialorder %v2424_v9, 0.0 }
 0x216   :  { %v1008_v34 = vmul.f32 0.2, %v2403_v49  ;;  %v1009_v37 = vmul.f32 0.2, %v2406_v50  ;;  %v1010_v11 = vmul.f32 0.2, %v2409_v5  ;;  %v2560_v57 = vsel %vm955_vm5, %v2391_v17, %v1004_v52 }
 0x217   :  { %v1011_v28 = vmul.f32 0.2, %v2412_v36  ;;  %3287 = vst [vmem:[#allocation13_spill] sm:$0xff] %v2560_v57  ;;  %vm967_vm1 = vcmp.gt.f32.partialorder %v2427_v39, 0.0  ;;  %v1012_v53 = vmul.f32 0.2, %v2415_v13  ;;  %v2571_v63 = vsel %vm956_vm6, %v2394_v24, %v1005_v0 }
 0x218   :  { %v1013_v61 = vmul.f32 0.2, %v2418_v27  ;;  %v2566_v55 = vmul.f32 0.2, %v2421_v41  ;;  %3288 = vst [vmem:[#allocation14_spill] sm:$0xff] %v2571_v63  ;;  %vm968_vm2 = vcmp.gt.f32.partialorder %v2430_v20, 0.0  ;;  %v2586_v52 = vsel %vm957_vm7, %v2397_v35, %v1006_v8 }
 0x219   :  { %v2575_v40 = vmul.f32 0.2, %v2424_v9  ;;  %v2578_v44 = vmul.f32 0.2, %v2427_v39  ;;  %v2581_v17 = vmul.f32 0.2, %v2430_v20  ;;  %v2602_v57 = vsel %vm958_vm8, %v2400_v45, %v1007_v47 }
 0x21a   :  { %3289 = vst [vmem:[#allocation15_spill] sm:$0xff] %v2586_v52  ;;  %vm969_vm3 = vcmp.gt.f32.partialorder %v2433_v18, 0.0  ;;  %v2591_v24 = vmul.f32 0.2, %v2433_v18  ;;  %v2594_v0 = vmul.f32 0.2, %v2436_v56  ;;  %v2620_v45 = vsel %vm959_vm9, %v2403_v49, %v1008_v34 }
 0x21b   :  { %v2597_v63 = vmul.f32 0.2, %v2439_v16  ;;  %3290 = vst [vmem:[#allocation16_spill] sm:$0xff] %v2602_v57  ;;  %vm971_vm5 = vcmp.gt.f32.partialorder %v2439_v16, 0.0  ;;  %v2609_v35 = vmul.f32 0.2, %v2442_v32  ;;  %v2638_v49 = vsel %vm960_vm10, %v2406_v50, %v1009_v37 }
 0x21c   :  { %v2612_v8 = vmul.f32 0.2, %v2445_v25  ;;  %v2615_v52 = vmul.f32 0.2, %v2448_v22  ;;  %3291 = vst [vmem:[#allocation17_spill] sm:$0xff] %v2620_v45  ;;  %vm975_vm8 = vcmp.gt.f32.partialorder %v2451_v19, 0.0  ;;  %v2656_v50 = vsel %vm961_vm11, %v2409_v5, %v1010_v11 }
 0x21d   :  { %v2627_v47 = vmul.f32 0.2, %v2451_v19  ;;  %v2630_v57 = vmul.f32 0.2, %v2454_v23  ;;  %v2633_v22 = vmul.f32 0.2, %v2457_v38 }
 0x21e   :  { %3292 = vst [vmem:[#allocation18_spill] sm:$0xff] %v2638_v49  ;;  %vm979_vm9 = vcmp.gt.f32.partialorder %v2463_v2, 0.0  ;;  %v2645_v34 = vmul.f32 0.2, %v2460_v1  ;;  %v2648_v45 = vmul.f32 0.2, %v2463_v2 }
 0x21f   :  { %v2651_v38 = vmul.f32 0.2, %v2466_v46  ;;  %3294 = vst [vmem:[#allocation20_spill] sm:$0xff] %v2656_v50  ;;  %vm986_vm4 = vcmp.gt.f32.partialorder %v2484_v31, 0.0  ;;  %v1030_v37 = vmul.f32 0.2, %v2469_v54 }
 0x220   :  { %v1031_v49 = vmul.f32 0.2, %v2472_v62  ;;  %v1032_v46 = vmul.f32 0.2, %v2475_v6  ;;  %vm990_vm7 = vcmp.gt.f32.partialorder %v2496_v7, 0.0  ;;  %v2680_v6 = vsel %vm963_vm13, %v2415_v13, %v1012_v53 }
 0x221   :  { %3293 = vst [vmem:[#allocation19_spill] sm:$0xff] %v2651_v38  ;;  %v2668_v38 = vsel %vm962_vm12, %v2412_v36, %v1011_v28  ;;  %v1033_v5 = vmul.f32 0.2, %v2478_v14  ;;  %v1034_v11 = vmul.f32 0.2, %v2481_v26  ;;  %3296 = vst [vmem:[#allocation22_spill] sm:$0xff] %v2680_v6 }
 0x222   :  { %3295 = vst [vmem:[#allocation21_spill] sm:$0xff] %v2668_v38  ;;  %v1035_v50 = vmul.f32 0.2, %v2484_v31  ;;  %vm994_vm6 = vcmp.gt.f32.partialorder %v2508_v58, 0.0  ;;  %v1036_v36 = vmul.f32 0.2, %v2487_v42  ;;  %v2692_v31 = vsel %vm964_vm14, %v2418_v27, %v1013_v61 }
 0x223   :  { %v1037_v28 = vmul.f32 0.2, %v2490_v51  ;;  %v1038_v38 = vmul.f32 0.2, %v2493_v59  ;;  %3297 = vst [vmem:[#allocation23_spill] sm:$0xff] %v2692_v31  ;;  %vm995_vm13 = vcmp.gt.f32.partialorder %v2511_v60, 0.0  ;;  %v2705_v27 = vsel %vm965_vm15, %v2421_v41, %v2566_v55 }
 0x224   :  { %v1039_v13 = vmul.f32 0.2, %v2496_v7  ;;  %v1040_v53 = vmul.f32 0.2, %v2499_v21  ;;  %v1041_v6 = vmul.f32 0.2, %v2502_v30  ;;  %v2718_v41 = vsel %vm966_vm0, %v2424_v9, %v2575_v40 }
 0x225   :  { %3298 = vst [vmem:[#allocation24_spill] sm:$0xff] %v2705_v27  ;;  %vm999_vm14 = vcmp.gt.f32.partialorder %v2523_v29, 0.0  ;;  %vm1000_vm12 = vcmp.gt.f32.partialorder %v2526_v10, 0.0  ;;  %vm1001_vm11 = vcmp.gt.f32.partialorder %v2529_v15, 0.0  ;;  %vm1002_vm10 = vcmp.gt.f32.partialorder %v2532_v33, 0.0  ;;  %3299 = vst [vmem:[#allocation25_spill] sm:$0xff] %v2718_v41 }
 0x226   :  { %v1042_v61 = vmul.f32 0.2, %v2505_v43  ;;  %v1043_v31 = vmul.f32 0.2, %v2508_v58  ;;  %v1044_v30 = vmul.f32 0.2, %v2511_v60  ;;  %v2728_v58 = vsel %vm967_vm1, %v2427_v39, %v2578_v44 }
 0x227   :  { %vm1003_vm15 = vcmp.gt.f32.partialorder %v2547_v48, 0.0  ;;  %v1045_v55 = vmul.f32 0.2, %v2514_v4  ;;  %v1046_v27 = vmul.f32 0.2, %v2517_v12  ;;  %v2737_v40 = vsel %vm968_vm2, %v2430_v20, %v2581_v17 }
 0x228   :  { %v1047_v21 = vmul.f32 0.2, %v2520_v3  ;;  %v1048_v60 = vmul.f32 0.2, %v2523_v29  ;;  %v1049_v43 = vmul.f32 0.2, %v2526_v10  ;;  %v2745_v39 = vsel %vm969_vm3, %v2433_v18, %v2591_v24 }
 0x229   :  { %v1050_v9 = vmul.f32 0.2, %v2529_v15  ;;  %v1051_v41 = vmul.f32 0.2, %v2532_v33  ;;  %v1052_v3 = vmul.f32 0.2, %v2547_v48  ;;  %v2757_v20 = vsel %vm971_vm5, %v2439_v16, %v2597_v63 }
 0x22a   :  { %vm3300_vm0 = vcmp.gt.f32.partialorder %v2436_v56, 0.0  ;;  %vm1299_vm1 = vcmask 257024   ;;  %vm3301_vm2 = vcmp.gt.f32.partialorder %v2442_v32, 0.0  ;;  %vm3302_vm3 = vcmp.gt.f32.partialorder %v2445_v25, 0.0 }
 0x22b   :  { %v2751_v44 = vsel %vm3300_vm0, %v2436_v56, %v2594_v0  ;;  %v2763_v17 = vsel %vm3301_vm2, %v2442_v32, %v2609_v35  ;;  %v2769_v18 = vsel %vm3302_vm3, %v2445_v25, %v2612_v8  ;;  %v3303_v56 = vld [vmem:[#allocation2_spill] sm:$0xff]  ;;  %v2781_v16 = vsel %vm975_vm8, %v2451_v19, %v2627_v47  ;;  %v3306_v25 = vld [vmem:[#allocation3_spill] sm:$0xff]  ;;  %v3314_v35 = vld [vmem:[#allocation5_spill] sm:$0xff] }
 0x22c   :  { %vm3304_vm0 = vcmp.gt.f32.partialorder %v3303_v56, 0.0  ;;  %vm3305_vm5 = vcmp.gt.f32.partialorder %v2454_v23, 0.0  ;;  %vm3307_vm2 = vcmp.gt.f32.partialorder %v3306_v25, 0.0  ;;  %vm3308_vm3 = vcmp.gt.f32.partialorder %v2460_v1, 0.0 }
 0x22d   :  { %v2775_v24 = vsel %vm3304_vm0, %v3303_v56, %v2615_v52  ;;  %v2787_v32 = vsel %vm3305_vm5, %v2454_v23, %v2630_v57  ;;  %v2793_v63 = vsel %vm3307_vm2, %v3306_v25, %v2633_v22  ;;  %v2799_v52 = vsel %vm3308_vm3, %v2460_v1, %v2645_v34  ;;  %v3309_v23 = vld [vmem:[#allocation19_spill] sm:$0xff]  ;;  %v3310_v57 = vld [vmem:[#allocation4_spill] sm:$0xff]  ;;  %v3342_v25 = vld [vmem:[#allocation22_spill] sm:$0xff] }
 0x22e   :  { %v2805_v19 = vsel %vm979_vm9, %v2463_v2, %v2648_v45  ;;  %vm3311_vm8 = vcmp.gt.f32.partialorder %v3310_v57, 0.0  ;;  %vm3312_vm0 = vcmp.gt.f32.partialorder %v2469_v54, 0.0  ;;  %vm3313_vm5 = vcmp.gt.f32.partialorder %v2472_v62, 0.0  ;;  %v3318_v45 = vld [vmem:[#allocation6_spill] sm:$0xff]  ;;  %v3324_v34 = vld [vmem:[#allocation8_spill] sm:$0xff] }
 0x22f   :  { %v2811_v0 = vsel %vm3311_vm8, %v3310_v57, %v3309_v23  ;;  %v2816_v22 = vsel %vm3312_vm0, %v2469_v54, %v1030_v37  ;;  %v2821_v1 = vsel %vm3313_vm5, %v2472_v62, %v1031_v49  ;;  %vm3315_vm9 = vcmp.gt.f32.partialorder %v3314_v35, 0.0  ;;  %v3322_v49 = vld [vmem:[#allocation7_spill] sm:$0xff] }
 0x230   :  { %v2826_v2 = vsel %vm3315_vm9, %v3314_v35, %v1032_v46  ;;  %vm3316_vm2 = vcmp.gt.f32.partialorder %v2478_v14, 0.0  ;;  %vm3317_vm3 = vcmp.gt.f32.partialorder %v2481_v26, 0.0  ;;  %v2841_v62 = vsel %vm986_vm4, %v3318_v45, %v1035_v50  ;;  %v3326_v50 = vld [vmem:[#allocation9_spill] sm:$0xff]  ;;  %v3329_v37 = vld [vmem:[#allocation11_spill] sm:$0xff]  ;;  %v3344_v45 = vld [vmem:[#allocation24_spill] sm:$0xff] }
 0x231   :  { %v2831_v8 = vsel %vm3316_vm2, %v2478_v14, %v1033_v5  ;;  %v2836_v54 = vsel %vm3317_vm3, %v2481_v26, %v1034_v11  ;;  %vm3319_vm8 = vcmp.gt.f32.partialorder %v2487_v42, 0.0  ;;  %vm3320_vm0 = vcmp.gt.f32.partialorder %v2490_v51, 0.0  ;;  %v3343_v57 = vld [vmem:[#allocation23_spill] sm:$0xff] }
 0x232   :  { %v2846_v46 = vsel %vm3319_vm8, %v2487_v42, %v1036_v36  ;;  %v2851_v14 = vsel %vm3320_vm0, %v2490_v51, %v1037_v28  ;;  %vm3321_vm5 = vcmp.gt.f32.partialorder %v2493_v59, 0.0  ;;  %v2861_v47 = vsel %vm990_vm7, %v2496_v7, %v1039_v13  ;;  %v3332_v36 = vld [vmem:[#allocation12_spill] sm:$0xff]  ;;  %v3336_v13 = vld [vmem:[#allocation15_spill] sm:$0xff] }
 0x233   :  { %v2856_v26 = vsel %vm3321_vm5, %v2493_v59, %v1038_v38  ;;  %vm3323_vm4 = vcmp.gt.f32.partialorder %v3322_v49, 0.0  ;;  %vm3325_vm9 = vcmp.gt.f32.partialorder %v3324_v34, 0.0  ;;  %vm3327_vm2 = vcmp.gt.f32.partialorder %v3326_v50, 0.0  ;;  %v3328_v59 = vld [vmem:[#allocation10_spill] sm:$0xff] }
 0x234   :  { %v2866_v42 = vsel %vm3323_vm4, %v3322_v49, %v1040_v53  ;;  %v2871_v51 = vsel %vm3325_vm9, %v3324_v34, %v1041_v6  ;;  %v2876_v38 = vsel %vm3327_vm2, %v3326_v50, %v1042_v61  ;;  %v2881_v7 = vsel %vm994_vm6, %v3328_v59, %v1043_v31  ;;  %v3337_v53 = vld [vmem:[#allocation16_spill] sm:$0xff]  ;;  %v3338_v61 = vld [vmem:[#allocation17_spill] sm:$0xff] }
 0x235   :  { %v2886_v5 = vsel %vm995_vm13, %v3329_v37, %v1044_v30  ;;  %vm3330_vm7 = vcmp.gt.f32.partialorder %v2514_v4, 0.0  ;;  %vm3331_vm3 = vcmp.gt.f32.partialorder %v2517_v12, 0.0  ;;  %vm3333_vm8 = vcmp.gt.f32.partialorder %v3332_v36, 0.0  ;;  %v3345_v34 = vld [vmem:[#allocation25_spill] sm:$0xff] }
 0x236   :  { %v2891_v6 = vsel %vm3330_vm7, %v2514_v4, %v1045_v55  ;;  %v2896_v11 = vsel %vm3331_vm3, %v2517_v12, %v1046_v27  ;;  %v2901_v31 = vsel %vm3333_vm8, %v3332_v36, %v1047_v21  ;;  %v2906_v30 = vsel %vm999_vm14, %v2523_v29, %v1048_v60  ;;  %v3334_v29 = vld [vmem:[#allocation13_spill] sm:$0xff] }
 0x237   :  { %v2911_v4 = vsel %vm1000_vm12, %v2526_v10, %v1049_v43  ;;  %v2916_v12 = vsel %vm1001_vm11, %v2529_v15, %v1050_v9  ;;  %v2921_v21 = vsel %vm1002_vm10, %v2532_v33, %v1051_v41  ;;  %v2926_v60 = vsel %vm1003_vm15, %v2547_v48, %v1052_v3  ;;  %v3335_v43 = vld [vmem:[#allocation14_spill] sm:$0xff]  ;;  %v3340_v3 = vld [vmem:[#allocation20_spill] sm:$0xff]  ;;  %v3341_v9 = vld [vmem:[#allocation21_spill] sm:$0xff] }
 0x238   :  { %v1455_v28 = vpack.c.bf16 %v3334_v29, %v3334_v29  ;;  %v1456_v10 = vpack.c.bf16 %v3335_v43, %v3335_v43  ;;  %v1457_v15 = vpack.c.bf16 %v3336_v13, %v3336_v13  ;;  %v1458_v27 = vpack.c.bf16 %v3337_v53, %v3337_v53  ;;  %v3339_v41 = vld [vmem:[#allocation18_spill] sm:$0xff] }
 0x239   :  { %v1459_v33 = vpack.c.bf16 %v3338_v61, %v3338_v61  ;;  %v1460_v55 = vpack.c.bf16 %v3339_v41, %v3339_v41  ;;  %v1461_v48 = vpack.c.bf16 %v3340_v3, %v3340_v3  ;;  %v1462_v56 = vpack.c.bf16 %v3341_v9, %v3341_v9 }
 0x23a   :  { %v1463_v23 = vpack.c.bf16 %v3342_v25, %v3342_v25  ;;  %v1464_v35 = vpack.c.bf16 %v3343_v57, %v3343_v57  ;;  %v1465_v49 = vpack.c.bf16 %v3344_v45, %v3344_v45  ;;  %1300 = vst.msk [vmem:[%s3227_s5] sm:$0xf] %vm1299_vm1, %v1455_v28  ;;  %1301 = vst.msk [vmem:[%s3227_s5 + $0x4] sm:$0xf] %vm1299_vm1, %v1456_v10 }
 0x23b   :  { %1302 = vst.msk [vmem:[%s3227_s5 + $0x8] sm:$0xf] %vm1299_vm1, %v1457_v15  ;;  %v1466_v50 = vpack.c.bf16 %v3345_v34, %v3345_v34  ;;  %v1467_v59 = vpack.c.bf16 %v2728_v58, %v2728_v58  ;;  %v1468_v37 = vpack.c.bf16 %v2737_v40, %v2737_v40  ;;  %v1469_v36 = vpack.c.bf16 %v2745_v39, %v2745_v39 }
 0x23c   :  { %1303 = vst.msk [vmem:[%s3227_s5 + $0xc] sm:$0xf] %vm1299_vm1, %v1458_v27  ;;  %1304 = vst.msk [vmem:[%s3227_s5 + $0x10] sm:$0xf] %vm1299_vm1, %v1459_v33  ;;  %v1470_v58 = vpack.c.bf16 %v2751_v44, %v2751_v44  ;;  %v1471_v40 = vpack.c.bf16 %v2757_v20, %v2757_v20  ;;  %v1472_v39 = vpack.c.bf16 %v2763_v17, %v2763_v17 }
 0x23d   :  { %1305 = vst.msk [vmem:[%s3227_s5 + $0x14] sm:$0xf] %vm1299_vm1, %v1460_v55  ;;  %1306 = vst.msk [vmem:[%s3227_s5 + $0x18] sm:$0xf] %vm1299_vm1, %v1461_v48  ;;  %v1473_v29 = vpack.c.bf16 %v2769_v18, %v2769_v18  ;;  %v1474_v44 = vpack.c.bf16 %v2775_v24, %v2775_v24  ;;  %v1475_v20 = vpack.c.bf16 %v2781_v16, %v2781_v16 }
 0x23e   :  { %1307 = vst.msk [vmem:[%s3227_s5 + $0x1c] sm:$0xf] %vm1299_vm1, %v1462_v56  ;;  %1308 = vst.msk [vmem:[%s3227_s5 + $0x20] sm:$0xf] %vm1299_vm1, %v1463_v23  ;;  %v1476_v17 = vpack.c.bf16 %v2787_v32, %v2787_v32  ;;  %v1477_v18 = vpack.c.bf16 %v2793_v63, %v2793_v63  ;;  %v1478_v24 = vpack.c.bf16 %v2799_v52, %v2799_v52 }
 0x23f   :  { %1309 = vst.msk [vmem:[%s3227_s5 + $0x24] sm:$0xf] %vm1299_vm1, %v1464_v35  ;;  %1310 = vst.msk [vmem:[%s3227_s5 + $0x28] sm:$0xf] %vm1299_vm1, %v1465_v49  ;;  %v1479_v16 = vpack.c.bf16 %v2805_v19, %v2805_v19  ;;  %v1480_v32 = vpack.c.bf16 %v2811_v0, %v2811_v0  ;;  %v1481_v63 = vpack.c.bf16 %v2816_v22, %v2816_v22 }
 0x240   :  { %1311 = vst.msk [vmem:[%s3227_s5 + $0x2c] sm:$0xf] %vm1299_vm1, %v1466_v50  ;;  %1312 = vst.msk [vmem:[%s3227_s5 + $0x30] sm:$0xf] %vm1299_vm1, %v1467_v59  ;;  %v1482_v52 = vpack.c.bf16 %v2821_v1, %v2821_v1  ;;  %v1483_v19 = vpack.c.bf16 %v2826_v2, %v2826_v2  ;;  %v1484_v0 = vpack.c.bf16 %v2831_v8, %v2831_v8 }
 0x241   :  { %1313 = vst.msk [vmem:[%s3227_s5 + $0x34] sm:$0xf] %vm1299_vm1, %v1468_v37  ;;  %1314 = vst.msk [vmem:[%s3227_s5 + $0x38] sm:$0xf] %vm1299_vm1, %v1469_v36  ;;  %v1485_v22 = vpack.c.bf16 %v2836_v54, %v2836_v54  ;;  %v1486_v1 = vpack.c.bf16 %v2841_v62, %v2841_v62  ;;  %v1487_v2 = vpack.c.bf16 %v2846_v46, %v2846_v46 }
 0x242   :  { %1315 = vst.msk [vmem:[%s3227_s5 + $0x3c] sm:$0xf] %vm1299_vm1, %v1470_v58  ;;  %1316 = vst.msk [vmem:[%s3227_s5 + $0x40] sm:$0xf] %vm1299_vm1, %v1471_v40  ;;  %v1488_v8 = vpack.c.bf16 %v2851_v14, %v2851_v14  ;;  %v1489_v54 = vpack.c.bf16 %v2856_v26, %v2856_v26  ;;  %v1490_v62 = vpack.c.bf16 %v2861_v47, %v2861_v47 }
 0x243   :  { %1317 = vst.msk [vmem:[%s3227_s5 + $0x44] sm:$0xf] %vm1299_vm1, %v1472_v39  ;;  %1318 = vst.msk [vmem:[%s3227_s5 + $0x48] sm:$0xf] %vm1299_vm1, %v1473_v29  ;;  %v1491_v46 = vpack.c.bf16 %v2866_v42, %v2866_v42  ;;  %v1492_v14 = vpack.c.bf16 %v2871_v51, %v2871_v51  ;;  %v1493_v26 = vpack.c.bf16 %v2876_v38, %v2876_v38 }
 0x244   :  { %1319 = vst.msk [vmem:[%s3227_s5 + $0x4c] sm:$0xf] %vm1299_vm1, %v1474_v44  ;;  %1320 = vst.msk [vmem:[%s3227_s5 + $0x50] sm:$0xf] %vm1299_vm1, %v1475_v20  ;;  %v1494_v47 = vpack.c.bf16 %v2881_v7, %v2881_v7  ;;  %v1495_v42 = vpack.c.bf16 %v2886_v5, %v2886_v5  ;;  %v1496_v51 = vpack.c.bf16 %v2891_v6, %v2891_v6 }
 0x245   :  { %1321 = vst.msk [vmem:[%s3227_s5 + $0x54] sm:$0xf] %vm1299_vm1, %v1476_v17  ;;  %1322 = vst.msk [vmem:[%s3227_s5 + $0x58] sm:$0xf] %vm1299_vm1, %v1477_v18  ;;  %v1497_v38 = vpack.c.bf16 %v2896_v11, %v2896_v11  ;;  %v1498_v7 = vpack.c.bf16 %v2901_v31, %v2901_v31  ;;  %v1499_v5 = vpack.c.bf16 %v2906_v30, %v2906_v30 }
 0x246   :  { %1323 = vst.msk [vmem:[%s3227_s5 + $0x5c] sm:$0xf] %vm1299_vm1, %v1478_v24  ;;  %1324 = vst.msk [vmem:[%s3227_s5 + $0x60] sm:$0xf] %vm1299_vm1, %v1479_v16  ;;  %v1500_v6 = vpack.c.bf16 %v2911_v4, %v2911_v4  ;;  %v1501_v11 = vpack.c.bf16 %v2916_v12, %v2916_v12  ;;  %v1502_v31 = vpack.c.bf16 %v2921_v21, %v2921_v21 }
 0x247   :  { %1325 = vst.msk [vmem:[%s3227_s5 + $0x64] sm:$0xf] %vm1299_vm1, %v1480_v32  ;;  %1326 = vst.msk [vmem:[%s3227_s5 + $0x68] sm:$0xf] %vm1299_vm1, %v1481_v63  ;;  %v1503_v30 = vpack.c.bf16 %v2926_v60, %v2926_v60 }
 0x248   :  { %1327 = vst.msk [vmem:[%s3227_s5 + $0x6c] sm:$0xf] %vm1299_vm1, %v1482_v52  ;;  %1328 = vst.msk [vmem:[%s3227_s5 + $0x70] sm:$0xf] %vm1299_vm1, %v1483_v19 }
 0x249   :  { %1329 = vst.msk [vmem:[%s3227_s5 + $0x74] sm:$0xf] %vm1299_vm1, %v1484_v0  ;;  %1330 = vst.msk [vmem:[%s3227_s5 + $0x78] sm:$0xf] %vm1299_vm1, %v1485_v22 }
 0x24a   :  { %1331 = vst.msk [vmem:[%s3227_s5 + $0x7c] sm:$0xf] %vm1299_vm1, %v1486_v1  ;;  %1332 = vst.msk [vmem:[%s3227_s5 + $0x80] sm:$0xf] %vm1299_vm1, %v1487_v2 }
 0x24b   :  { %1333 = vst.msk [vmem:[%s3227_s5 + $0x84] sm:$0xf] %vm1299_vm1, %v1488_v8  ;;  %1334 = vst.msk [vmem:[%s3227_s5 + $0x88] sm:$0xf] %vm1299_vm1, %v1489_v54 }
 0x24c   :  { %1335 = vst.msk [vmem:[%s3227_s5 + $0x8c] sm:$0xf] %vm1299_vm1, %v1490_v62  ;;  %1336 = vst.msk [vmem:[%s3227_s5 + $0x90] sm:$0xf] %vm1299_vm1, %v1491_v46 }
 0x24d   :  { %1337 = vst.msk [vmem:[%s3227_s5 + $0x94] sm:$0xf] %vm1299_vm1, %v1492_v14  ;;  %1338 = vst.msk [vmem:[%s3227_s5 + $0x98] sm:$0xf] %vm1299_vm1, %v1493_v26 }
 0x24e   :  { %1339 = vst.msk [vmem:[%s3227_s5 + $0x9c] sm:$0xf] %vm1299_vm1, %v1494_v47  ;;  %1340 = vst.msk [vmem:[%s3227_s5 + $0xa0] sm:$0xf] %vm1299_vm1, %v1495_v42 }
 0x24f   :  { %1341 = vst.msk [vmem:[%s3227_s5 + $0xa4] sm:$0xf] %vm1299_vm1, %v1496_v51  ;;  %1342 = vst.msk [vmem:[%s3227_s5 + $0xa8] sm:$0xf] %vm1299_vm1, %v1497_v38 }
 0x250   :  { %1343 = vst.msk [vmem:[%s3227_s5 + $0xac] sm:$0xf] %vm1299_vm1, %v1498_v7  ;;  %1344 = vst.msk [vmem:[%s3227_s5 + $0xb0] sm:$0xf] %vm1299_vm1, %v1499_v5 }
 0x251   :  { %1345 = vst.msk [vmem:[%s3227_s5 + $0xb4] sm:$0xf] %vm1299_vm1, %v1500_v6  ;;  %1346 = vst.msk [vmem:[%s3227_s5 + $0xb8] sm:$0xf] %vm1299_vm1, %v1501_v11 }
 0x252   :  { %1347 = vst.msk [vmem:[%s3227_s5 + $0xbc] sm:$0xf] %vm1299_vm1, %v1502_v31  ;;  %1348 = vst.msk [vmem:[%s3227_s5 + $0xc0] sm:$0xf] %vm1299_vm1, %v1503_v30 }

// kernel: _lambda_.6
= control target key start
LH: loop header
LB: loop body
LE: loop exit
PB: predicated region body
PF: predicated region fallthrough
CT: control target
= control target key end

     0   :  { %v1884_v0 = vmov 0   ;;  %vm514_vm0 = vcmask 261120   ;;  %s3065_s1 = inlined_call_operand.vmem [shape: bf16[288,32], index: 1, kind: input, shape index: {}]   ;;  %s3066_s0 = inlined_call_operand.vmem [shape: bf16[288,288], index: 0, kind: input, shape index: {}]   ;;  %s3067_s2 = inlined_call_operand.vmem [shape: f32[1,32], index: 2, kind: input, shape index: {}]   ;;  %s3068_s3 = inlined_call_operand.vmem [shape: f32[1,32], index: 3, kind: input, shape index: {}]   ;;  %s3069_s4 = inlined_call_operand.vmem [shape: f32[1,32], index: 4, kind: input, shape index: {}]   ;;  %s3070_s5 = inlined_call_operand.vmem [shape: bf16[288,32], index: 5, kind: output, shape index: {}]  }
   0x1   :  { %569 = vmatprep.subr.bf16.mxu0 %v1884_v0  ;;  %1759 = vmatprep.subr.bf16.mxu1 %v1884_v0  ;;  %v1792_v1 = vld [vmem:[%s3065_s1 + $0x38] sm:$0xff]   ;;  %v1793_v2 = vld [vmem:[%s3065_s1 + $0x30] sm:$0xff]   ;;  %v1794_v3 = vld [vmem:[%s3065_s1 + $0x28] sm:$0xff]  }
   0x2   :  { %570 = vmatpush1.bf16.msra.mxu0 %v1792_v1  ;;  %1775 = vmatpush1.bf16.msra.mxu1 %v1792_v1  ;;  %v1795_v4 = vld [vmem:[%s3065_s1 + $0x20] sm:$0xff]   ;;  %v1796_v5 = vld [vmem:[%s3065_s1 + $0x18] sm:$0xff]   ;;  %v1797_v7 = vld [vmem:[%s3065_s1 + $0x10] sm:$0xff]  }
   0x3   :  { %571 = vmatprep.subr.bf16.mxu0 %v1884_v0  ;;  %1760 = vmatprep.subr.bf16.mxu1 %v1884_v0  ;;  %v1810_v6 = vld [vmem:[%s3066_s0 + $0x4] ss:$12 sps:$4 sm:$0xff]   ;;  %v1813_v8 = vld [vmem:[%s3066_s0 + $0x154] ss:$12 sps:$4 sm:$0xff]   ;;  %v1798_v9 = vld [vmem:[%s3065_s1 + $0x8] sm:$0xff]  }
   0x4   :  { %601 = vmatprep.mubr.bf16.mxu0 %v1810_v6  ;;  %713 = vmatprep.mubr.bf16.mxu1 %v1813_v8  ;;  %v1799_v10 = vld [vmem:[%s3065_s1] sm:$0xff]   ;;  %v1800_v11 = vld [vmem:[%s3065_s1 + $0x78] sm:$0xff]   ;;  %v1801_v12 = vld [vmem:[%s3065_s1 + $0x70] sm:$0xff]  }
   0x5   :  { %v1802_v13 = vld [vmem:[%s3065_s1 + $0x68] sm:$0xff]   ;;  %v1803_v14 = vld [vmem:[%s3065_s1 + $0x60] sm:$0xff]   ;;  %v1804_v15 = vld [vmem:[%s3065_s1 + $0x58] sm:$0xff]  }
   0x6   :  { %572 = vmatpush1.bf16.msra.mxu0 %v1793_v2  ;;  %1776 = vmatpush1.bf16.msra.mxu1 %v1793_v2  ;;  %v1805_v16 = vld [vmem:[%s3065_s1 + $0x50] sm:$0xff]   ;;  %v1806_v17 = vld [vmem:[%s3065_s1 + $0x48] sm:$0xff]   ;;  %v1807_v18 = vld [vmem:[%s3065_s1 + $0x40] sm:$0xff]  }
   0x7   :  { %573 = vmatprep.subr.bf16.mxu0 %v1884_v0  ;;  %1761 = vmatprep.subr.bf16.mxu1 %v1884_v0  ;;  %v1826_v19 = vld [vmem:[%s3065_s1 + $0x88] sm:$0xff]   ;;  %v1811_v21 = vld [vmem:[%s3066_s0 + $0x150] ss:$12 sps:$4 sm:$0xff]   ;;  %v1833_v24 = vld [vmem:[%s3065_s1 + $0x80] sm:$0xff]  }
   0x8   :  { %v1808_v20 = vld [vmem:[%s3066_s0] ss:$12 sps:$4 sm:$0xff]   ;;  %v1814_v22 = vld [vmem:[%s3066_s0 + $0x1c] ss:$12 sps:$4 sm:$0xff]   ;;  %v1818_v25 = vld [vmem:[%s3066_s0 + $0x18] ss:$12 sps:$4 sm:$0xff]  }
   0x9   :  { %v1816_v23 = vld [vmem:[%s3066_s0 + $0x16c] ss:$12 sps:$4 sm:$0xff]   ;;  %v1819_v26 = vld [vmem:[%s3066_s0 + $0x168] ss:$12 sps:$4 sm:$0xff]   ;;  %v1822_v28 = vld [vmem:[%s3066_s0 + $0x184] ss:$12 sps:$4 sm:$0xff]  }
   0xa   :  { %574 = vmatpush1.bf16.msra.mxu0 %v1794_v3  ;;  %1777 = vmatpush1.bf16.msra.mxu1 %v1794_v3  ;;  %v1820_v27 = vld [vmem:[%s3066_s0 + $0x34] ss:$12 sps:$4 sm:$0xff]   ;;  %v1824_v29 = vld [vmem:[%s3066_s0 + $0x30] ss:$12 sps:$4 sm:$0xff]   ;;  %v1827_v31 = vld [vmem:[%s3066_s0 + $0x4c] ss:$12 sps:$4 sm:$0xff]  }
   0xb   :  { %575 = vmatprep.subr.bf16.mxu0 %v1884_v0  ;;  %1762 = vmatprep.subr.bf16.mxu1 %v1884_v0  ;;  %v1825_v30 = vld [vmem:[%s3066_s0 + $0x180] ss:$12 sps:$4 sm:$0xff]   ;;  %v1829_v32 = vld [vmem:[%s3066_s0 + $0x19c] ss:$12 sps:$4 sm:$0xff]   ;;  %v1832_v34 = vld [vmem:[%s3066_s0 + $0x198] ss:$12 sps:$4 sm:$0xff]  }
   0xc   :  { %v1831_v33 = vld [vmem:[%s3066_s0 + $0x48] ss:$12 sps:$4 sm:$0xff]   ;;  %v1834_v35 = vld [vmem:[%s3066_s0 + $0x64] ss:$12 sps:$4 sm:$0xff]   ;;  %v1837_v37 = vld [vmem:[%s3066_s0 + $0x60] ss:$12 sps:$4 sm:$0xff]  }
   0xd   :  { %v1836_v36 = vld [vmem:[%s3066_s0 + $0x8] ss:$12 sps:$4 sm:$0xff]   ;;  %v1838_v38 = vld [vmem:[%s3066_s0 + $0x20] ss:$12 sps:$4 sm:$0xff]   ;;  %v1841_v40 = vld [vmem:[%s3066_s0 + $0x38] ss:$12 sps:$4 sm:$0xff]  }
   0xe   :  { %576 = vmatpush1.bf16.msra.mxu0 %v1795_v4  ;;  %1778 = vmatpush1.bf16.msra.mxu1 %v1795_v4  ;;  %v1839_v39 = vld [vmem:[%s3066_s0 + $0x7c] ss:$12 sps:$4 sm:$0xff]   ;;  %v1842_v41 = vld [vmem:[%s3066_s0 + $0x78] ss:$12 sps:$4 sm:$0xff]   ;;  %v1844_v43 = vld [vmem:[%s3066_s0 + $0x94] ss:$12 sps:$4 sm:$0xff]  }
   0xf   :  { %577 = vmatprep.subr.bf16.mxu0 %v1884_v0  ;;  %1763 = vmatprep.subr.bf16.mxu1 %v1884_v0  ;;  %v1843_v42 = vld [vmem:[%s3066_s0 + $0x50] ss:$12 sps:$4 sm:$0xff]   ;;  %v1846_v44 = vld [vmem:[%s3066_s0 + $0x68] ss:$12 sps:$4 sm:$0xff]   ;;  %v1848_v46 = vld [vmem:[%s3066_s0 + $0x80] ss:$12 sps:$4 sm:$0xff]  }
  0x10   :  { %v1847_v45 = vld [vmem:[%s3066_s0 + $0x90] ss:$12 sps:$4 sm:$0xff]   ;;  %v1849_v47 = vld [vmem:[%s3066_s0 + $0xac] ss:$12 sps:$4 sm:$0xff]   ;;  %v1852_v49 = vld [vmem:[%s3066_s0 + $0xa8] ss:$12 sps:$4 sm:$0xff]  }
  0x11   :  { %v1851_v48 = vld [vmem:[%s3066_s0 + $0x98] ss:$12 sps:$4 sm:$0xff]   ;;  %v1853_v50 = vld [vmem:[%s3066_s0 + $0xb0] ss:$12 sps:$4 sm:$0xff]   ;;  %v1856_v52 = vld [vmem:[%s3066_s0 + $0xc8] ss:$12 sps:$4 sm:$0xff]  }
  0x12   :  { %578 = vmatpush1.bf16.msra.mxu0 %v1796_v5  ;;  %1779 = vmatpush1.bf16.msra.mxu1 %v1796_v5  ;;  %v1854_v51 = vld [vmem:[%s3066_s0 + $0xc4] ss:$12 sps:$4 sm:$0xff]   ;;  %v1857_v53 = vld [vmem:[%s3066_s0 + $0xc0] ss:$12 sps:$4 sm:$0xff]   ;;  %v1859_v55 = vld [vmem:[%s3066_s0 + $0xdc] ss:$12 sps:$4 sm:$0xff]  }
  0x13   :  { %579 = vmatprep.subr.bf16.mxu0 %v1884_v0  ;;  %1764 = vmatprep.subr.bf16.mxu1 %v1884_v0  ;;  %v1858_v54 = vld [vmem:[%s3066_s0 + $0xe0] ss:$12 sps:$4 sm:$0xff]   ;;  %v1861_v56 = vld [vmem:[%s3066_s0 + $0xf8] ss:$12 sps:$4 sm:$0xff]   ;;  %v1863_v58 = vld [vmem:[%s3066_s0 + $0x110] ss:$12 sps:$4 sm:$0xff]  }
  0x14   :  { %v1862_v57 = vld [vmem:[%s3066_s0 + $0xd8] ss:$12 sps:$4 sm:$0xff]   ;;  %v1864_v59 = vld [vmem:[%s3066_s0 + $0xf4] ss:$12 sps:$4 sm:$0xff]   ;;  %v1867_v61 = vld [vmem:[%s3066_s0 + $0xf0] ss:$12 sps:$4 sm:$0xff]  }
  0x15   :  { %v1866_v60 = vld [vmem:[%s3066_s0 + $0x128] ss:$12 sps:$4 sm:$0xff]   ;;  %v1868_v62 = vld [vmem:[%s3066_s0 + $0x140] ss:$12 sps:$4 sm:$0xff]   ;;  %v1873_v2 = vld [vmem:[%s3066_s0 + $0x170] ss:$12 sps:$4 sm:$0xff]  }
  0x16   :  { %580 = vmatpush1.bf16.msra.mxu0 %v1797_v7  ;;  %1780 = vmatpush1.bf16.msra.mxu1 %v1797_v7  ;;  %v1869_v63 = vld [vmem:[%s3066_s0 + $0x10c] ss:$12 sps:$4 sm:$0xff]   ;;  %v1872_v1 = vld [vmem:[%s3066_s0 + $0x108] ss:$12 sps:$4 sm:$0xff]   ;;  %v1874_v3 = vld [vmem:[%s3066_s0 + $0x124] ss:$12 sps:$4 sm:$0xff]  }
  0x17   :  { %581 = vmatprep.subr.bf16.mxu0 %v1884_v0  ;;  %1765 = vmatprep.subr.bf16.mxu1 %v1884_v0  ;;  %v1876_v4 = vld [vmem:[%s3066_s0 + $0x188] ss:$12 sps:$4 sm:$0xff]   ;;  %v1877_v5 = vld [vmem:[%s3066_s0 + $0x120] ss:$12 sps:$4 sm:$0xff]   ;;  %v1881_v8 = vld [vmem:[%s3066_s0 + $0x138] ss:$12 sps:$4 sm:$0xff]  }
  0x18   :  { %v1878_v6 = vld [vmem:[%s3066_s0 + $0x1a0] ss:$12 sps:$4 sm:$0xff]   ;;  %v1879_v7 = vld [vmem:[%s3066_s0 + $0x13c] ss:$12 sps:$4 sm:$0xff]  }
  0x1a   :  { %582 = vmatpush1.bf16.msra.mxu0 %v1798_v9  ;;  %1781 = vmatpush1.bf16.msra.mxu1 %v1798_v9 }
  0x1b   :  { %583 = vmatprep.subr.bf16.mxu0 %v1884_v0  ;;  %1766 = vmatprep.subr.bf16.mxu1 %v1884_v0 }
  0x1e   :  { %584 = vmatpush1.bf16.msra.mxu0 %v1799_v10  ;;  %1782 = vmatpush1.bf16.msra.mxu1 %v1799_v10 }
  0x1f   :  { %585 = vmatprep.subr.bf16.mxu0 %v1884_v0  ;;  %1767 = vmatprep.subr.bf16.mxu1 %v1884_v0 }
  0x22   :  { %586 = vmatpush2.bf16.msra.mxu0 %v1800_v11  ;;  %1783 = vmatpush2.bf16.msra.mxu1 %v1800_v11 }
  0x23   :  { %587 = vmatprep.subr.bf16.mxu0 %v1884_v0  ;;  %1768 = vmatprep.subr.bf16.mxu1 %v1884_v0 }
  0x26   :  { %588 = vmatpush2.bf16.msra.mxu0 %v1801_v12  ;;  %1784 = vmatpush2.bf16.msra.mxu1 %v1801_v12 }
  0x27   :  { %589 = vmatprep.subr.bf16.mxu0 %v1884_v0  ;;  %1769 = vmatprep.subr.bf16.mxu1 %v1884_v0 }
  0x2a   :  { %590 = vmatpush2.bf16.msra.mxu0 %v1802_v13  ;;  %1785 = vmatpush2.bf16.msra.mxu1 %v1802_v13 }
  0x2b   :  { %591 = vmatprep.subr.bf16.mxu0 %v1884_v0  ;;  %1770 = vmatprep.subr.bf16.mxu1 %v1884_v0 }
  0x2e   :  { %592 = vmatpush2.bf16.msra.mxu0 %v1803_v14  ;;  %1786 = vmatpush2.bf16.msra.mxu1 %v1803_v14 }
  0x2f   :  { %593 = vmatprep.subr.bf16.mxu0 %v1884_v0  ;;  %1771 = vmatprep.subr.bf16.mxu1 %v1884_v0 }
  0x32   :  { %594 = vmatpush2.bf16.msra.mxu0 %v1804_v15  ;;  %1787 = vmatpush2.bf16.msra.mxu1 %v1804_v15 }
  0x33   :  { %595 = vmatprep.subr.bf16.mxu0 %v1884_v0  ;;  %1772 = vmatprep.subr.bf16.mxu1 %v1884_v0 }
  0x36   :  { %596 = vmatpush2.bf16.msra.mxu0 %v1805_v16  ;;  %1788 = vmatpush2.bf16.msra.mxu1 %v1805_v16 }
  0x37   :  { %597 = vmatprep.subr.bf16.mxu0 %v1884_v0  ;;  %1773 = vmatprep.subr.bf16.mxu1 %v1884_v0 }
  0x3a   :  { %598 = vmatpush2.bf16.msra.mxu0 %v1806_v17  ;;  %1789 = vmatpush2.bf16.msra.mxu1 %v1806_v17 }
  0x3b   :  { %599 = vmatprep.subr.bf16.mxu0 %v1884_v0  ;;  %1774 = vmatprep.subr.bf16.mxu1 %v1884_v0  ;;  %v1871_v0 = vld [vmem:[%s3066_s0 + $0x158] ss:$12 sps:$4 sm:$0xff]  }
  0x3e   :  { %600 = vmatpush2.bf16.msra.mxu0 %v1807_v18  ;;  %1790 = vmatpush2.bf16.msra.mxu1 %v1807_v18 }
  0x3f   :  { %1719 = vmatprep.subr.bf16.mxu1 %v1826_v19 }
  0x41   :  { %602 = vmatmul.mubr.bf16.vlgmr.msra.gmra.mxu0 %v1808_v20  ;;  %714 = vmatmul.mubr.bf16.vlgmr.msra.gmra.mxu1 %v1811_v21 }
  0x42   :  { %609 = vmatprep.mubr.bf16.mxu0 %v1814_v22  ;;  %721 = vmatprep.mubr.bf16.mxu1 %v1816_v23 }
  0x43   :  { %1720 = vmatpush3.bf16.msra.mxu1 %v1826_v19 }
  0x44   :  { %1721 = vmatprep.subr.bf16.mxu1 %v1833_v24 }
  0x47   :  { %1722 = vmatpush3.bf16.msra.mxu1 %v1833_v24 }
  0x49   :  { %610 = vmatmul.mubr.bf16.gmra.mxu0 %v1818_v25  ;;  %722 = vmatmul.mubr.bf16.gmra.mxu1 %v1819_v26 }
  0x4a   :  { %617 = vmatprep.mubr.bf16.mxu0 %v1820_v27  ;;  %729 = vmatprep.mubr.bf16.mxu1 %v1822_v28 }
  0x51   :  { %618 = vmatmul.mubr.bf16.gmra.mxu0 %v1824_v29  ;;  %730 = vmatmul.mubr.bf16.gmra.mxu1 %v1825_v30 }
  0x52   :  { %625 = vmatprep.mubr.bf16.mxu0 %v1827_v31  ;;  %737 = vmatprep.mubr.bf16.mxu1 %v1829_v32 }
  0x59   :  { %626 = vmatmul.mubr.bf16.gmra.mxu0 %v1831_v33  ;;  %738 = vmatmul.mubr.bf16.gmra.mxu1 %v1832_v34 }
  0x5a   :  { %633 = vmatprep.mubr.bf16.mxu0 %v1834_v35  ;;  %1723 = vmatprep.mubr.msk.bf16.mxu1 %vm514_vm0, %v1836_v36 }
  0x61   :  { %634 = vmatmul.mubr.bf16.gmra.mxu0 %v1837_v37  ;;  %1724 = vmatmul.mubr.msk.bf16.vlgmr.msra.gmra.mxu1 %vm514_vm0, %v1838_v38 }
  0x62   :  { %641 = vmatprep.mubr.bf16.mxu0 %v1839_v39  ;;  %1727 = vmatprep.mubr.msk.bf16.mxu1 %vm514_vm0, %v1841_v40 }
  0x69   :  { %642 = vmatmul.mubr.bf16.gmra.mxu0 %v1842_v41  ;;  %1728 = vmatmul.mubr.msk.bf16.gmra.mxu1 %vm514_vm0, %v1843_v42  ;;  %v2200_v41 = vld [vmem:[%s3067_s2] ss:$0 sm:$0xff] }
  0x6a   :  { %649 = vmatprep.mubr.bf16.mxu0 %v1844_v43  ;;  %1731 = vmatprep.mubr.msk.bf16.mxu1 %vm514_vm0, %v1846_v44 }
  0x71   :  { %650 = vmatmul.mubr.bf16.gmra.mxu0 %v1847_v45  ;;  %1732 = vmatmul.mubr.msk.bf16.gmra.mxu1 %vm514_vm0, %v1848_v46 }
  0x72   :  { %657 = vmatprep.mubr.bf16.mxu0 %v1849_v47  ;;  %1735 = vmatprep.mubr.msk.bf16.mxu1 %vm514_vm0, %v1851_v48 }
  0x79   :  { %658 = vmatmul.mubr.bf16.gmra.mxu0 %v1852_v49  ;;  %1736 = vmatmul.mubr.msk.bf16.gmra.mxu1 %vm514_vm0, %v1853_v50 }
  0x7a   :  { %665 = vmatprep.mubr.bf16.mxu0 %v1854_v51  ;;  %1739 = vmatprep.mubr.msk.bf16.mxu1 %vm514_vm0, %v1856_v52 }
  0x81   :  { %666 = vmatmul.mubr.bf16.gmra.mxu0 %v1857_v53  ;;  %1740 = vmatmul.mubr.msk.bf16.gmra.mxu1 %vm514_vm0, %v1858_v54 }
  0x82   :  { %673 = vmatprep.mubr.bf16.mxu0 %v1859_v55  ;;  %1743 = vmatprep.mubr.msk.bf16.mxu1 %vm514_vm0, %v1861_v56 }
  0x89   :  { %674 = vmatmul.mubr.bf16.gmra.mxu0 %v1862_v57  ;;  %1744 = vmatmul.mubr.msk.bf16.gmra.mxu1 %vm514_vm0, %v1863_v58 }
  0x8a   :  { %681 = vmatprep.mubr.bf16.mxu0 %v1864_v59  ;;  %1747 = vmatprep.mubr.msk.bf16.mxu1 %vm514_vm0, %v1866_v60 }
  0x91   :  { %682 = vmatmul.mubr.bf16.gmra.mxu0 %v1867_v61  ;;  %1748 = vmatmul.mubr.msk.bf16.gmra.mxu1 %vm514_vm0, %v1868_v62 }
  0x92   :  { %689 = vmatprep.mubr.bf16.mxu0 %v1869_v63  ;;  %1751 = vmatprep.mubr.msk.bf16.mxu1 %vm514_vm0, %v1871_v0 }
  0x99   :  { %690 = vmatmul.mubr.bf16.gmra.mxu0 %v1872_v1  ;;  %1752 = vmatmul.mubr.msk.bf16.gmra.mxu1 %vm514_vm0, %v1873_v2 }
  0x9a   :  { %697 = vmatprep.mubr.bf16.mxu0 %v1874_v3  ;;  %1755 = vmatprep.mubr.msk.bf16.mxu1 %vm514_vm0, %v1876_v4 }
  0xa1   :  { %698 = vmatmul.mubr.bf16.gmra.mxu0 %v1877_v5  ;;  %1756 = vmatmul.mubr.msk.bf16.gmra.mxu1 %vm514_vm0, %v1878_v6 }
  0xa2   :  { %705 = vmatprep.mubr.bf16.mxu0 %v1879_v7 }
  0xa9   :  { %706 = vmatmul.mubr.bf16.gmra.mxu0 %v1881_v8 }
 0x101   :  { %v603_v9 = vpop.f32.mrf.mxu0  ;;  %v2181_v10 = vpop.f32.mrf.mxu1 }
 0x102   :  { %v604_v46 = vadd.f32 %v2200_v41, %v603_v9 }
 0x103   :  { %v605_v11 = vpop.f32.mrf.mxu0  ;;  %v717_v12 = vpop.f32.mrf.mxu1 }
 0x105   :  { %v606_v13 = vpop.f32.mrf.mxu0  ;;  %v2183_v14 = vpop.f32.mrf.mxu1 }
 0x106   :  { %v607_v49 = vadd.f32 %v2200_v41, %v606_v13 }
 0x107   :  { %v608_v15 = vpop.f32.mrf.mxu0  ;;  %v720_v16 = vpop.f32.mrf.mxu1 }
 0x109   :  { %v611_v17 = vpop.f32.mrf.mxu0  ;;  %v2185_v18 = vpop.f32.mrf.mxu1 }
 0x10a   :  { %v612_v50 = vadd.f32 %v2200_v41, %v611_v17 }
 0x10b   :  { %v613_v19 = vpop.f32.mrf.mxu0  ;;  %v725_v20 = vpop.f32.mrf.mxu1 }
 0x10d   :  { %v614_v21 = vpop.f32.mrf.mxu0  ;;  %v2187_v22 = vpop.f32.mrf.mxu1 }
 0x10e   :  { %v615_v54 = vadd.f32 %v2200_v41, %v614_v21 }
 0x10f   :  { %v616_v23 = vpop.f32.mrf.mxu0  ;;  %v728_v24 = vpop.f32.mrf.mxu1 }
 0x111   :  { %v619_v25 = vpop.f32.mrf.mxu0  ;;  %v2189_v26 = vpop.f32.mrf.mxu1 }
 0x112   :  { %v620_v59 = vadd.f32 %v2200_v41, %v619_v25 }
 0x113   :  { %v621_v27 = vpop.f32.mrf.mxu0  ;;  %v733_v28 = vpop.f32.mrf.mxu1 }
 0x115   :  { %v622_v29 = vpop.f32.mrf.mxu0  ;;  %v2191_v30 = vpop.f32.mrf.mxu1 }
 0x116   :  { %v623_v7 = vadd.f32 %v2200_v41, %v622_v29 }
 0x117   :  { %v624_v31 = vpop.f32.mrf.mxu0  ;;  %v736_v32 = vpop.f32.mrf.mxu1 }
 0x119   :  { %v627_v33 = vpop.f32.mrf.mxu0  ;;  %v2193_v34 = vpop.f32.mrf.mxu1 }
 0x11a   :  { %v628_v8 = vadd.f32 %v2200_v41, %v627_v33 }
 0x11b   :  { %v629_v35 = vpop.f32.mrf.mxu0  ;;  %v741_v36 = vpop.f32.mrf.mxu1 }
 0x11d   :  { %v630_v37 = vpop.f32.mrf.mxu0  ;;  %v2195_v38 = vpop.f32.mrf.mxu1 }
 0x11e   :  { %v631_v15 = vadd.f32 %v2200_v41, %v630_v37 }
 0x11f   :  { %v632_v39 = vpop.f32.mrf.mxu0  ;;  %v744_v40 = vpop.f32.mrf.mxu1 }
 0x121   :  { %v635_v42 = vpop.f32.mrf.mxu0  ;;  %v1725_v43 = vpop.f32.mrf.mxu1 }
 0x122   :  { %v2208_v55 = vadd.f32 %v1725_v43, %v612_v50  ;;  %v636_v31 = vadd.f32 %v2200_v41, %v635_v42 }
 0x123   :  { %v637_v44 = vpop.f32.mrf.mxu0  ;;  %v780_v45 = vpop.f32.mrf.mxu1 }
 0x124   :  { %v2205_v51 = vadd.f32 %v780_v45, %v604_v46  ;;  %v926_v2 = vsel %vm514_vm0, %v2208_v55, 0.0 }
 0x125   :  { %v638_v47 = vpop.f32.mrf.mxu0  ;;  %v1726_v48 = vpop.f32.mrf.mxu1 }
 0x126   :  { %v923_v60 = vsel %vm514_vm0, %v2205_v51, 0.0  ;;  %v2215_v61 = vadd.f32 %v1726_v48, %v615_v54  ;;  %v639_v37 = vadd.f32 %v2200_v41, %v638_v47 }
 0x127   :  { %v640_v52 = vpop.f32.mrf.mxu0  ;;  %v783_v53 = vpop.f32.mrf.mxu1 }
 0x128   :  { %v2210_v56 = vadd.f32 %v783_v53, %v607_v49  ;;  %v928_v9 = vsel %vm514_vm0, %v2215_v61, 0.0 }
 0x129   :  { %v643_v57 = vpop.f32.mrf.mxu0  ;;  %v1729_v58 = vpop.f32.mrf.mxu1 }
 0x12a   :  { %v924_v62 = vsel %vm514_vm0, %v2210_v56, 0.0  ;;  %v2228_v16 = vadd.f32 %v1729_v58, %v628_v8  ;;  %v644_v47 = vadd.f32 %v2200_v41, %v643_v57 }
 0x12b   :  { %v925_v63 = vadd.f32 %v924_v62, %v923_v60  ;;  %v645_v0 = vpop.f32.mrf.mxu0  ;;  %v796_v1 = vpop.f32.mrf.mxu1 }
 0x12c   :  { %v2221_v3 = vadd.f32 %v796_v1, %v620_v59  ;;  %v934_v32 = vsel %vm514_vm0, %v2228_v16, 0.0 }
 0x12d   :  { %v927_v4 = vadd.f32 %v926_v2, %v925_v63  ;;  %v646_v5 = vpop.f32.mrf.mxu0  ;;  %v1730_v6 = vpop.f32.mrf.mxu1 }
 0x12e   :  { %v930_v17 = vsel %vm514_vm0, %v2221_v3, 0.0  ;;  %v2234_v24 = vadd.f32 %v1730_v6, %v631_v15  ;;  %v647_v1 = vadd.f32 %v2200_v41, %v646_v5 }
 0x12f   :  { %v929_v11 = vadd.f32 %v928_v9, %v927_v4  ;;  %v648_v12 = vpop.f32.mrf.mxu0  ;;  %v799_v13 = vpop.f32.mrf.mxu1 }
 0x130   :  { %v2232_v19 = vadd.f32 %v799_v13, %v623_v7  ;;  %v936_v39 = vsel %vm514_vm0, %v2234_v24, 0.0 }
 0x131   :  { %v931_v20 = vadd.f32 %v930_v17, %v929_v11  ;;  %v651_v21 = vpop.f32.mrf.mxu0  ;;  %v1733_v23 = vpop.f32.mrf.mxu1 }
 0x132   :  { %v932_v25 = vsel %vm514_vm0, %v2232_v19, 0.0  ;;  %v2253_v60 = vadd.f32 %v1733_v23, %v644_v47  ;;  %v652_v11 = vadd.f32 %v2200_v41, %v651_v21 }
 0x133   :  { %v933_v27 = vadd.f32 %v932_v25, %v931_v20  ;;  %v653_v28 = vpop.f32.mrf.mxu0  ;;  %v812_v29 = vpop.f32.mrf.mxu1 }
 0x134   :  { %v2244_v40 = vadd.f32 %v812_v29, %v636_v31  ;;  %v942_v6 = vsel %vm514_vm0, %v2253_v60, 0.0 }
 0x135   :  { %v935_v33 = vadd.f32 %v934_v32, %v933_v27  ;;  %v654_v35 = vpop.f32.mrf.mxu0  ;;  %v1734_v36 = vpop.f32.mrf.mxu1 }
 0x136   :  { %v938_v49 = vsel %vm514_vm0, %v2244_v40, 0.0  ;;  %v2258_v7 = vadd.f32 %v1734_v36, %v647_v1  ;;  %v655_v15 = vadd.f32 %v2200_v41, %v654_v35 }
 0x137   :  { %v937_v43 = vadd.f32 %v936_v39, %v935_v33  ;;  %v656_v44 = vpop.f32.mrf.mxu0  ;;  %v815_v45 = vpop.f32.mrf.mxu1 }
 0x138   :  { %v2246_v46 = vadd.f32 %v815_v45, %v639_v37  ;;  %v944_v17 = vsel %vm514_vm0, %v2258_v7, 0.0 }
 0x139   :  { %v659_v48 = vpop.f32.mrf.mxu0  ;;  %v1737_v42 = vpop.f32.mrf.mxu1  ;;  %v939_v50 = vadd.f32 %v938_v49, %v937_v43 }
 0x13a   :  { %v940_v54 = vsel %vm514_vm0, %v2246_v46, 0.0  ;;  %v660_v31 = vadd.f32 %v2200_v41, %v659_v48 }
 0x13b   :  { %v661_v52 = vpop.f32.mrf.mxu0  ;;  %v828_v53 = vpop.f32.mrf.mxu1  ;;  %v941_v62 = vadd.f32 %v940_v54, %v939_v50 }
 0x13c   :  { %v2264_v5 = vadd.f32 %v828_v53, %v652_v11  ;;  %v2273_v43 = vadd.f32 %v1737_v42, %v660_v31 }
 0x13d   :  { %v662_v58 = vpop.f32.mrf.mxu0  ;;  %v1738_v59 = vpop.f32.mrf.mxu1  ;;  %v943_v57 = vadd.f32 %v942_v6, %v941_v62 }
 0x13e   :  { %v946_v21 = vsel %vm514_vm0, %v2264_v5, 0.0  ;;  %v663_v44 = vadd.f32 %v2200_v41, %v662_v58  ;;  %v950_v53 = vsel %vm514_vm0, %v2273_v43, 0.0 }
 0x13f   :  { %v664_v63 = vpop.f32.mrf.mxu0  ;;  %v831_v0 = vpop.f32.mrf.mxu1  ;;  %v945_v20 = vadd.f32 %v944_v17, %v943_v57 }
 0x140   :  { %v2266_v27 = vadd.f32 %v831_v0, %v655_v15  ;;  %v2280_v47 = vadd.f32 %v1738_v59, %v663_v44 }
 0x141   :  { %v667_v2 = vpop.f32.mrf.mxu0  ;;  %v1741_v4 = vpop.f32.mrf.mxu1  ;;  %v947_v32 = vadd.f32 %v946_v21, %v945_v20 }
 0x142   :  { %v948_v36 = vsel %vm514_vm0, %v2266_v27, 0.0  ;;  %v668_v54 = vadd.f32 %v2200_v41, %v667_v2  ;;  %v952_v6 = vsel %vm514_vm0, %v2280_v47, 0.0 }
 0x143   :  { %v669_v8 = vpop.f32.mrf.mxu0  ;;  %v844_v9 = vpop.f32.mrf.mxu1  ;;  %v949_v45 = vadd.f32 %v948_v36, %v947_v32 }
 0x144   :  { %v2288_v57 = vadd.f32 %v844_v9, %v668_v54 }
 0x145   :  { %v670_v12 = vpop.f32.mrf.mxu0  ;;  %v1742_v13 = vpop.f32.mrf.mxu1  ;;  %v951_v62 = vadd.f32 %v950_v53, %v949_v45 }
 0x146   :  { %v671_v42 = vadd.f32 %v2200_v41, %v670_v12  ;;  %v954_v12 = vsel %vm514_vm0, %v2288_v57, 0.0 }
 0x147   :  { %v672_v23 = vpop.f32.mrf.mxu0  ;;  %v847_v25 = vpop.f32.mrf.mxu1  ;;  %v953_v11 = vadd.f32 %v952_v6, %v951_v62 }
 0x148   :  { %v2291_v17 = vadd.f32 %v847_v25, %v671_v42 }
 0x149   :  { %v675_v28 = vpop.f32.mrf.mxu0  ;;  %v1745_v29 = vpop.f32.mrf.mxu1  ;;  %v955_v21 = vadd.f32 %v954_v12, %v953_v11 }
 0x14a   :  { %v676_v8 = vadd.f32 %v2200_v41, %v675_v28  ;;  %v956_v28 = vsel %vm514_vm0, %v2291_v17, 0.0 }
 0x14b   :  { %v677_v33 = vpop.f32.mrf.mxu0  ;;  %v860_v35 = vpop.f32.mrf.mxu1  ;;  %v957_v45 = vadd.f32 %v956_v28, %v955_v21 }
 0x14c   :  { %v2296_v23 = vadd.f32 %v1741_v4, %v676_v8 }
 0x14d   :  { %v678_v37 = vpop.f32.mrf.mxu0  ;;  %v1746_v39 = vpop.f32.mrf.mxu1 }
 0x14e   :  { %v679_v2 = vadd.f32 %v2200_v41, %v678_v37  ;;  %v958_v37 = vsel %vm514_vm0, %v2296_v23, 0.0 }
 0x14f   :  { %v680_v49 = vpop.f32.mrf.mxu0  ;;  %v863_v50 = vpop.f32.mrf.mxu1  ;;  %v959_v62 = vadd.f32 %v958_v37, %v957_v45 }
 0x150   :  { %v2301_v33 = vadd.f32 %v1742_v13, %v679_v2 }
 0x151   :  { %v683_v52 = vpop.f32.mrf.mxu0  ;;  %v2276_v48 = vpop.f32.mrf.mxu1 }
 0x152   :  { %v684_v31 = vadd.f32 %v2200_v41, %v683_v52  ;;  %v960_v53 = vsel %vm514_vm0, %v2301_v33, 0.0 }
 0x153   :  { %v685_v63 = vpop.f32.mrf.mxu0  ;;  %v876_v0 = vpop.f32.mrf.mxu1  ;;  %v961_v6 = vadd.f32 %v960_v53, %v959_v62 }
 0x154   :  { %v2306_v44 = vadd.f32 %v860_v35, %v684_v31 }
 0x155   :  { %v686_v1 = vpop.f32.mrf.mxu0  ;;  %v2284_v58 = vpop.f32.mrf.mxu1 }
 0x156   :  { %v687_v25 = vadd.f32 %v2200_v41, %v686_v1  ;;  %v962_v42 = vsel %vm514_vm0, %v2306_v44, 0.0 }
 0x157   :  { %v688_v59 = vpop.f32.mrf.mxu0  ;;  %v879_v15 = vpop.f32.mrf.mxu1 }
 0x158   :  { %v2311_v54 = vadd.f32 %v863_v50, %v687_v25  ;;  %v963_v50 = vadd.f32 %v962_v42, %v961_v6 }
 0x159   :  { %v691_v20 = vpop.f32.mrf.mxu0  ;;  %v1753_v9 = vpop.f32.mrf.mxu1 }
 0x15a   :  { %v692_v4 = vadd.f32 %v2200_v41, %v691_v20  ;;  %v964_v59 = vsel %vm514_vm0, %v2311_v54, 0.0 }
 0x15b   :  { %v693_v32 = vpop.f32.mrf.mxu0  ;;  %v892_v49 = vpop.f32.mrf.mxu1  ;;  %v965_v21 = vadd.f32 %v964_v59, %v963_v50 }
 0x15c   :  { %v2316_v1 = vadd.f32 %v1745_v29, %v692_v4 }
 0x15d   :  { %v694_v36 = vpop.f32.mrf.mxu0  ;;  %v1754_v8 = vpop.f32.mrf.mxu1 }
 0x15e   :  { %v695_v13 = vadd.f32 %v2200_v41, %v694_v36  ;;  %v966_v12 = vsel %vm514_vm0, %v2316_v1, 0.0 }
 0x15f   :  { %v696_v52 = vpop.f32.mrf.mxu0  ;;  %v895_v32 = vpop.f32.mrf.mxu1  ;;  %v967_v37 = vadd.f32 %v966_v12, %v965_v21 }
 0x160   :  { %v2321_v2 = vadd.f32 %v1746_v39, %v695_v13 }
 0x161   :  { %v699_v63 = vpop.f32.mrf.mxu0 }
 0x162   :  { %v700_v35 = vadd.f32 %v2200_v41, %v699_v63  ;;  %v968_v25 = vsel %vm514_vm0, %v2321_v2, 0.0 }
 0x163   :  { %v701_v11 = vpop.f32.mrf.mxu0  ;;  %v969_v52 = vadd.f32 %v968_v25, %v967_v37 }
 0x164   :  { %v2325_v31 = vadd.f32 %v876_v0, %v700_v35  ;;  %v1757_v0 = vpop.f32.mrf.mxu1 }
 0x165   :  { %v702_v20 = vpop.f32.mrf.mxu0 }
 0x166   :  { %v703_v29 = vadd.f32 %v2200_v41, %v702_v20  ;;  %v970_v4 = vsel %vm514_vm0, %v2325_v31, 0.0  ;;  %v908_v11 = vpop.f32.mrf.mxu1  ;;  %v719_v20 = vadd.f32 %v2200_v41, %v2183_v14 }
 0x167   :  { %v704_v28 = vpop.f32.mrf.mxu0  ;;  %v971_v63 = vadd.f32 %v970_v4, %v969_v52  ;;  %v732_v4 = vadd.f32 %v2200_v41, %v2189_v26 }
 0x168   :  { %v2330_v36 = vadd.f32 %v879_v15, %v703_v29  ;;  %v716_v15 = vadd.f32 %v2200_v41, %v2181_v10  ;;  %v724_v10 = vadd.f32 %v2200_v41, %v2185_v18  ;;  %v2354_v21 = vadd.f32 %v895_v32, %v719_v20  ;;  %v1758_v25 = vpop.f32.mrf.mxu1 }
 0x169   :  { %v707_v39 = vpop.f32.mrf.mxu0 }
 0x16a   :  { %v708_v45 = vadd.f32 %v2200_v41, %v707_v39  ;;  %v972_v13 = vsel %vm514_vm0, %v2330_v36, 0.0  ;;  %v2347_v12 = vadd.f32 %v892_v49, %v716_v15  ;;  %v727_v39 = vadd.f32 %v2200_v41, %v2187_v22 }
 0x16b   :  { %v709_v53 = vpop.f32.mrf.mxu0  ;;  %v973_v59 = vadd.f32 %v972_v13, %v971_v63  ;;  %v2360_v14 = vadd.f32 %v1753_v9, %v724_v10  ;;  %v980_v32 = vsel %vm514_vm0, %v2354_v21, 0.0  ;;  %v2374_v9 = vadd.f32 %v908_v11, %v732_v4 }
 0x16c   :  { %v2338_v62 = vadd.f32 %v2276_v48, %v708_v45  ;;  %v2366_v18 = vadd.f32 %v1754_v8, %v727_v39  ;;  %v911_v45 = vpop.f32.mrf.mxu1  ;;  %v735_v53 = vadd.f32 %v2200_v41, %v2191_v30  ;;  %v740_v63 = vadd.f32 %v2200_v41, %v2193_v34 }
 0x16d   :  { %v710_v42 = vpop.f32.mrf.mxu0  ;;  %v982_v22 = vsel %vm514_vm0, %v2360_v14, 0.0  ;;  %v743_v15 = vadd.f32 %v2200_v41, %v2195_v38  ;;  %v986_v30 = vsel %vm514_vm0, %v2374_v9, 0.0 }
 0x16e   :  { %v974_v35 = vsel %vm514_vm0, %v2338_v62, 0.0  ;;  %v711_v6 = vadd.f32 %v2200_v41, %v710_v42  ;;  %v984_v26 = vsel %vm514_vm0, %v2366_v18, 0.0  ;;  %v2380_v8 = vadd.f32 %v911_v45, %v735_v53 }
 0x16f   :  { %v712_v50 = vpop.f32.mrf.mxu0  ;;  %v975_v29 = vadd.f32 %v974_v35, %v973_v59  ;;  %v2384_v35 = vadd.f32 %v1757_v0, %v740_v63  ;;  %v2388_v11 = vadd.f32 %v1758_v25, %v743_v15 }
 0x170   :  { %v2350_v48 = vadd.f32 %v2284_v58, %v711_v6  ;;  %v978_v58 = vsel %vm514_vm0, %v2347_v12, 0.0  ;;  %v988_v34 = vsel %vm514_vm0, %v2380_v8, 0.0 }
 0x171   :  { %v990_v50 = vsel %vm514_vm0, %v2384_v35, 0.0 }
 0x172   :  { %v976_v28 = vsel %vm514_vm0, %v2350_v48, 0.0 }
 0x173   :  { %v977_v37 = vadd.f32 %v976_v28, %v975_v29  ;;  %v992_v29 = vsel %vm514_vm0, %v2388_v11, 0.0 }
 0x175   :  { %v979_v49 = vadd.f32 %v978_v58, %v977_v37 }
 0x177   :  { %v981_v52 = vadd.f32 %v980_v32, %v979_v49 }
 0x179   :  { %v983_v13 = vadd.f32 %v982_v22, %v981_v52 }
 0x17b   :  { %v985_v42 = vadd.f32 %v984_v26, %v983_v13 }
 0x17d   :  { %v987_v6 = vadd.f32 %v986_v30, %v985_v42 }
 0x17f   :  { %v989_v59 = vadd.f32 %v988_v34, %v987_v6 }
 0x181   :  { %v991_v20 = vadd.f32 %v990_v50, %v989_v59 }
 0x183   :  { %v993_v38 = vadd.f32 %v992_v29, %v991_v20 }
 0x185   :  { %v994_v41 = vrot.slane %v993_v38, 4 }
 0x187   :  { %v995_v0 = vadd.f32 %v994_v41, %v993_v38 }
 0x189   :  { %v996_v10 = vrot.slane %v995_v0, 2 }
 0x18b   :  { %v997_v28 = vadd.f32 %v996_v10, %v995_v0 }
 0x18d   :  { %v998_v37 = vrot.slane %v997_v28, 1 }
 0x18f   :  { %v999_v39 = vadd.f32 %v998_v37, %v997_v28 }
 0x191   :  { %v2396_v25 = vmul.f32 0.0034722222, %v999_v39 }
 0x193   :  { %v1002_v58 = vsub.f32 %v2205_v51, %v2396_v25  ;;  %v1003_v49 = vsub.f32 %v2210_v56, %v2396_v25  ;;  %v1004_v4 = vsub.f32 %v2208_v55, %v2396_v25  ;;  %v1005_v32 = vsub.f32 %v2215_v61, %v2396_v25 }
 0x194   :  { %v1006_v53 = vsub.f32 %v2221_v3, %v2396_v25  ;;  %v1007_v13 = vsub.f32 %v2232_v19, %v2396_v25  ;;  %v1008_v30 = vsub.f32 %v2228_v16, %v2396_v25  ;;  %v1009_v50 = vsub.f32 %v2234_v24, %v2396_v25 }
 0x195   :  { %v1038_v45 = vmul.f32 %v1002_v58, %v1002_v58  ;;  %v1039_v52 = vmul.f32 %v1003_v49, %v1003_v49  ;;  %v1040_v22 = vmul.f32 %v1004_v4, %v1004_v4  ;;  %v1041_v63 = vmul.f32 %v1005_v32, %v1005_v32 }
 0x196   :  { %v1042_v6 = vmul.f32 %v1006_v53, %v1006_v53  ;;  %v1043_v20 = vmul.f32 %v1007_v13, %v1007_v13  ;;  %v1010_v41 = vsub.f32 %v2244_v40, %v2396_v25  ;;  %v1044_v0 = vmul.f32 %v1008_v30, %v1008_v30 }
 0x197   :  { %v1074_v26 = vsel %vm514_vm0, %v1038_v45, 0.0  ;;  %v1075_v42 = vsel %vm514_vm0, %v1039_v52, 0.0  ;;  %v1077_v34 = vsel %vm514_vm0, %v1040_v22, 0.0  ;;  %v1079_v29 = vsel %vm514_vm0, %v1041_v63, 0.0 }
 0x198   :  { %v1076_v15 = vadd.f32 %v1075_v42, %v1074_v26  ;;  %v1081_v10 = vsel %vm514_vm0, %v1042_v6, 0.0  ;;  %v1011_v37 = vsub.f32 %v2246_v46, %v2396_v25  ;;  %v1045_v39 = vmul.f32 %v1009_v50, %v1009_v50 }
 0x199   :  { %v1083_v58 = vsel %vm514_vm0, %v1043_v20, 0.0  ;;  %v1012_v4 = vsub.f32 %v2253_v60, %v2396_v25  ;;  %v1046_v32 = vmul.f32 %v1010_v41, %v1010_v41  ;;  %v1085_v45 = vsel %vm514_vm0, %v1044_v0, 0.0 }
 0x19a   :  { %v1078_v59 = vadd.f32 %v1077_v34, %v1076_v15  ;;  %v1013_v53 = vsub.f32 %v2258_v7, %v2396_v25  ;;  %v1047_v22 = vmul.f32 %v1011_v37, %v1011_v37  ;;  %v1087_v13 = vsel %vm514_vm0, %v1045_v39, 0.0 }
 0x19b   :  { %v1014_v26 = vsub.f32 %v2264_v5, %v2396_v25  ;;  %v1048_v42 = vmul.f32 %v1012_v4, %v1012_v4  ;;  %v1089_v15 = vsel %vm514_vm0, %v1046_v32, 0.0  ;;  %v1015_v6 = vsub.f32 %v2266_v27, %v2396_v25 }
 0x19c   :  { %v1080_v38 = vadd.f32 %v1079_v29, %v1078_v59  ;;  %v1049_v34 = vmul.f32 %v1013_v53, %v1013_v53  ;;  %v1091_v59 = vsel %vm514_vm0, %v1047_v22, 0.0  ;;  %v1016_v20 = vsub.f32 %v2273_v43, %v2396_v25 }
 0x19d   :  { %v1050_v29 = vmul.f32 %v1014_v26, %v1014_v26  ;;  %v1017_v0 = vsub.f32 %v2280_v47, %v2396_v25  ;;  %v1018_v39 = vsub.f32 %v2288_v57, %v2396_v25  ;;  %v1019_v32 = vsub.f32 %v2291_v17, %v2396_v25 }
 0x19e   :  { %v1082_v28 = vadd.f32 %v1081_v10, %v1080_v38  ;;  %v1093_v38 = vsel %vm514_vm0, %v1048_v42, 0.0  ;;  %v1051_v10 = vmul.f32 %v1015_v6, %v1015_v6  ;;  %v1020_v22 = vsub.f32 %v2296_v23, %v2396_v25 }
 0x19f   :  { %v1021_v42 = vsub.f32 %v2301_v33, %v2396_v25 }
 0x1a0   :  { %v1084_v49 = vadd.f32 %v1083_v58, %v1082_v28  ;;  %v1095_v28 = vsel %vm514_vm0, %v1049_v34, 0.0  ;;  %v1052_v58 = vmul.f32 %v1016_v20, %v1016_v20  ;;  %v1022_v34 = vsub.f32 %v2306_v44, %v2396_v25 }
 0x1a2   :  { %v1086_v52 = vadd.f32 %v1085_v45, %v1084_v49  ;;  %v1097_v49 = vsel %vm514_vm0, %v1050_v29, 0.0  ;;  %v1053_v45 = vmul.f32 %v1017_v0, %v1017_v0  ;;  %v1023_v29 = vsub.f32 %v2311_v54, %v2396_v25 }
 0x1a4   :  { %v1088_v63 = vadd.f32 %v1087_v13, %v1086_v52  ;;  %v1099_v52 = vsel %vm514_vm0, %v1051_v10, 0.0  ;;  %v1054_v13 = vmul.f32 %v1018_v39, %v1018_v39  ;;  %v1024_v10 = vsub.f32 %v2316_v1, %v2396_v25 }
 0x1a6   :  { %v1090_v30 = vadd.f32 %v1089_v15, %v1088_v63  ;;  %v1101_v63 = vsel %vm514_vm0, %v1052_v58, 0.0  ;;  %v1055_v15 = vmul.f32 %v1019_v32, %v1019_v32  ;;  %v1025_v58 = vsub.f32 %v2321_v2, %v2396_v25 }
 0x1a8   :  { %v1092_v50 = vadd.f32 %v1091_v59, %v1090_v30  ;;  %v1103_v30 = vsel %vm514_vm0, %v1053_v45, 0.0  ;;  %v1056_v59 = vmul.f32 %v1020_v22, %v1020_v22  ;;  %v1026_v45 = vsub.f32 %v2325_v31, %v2396_v25 }
 0x1aa   :  { %v1094_v41 = vadd.f32 %v1093_v38, %v1092_v50  ;;  %v1105_v50 = vsel %vm514_vm0, %v1054_v13, 0.0  ;;  %v1057_v38 = vmul.f32 %v1021_v42, %v1021_v42  ;;  %v1027_v13 = vsub.f32 %v2330_v36, %v2396_v25 }
 0x1ac   :  { %v1096_v37 = vadd.f32 %v1095_v28, %v1094_v41  ;;  %v1107_v41 = vsel %vm514_vm0, %v1055_v15, 0.0  ;;  %v1058_v28 = vmul.f32 %v1022_v34, %v1022_v34  ;;  %v1028_v15 = vsub.f32 %v2338_v62, %v2396_v25 }
 0x1ae   :  { %v1098_v4 = vadd.f32 %v1097_v49, %v1096_v37  ;;  %v1109_v37 = vsel %vm514_vm0, %v1056_v59, 0.0  ;;  %v1059_v49 = vmul.f32 %v1023_v29, %v1023_v29  ;;  %v1029_v59 = vsub.f32 %v2350_v48, %v2396_v25 }
 0x1b0   :  { %v1100_v53 = vadd.f32 %v1099_v52, %v1098_v4  ;;  %v1111_v4 = vsel %vm514_vm0, %v1057_v38, 0.0  ;;  %v1060_v52 = vmul.f32 %v1024_v10, %v1024_v10  ;;  %v1030_v38 = vsub.f32 %v2347_v12, %v2396_v25 }
 0x1b2   :  { %v1102_v26 = vadd.f32 %v1101_v63, %v1100_v53  ;;  %v1113_v53 = vsel %vm514_vm0, %v1058_v28, 0.0  ;;  %v1061_v63 = vmul.f32 %v1025_v58, %v1025_v58  ;;  %v1031_v28 = vsub.f32 %v2354_v21, %v2396_v25 }
 0x1b4   :  { %v1104_v6 = vadd.f32 %v1103_v30, %v1102_v26  ;;  %v1115_v26 = vsel %vm514_vm0, %v1059_v49, 0.0  ;;  %v1062_v30 = vmul.f32 %v1026_v45, %v1026_v45  ;;  %v1032_v49 = vsub.f32 %v2360_v14, %v2396_v25 }
 0x1b6   :  { %v1106_v20 = vadd.f32 %v1105_v50, %v1104_v6  ;;  %v1117_v6 = vsel %vm514_vm0, %v1060_v52, 0.0  ;;  %v1063_v50 = vmul.f32 %v1027_v13, %v1027_v13  ;;  %v1033_v52 = vsub.f32 %v2366_v18, %v2396_v25 }
 0x1b8   :  { %v1108_v0 = vadd.f32 %v1107_v41, %v1106_v20  ;;  %v1119_v20 = vsel %vm514_vm0, %v1061_v63, 0.0  ;;  %v1064_v41 = vmul.f32 %v1028_v15, %v1028_v15  ;;  %v1034_v63 = vsub.f32 %v2374_v9, %v2396_v25 }
 0x1ba   :  { %v1110_v39 = vadd.f32 %v1109_v37, %v1108_v0  ;;  %v1121_v0 = vsel %vm514_vm0, %v1062_v30, 0.0  ;;  %v1065_v37 = vmul.f32 %v1029_v59, %v1029_v59  ;;  %v1035_v30 = vsub.f32 %v2380_v8, %v2396_v25 }
 0x1bc   :  { %v1112_v32 = vadd.f32 %v1111_v4, %v1110_v39  ;;  %v1123_v39 = vsel %vm514_vm0, %v1063_v50, 0.0  ;;  %v1066_v4 = vmul.f32 %v1030_v38, %v1030_v38  ;;  %v1036_v50 = vsub.f32 %v2384_v35, %v2396_v25 }
 0x1be   :  { %v1114_v22 = vadd.f32 %v1113_v53, %v1112_v32  ;;  %v1125_v32 = vsel %vm514_vm0, %v1064_v41, 0.0  ;;  %v1067_v53 = vmul.f32 %v1031_v28, %v1031_v28  ;;  %v1037_v41 = vsub.f32 %v2388_v11, %v2396_v25 }
 0x1c0   :  { %v1116_v42 = vadd.f32 %v1115_v26, %v1114_v22  ;;  %v1127_v22 = vsel %vm514_vm0, %v1065_v37, 0.0  ;;  %v1068_v26 = vmul.f32 %v1032_v49, %v1032_v49  ;;  %v1072_v37 = vmul.f32 %v1036_v50, %v1036_v50 }
 0x1c1   :  { %v1073_v49 = vmul.f32 %v1037_v41, %v1037_v41 }
 0x1c2   :  { %v1118_v34 = vadd.f32 %v1117_v6, %v1116_v42  ;;  %v1129_v42 = vsel %vm514_vm0, %v1066_v4, 0.0  ;;  %v1069_v6 = vmul.f32 %v1033_v52, %v1033_v52 }
 0x1c4   :  { %v1120_v29 = vadd.f32 %v1119_v20, %v1118_v34  ;;  %v1131_v34 = vsel %vm514_vm0, %v1067_v53, 0.0  ;;  %v1070_v20 = vmul.f32 %v1034_v63, %v1034_v63  ;;  %v1143_v53 = vsel %vm514_vm0, %v1073_v49, 0.0 }
 0x1c6   :  { %v1122_v10 = vadd.f32 %v1121_v0, %v1120_v29  ;;  %v1133_v29 = vsel %vm514_vm0, %v1068_v26, 0.0  ;;  %v1071_v0 = vmul.f32 %v1035_v30, %v1035_v30 }
 0x1c8   :  { %v1124_v58 = vadd.f32 %v1123_v39, %v1122_v10  ;;  %v1135_v10 = vsel %vm514_vm0, %v1069_v6, 0.0  ;;  %v1137_v39 = vsel %vm514_vm0, %v1070_v20, 0.0  ;;  %v1139_v4 = vsel %vm514_vm0, %v1071_v0, 0.0  ;;  %v1152_v20 = vld [vmem:[%s3068_s3] sm:$0x1] }
 0x1ca   :  { %v1126_v45 = vadd.f32 %v1125_v32, %v1124_v58 }
 0x1cc   :  { %v1128_v13 = vadd.f32 %v1127_v22, %v1126_v45  ;;  %v1141_v45 = vsel %vm514_vm0, %v1072_v37, 0.0 }
 0x1ce   :  { %v1130_v15 = vadd.f32 %v1129_v42, %v1128_v13 }
 0x1d0   :  { %v1132_v59 = vadd.f32 %v1131_v34, %v1130_v15 }
 0x1d2   :  { %v1134_v38 = vadd.f32 %v1133_v29, %v1132_v59  ;;  %v1160_v59 = vlaneseq }
 0x1d4   :  { %v1136_v28 = vadd.f32 %v1135_v10, %v1134_v38  ;;  %v1161_v29 = vshrl.u32 %v1160_v59, 7  ;;  %v1156_v10 = vld [vmem:[%s3069_s4] sm:$0x1] }
 0x1d6   :  { %v1138_v58 = vadd.f32 %v1137_v39, %v1136_v28  ;;  %v1162_v41 = vsub.s32 0, %v1161_v29 }
 0x1d8   :  { %v1140_v32 = vadd.f32 %v1139_v4, %v1138_v58 }
 0x1da   :  { %v1142_v52 = vadd.f32 %v1141_v45, %v1140_v32 }
 0x1dc   :  { %v1144_v22 = vadd.f32 %v1143_v53, %v1142_v52 }
 0x1de   :  { %v1145_v13 = vrot.slane %v1144_v22, 4 }
 0x1e0   :  { %v1146_v63 = vadd.f32 %v1145_v13, %v1144_v22 }
 0x1e2   :  { %v1147_v26 = vrot.slane %v1146_v63, 2 }
 0x1e4   :  { %v1148_v42 = vadd.f32 %v1147_v26, %v1146_v63 }
 0x1e6   :  { %v1149_v15 = vrot.slane %v1148_v42, 1 }
 0x1e8   :  { %v1150_v30 = vadd.f32 %v1149_v15, %v1148_v42 }
 0x1ea   :  { %v1151_v6 = vmul.f32 0.0034722222, %v1150_v30 }
 0x1ec   :  { %v1153_v34 = vadd.f32 1e-05, %v1151_v6 }
 0x1ee   :  { %1882 = vrsqrt.f32 %v1153_v34 }
 0x1fb   :  { %v1883_v50 = vpop.eup %1882 }
 0x1fc   :  { %v1155_v38 = vmul.f32 %v1883_v50, %v1152_v20 }
 0x1fe   :  { %v1157_v0 = vmul.f32 %v1155_v38, %v2396_v25  ;;  %v1163_v28 = vrot.slane %v1155_v38, %v1162_v41 }
 0x200   :  { %v1158_v37 = vsub.f32 %v1156_v10, %v1157_v0  ;;  %v1165_v39 = vmul.f32 %v1163_v28, %v2205_v51  ;;  %v1166_v58 = vmul.f32 %v1163_v28, %v2210_v56  ;;  %v1167_v49 = vmul.f32 %v1163_v28, %v2208_v55 }
 0x201   :  { %v1168_v4 = vmul.f32 %v1163_v28, %v2215_v61  ;;  %v1169_v32 = vmul.f32 %v1163_v28, %v2221_v3  ;;  %v1170_v45 = vmul.f32 %v1163_v28, %v2232_v19  ;;  %v1171_v25 = vmul.f32 %v1163_v28, %v2228_v16 }
 0x202   :  { %v1172_v52 = vmul.f32 %v1163_v28, %v2234_v24  ;;  %v1173_v53 = vmul.f32 %v1163_v28, %v2244_v40  ;;  %v1174_v22 = vmul.f32 %v1163_v28, %v2246_v46  ;;  %v1175_v51 = vmul.f32 %v1163_v28, %v2253_v60 }
 0x203   :  { %v1176_v56 = vmul.f32 %v1163_v28, %v2258_v7  ;;  %v1177_v55 = vmul.f32 %v1163_v28, %v2264_v5  ;;  %v1178_v61 = vmul.f32 %v1163_v28, %v2266_v27  ;;  %v1179_v3 = vmul.f32 %v1163_v28, %v2273_v43 }
 0x204   :  { %v1180_v19 = vmul.f32 %v1163_v28, %v2280_v47  ;;  %v1181_v16 = vmul.f32 %v1163_v28, %v2288_v57  ;;  %v1182_v24 = vmul.f32 %v1163_v28, %v2291_v17  ;;  %v1183_v40 = vmul.f32 %v1163_v28, %v2296_v23 }
 0x205   :  { %v1184_v46 = vmul.f32 %v1163_v28, %v2301_v33  ;;  %v1185_v60 = vmul.f32 %v1163_v28, %v2306_v44  ;;  %v1186_v7 = vmul.f32 %v1163_v28, %v2311_v54  ;;  %v1187_v5 = vmul.f32 %v1163_v28, %v2316_v1 }
 0x206   :  { %v1205_v13 = vrot.slane %v1158_v37, %v1162_v41  ;;  %v1188_v27 = vmul.f32 %v1163_v28, %v2321_v2  ;;  %v1189_v43 = vmul.f32 %v1163_v28, %v2325_v31  ;;  %v1190_v47 = vmul.f32 %v1163_v28, %v2330_v36 }
 0x207   :  { %v1191_v57 = vmul.f32 %v1163_v28, %v2338_v62  ;;  %v1192_v17 = vmul.f32 %v1163_v28, %v2350_v48  ;;  %v1193_v23 = vmul.f32 %v1163_v28, %v2347_v12  ;;  %v1194_v33 = vmul.f32 %v1163_v28, %v2354_v21 }
 0x208   :  { %v1195_v44 = vmul.f32 %v1163_v28, %v2360_v14  ;;  %v1196_v54 = vmul.f32 %v1163_v28, %v2366_v18  ;;  %v1197_v1 = vmul.f32 %v1163_v28, %v2374_v9  ;;  %v1198_v2 = vmul.f32 %v1163_v28, %v2380_v8 }
 0x209   :  { %v1199_v31 = vmul.f32 %v1163_v28, %v2384_v35  ;;  %v1200_v36 = vmul.f32 %v1163_v28, %v2388_v11  ;;  %v2549_v63 = vadd.f32 %v1205_v13, %v1165_v39  ;;  %v2551_v62 = vadd.f32 %v1205_v13, %v1166_v58 }
 0x20a   :  { %v2553_v48 = vadd.f32 %v1205_v13, %v1167_v49  ;;  %v2555_v12 = vadd.f32 %v1205_v13, %v1168_v4  ;;  %v2557_v21 = vadd.f32 %v1205_v13, %v1169_v32  ;;  %v2559_v14 = vadd.f32 %v1205_v13, %v1170_v45 }
 0x20b   :  { %v2561_v18 = vadd.f32 %v1205_v13, %v1171_v25  ;;  %v2563_v9 = vadd.f32 %v1205_v13, %v1172_v52  ;;  %v2565_v8 = vadd.f32 %v1205_v13, %v1173_v53  ;;  %v2567_v35 = vadd.f32 %v1205_v13, %v1174_v22 }
 0x20c   :  { %v2569_v11 = vadd.f32 %v1205_v13, %v1175_v51  ;;  %v2571_v26 = vadd.f32 %v1205_v13, %v1176_v56  ;;  %v2573_v42 = vadd.f32 %v1205_v13, %v1177_v55  ;;  %v2575_v15 = vadd.f32 %v1205_v13, %v1178_v61 }
 0x20d   :  { %v2577_v30 = vadd.f32 %v1205_v13, %v1179_v3  ;;  %v2579_v6 = vadd.f32 %v1205_v13, %v1180_v19  ;;  %v2581_v34 = vadd.f32 %v1205_v13, %v1181_v16  ;;  %v2583_v59 = vadd.f32 %v1205_v13, %v1182_v24 }
 0x20e   :  { %v2585_v50 = vadd.f32 %v1205_v13, %v1183_v40  ;;  %v2587_v20 = vadd.f32 %v1205_v13, %v1184_v46  ;;  %v2589_v29 = vadd.f32 %v1205_v13, %v1185_v60  ;;  %v2591_v38 = vadd.f32 %v1205_v13, %v1186_v7 }
 0x20f   :  { %v2593_v41 = vadd.f32 %v1205_v13, %v1187_v5  ;;  %v2595_v0 = vadd.f32 %v1205_v13, %v1188_v27  ;;  %v2597_v10 = vadd.f32 %v1205_v13, %v1189_v43  ;;  %v2599_v28 = vadd.f32 %v1205_v13, %v1190_v47 }
 0x210   :  { %v2601_v37 = vadd.f32 %v1205_v13, %v1191_v57  ;;  %v2603_v39 = vadd.f32 %v1205_v13, %v1192_v17  ;;  %v2605_v58 = vadd.f32 %v1205_v13, %v1193_v23  ;;  %v2607_v49 = vadd.f32 %v1205_v13, %v1194_v33 }
 0x211   :  { %v2609_v4 = vadd.f32 %v1205_v13, %v1195_v44  ;;  %v2611_v32 = vadd.f32 %v1205_v13, %v1196_v54  ;;  %v2613_v45 = vadd.f32 %v1205_v13, %v1197_v1  ;;  %v2615_v25 = vadd.f32 %v1205_v13, %v1198_v2 }
 0x212   :  { %vm1243_vm1 = vcmp.gt.f32.partialorder %v2549_v63, 0.0  ;;  %vm1244_vm2 = vcmp.gt.f32.partialorder %v2551_v62, 0.0  ;;  %vm1245_vm3 = vcmp.gt.f32.partialorder %v2553_v48, 0.0  ;;  %vm1246_vm4 = vcmp.gt.f32.partialorder %v2555_v12, 0.0 }
 0x213   :  { %vm1247_vm5 = vcmp.gt.f32.partialorder %v2557_v21, 0.0  ;;  %vm1248_vm6 = vcmp.gt.f32.partialorder %v2559_v14, 0.0  ;;  %vm1249_vm7 = vcmp.gt.f32.partialorder %v2561_v18, 0.0  ;;  %vm1250_vm8 = vcmp.gt.f32.partialorder %v2563_v9, 0.0 }
 0x214   :  { %vm1251_vm9 = vcmp.gt.f32.partialorder %v2565_v8, 0.0  ;;  %v2626_v52 = vadd.f32 %v1205_v13, %v1199_v31  ;;  %v1279_v53 = vmul.f32 0.2, %v2549_v63  ;;  %v1280_v22 = vmul.f32 0.2, %v2551_v62 }
 0x215   :  { %v1281_v51 = vmul.f32 0.2, %v2553_v48  ;;  %v2632_v56 = vadd.f32 %v1205_v13, %v1200_v36  ;;  %vm1254_vm12 = vcmp.gt.f32.partialorder %v2571_v26, 0.0  ;;  %vm1255_vm13 = vcmp.gt.f32.partialorder %v2573_v42, 0.0 }
 0x216   :  { %v1282_v55 = vmul.f32 0.2, %v2555_v12  ;;  %v1283_v61 = vmul.f32 0.2, %v2557_v21  ;;  %v1284_v3 = vmul.f32 0.2, %v2559_v14  ;;  %v2651_v40 = vsel %vm1243_vm1, %v2549_v63, %v1279_v53 }
 0x217   :  { %vm1260_vm11 = vcmp.gt.f32.partialorder %v2583_v59, 0.0  ;;  %v1285_v19 = vmul.f32 0.2, %v2561_v18  ;;  %v1286_v16 = vmul.f32 0.2, %v2563_v9  ;;  %vm1264_vm10 = vcmp.gt.f32.partialorder %v2591_v38, 0.0 }
 0x218   :  { %v1287_v24 = vmul.f32 0.2, %v2565_v8  ;;  %v1288_v46 = vmul.f32 0.2, %v2567_v35  ;;  %v1289_v60 = vmul.f32 0.2, %v2569_v11  ;;  %v2663_v5 = vsel %vm1244_vm2, %v2551_v62, %v1280_v22 }
 0x219   :  { %v1290_v7 = vmul.f32 0.2, %v2571_v26  ;;  %vm1268_vm0 = vcmp.gt.f32.partialorder %v2599_v28, 0.0  ;;  %v1291_v13 = vmul.f32 0.2, %v2573_v42  ;;  %v2675_v47 = vsel %vm1245_vm3, %v2553_v48, %v1281_v51 }
 0x21a   :  { %v1292_v27 = vmul.f32 0.2, %v2575_v15  ;;  %v1293_v43 = vmul.f32 0.2, %v2577_v30  ;;  %vm1272_vm15 = vcmp.gt.f32.partialorder %v2607_v49, 0.0  ;;  %v2687_v33 = vsel %vm1246_vm4, %v2555_v12, %v1282_v55 }
 0x21b   :  { %v1294_v57 = vmul.f32 0.2, %v2579_v6  ;;  %v1295_v17 = vmul.f32 0.2, %v2581_v34  ;;  %v1296_v23 = vmul.f32 0.2, %v2583_v59  ;;  %v2699_v2 = vsel %vm1247_vm5, %v2557_v21, %v1283_v61 }
 0x21c   :  { %vm1274_vm2 = vcmp.gt.f32.partialorder %v2611_v32, 0.0  ;;  %vm1275_vm1 = vcmp.gt.f32.partialorder %v2613_v45, 0.0  ;;  %vm1276_vm14 = vcmp.gt.f32.partialorder %v2615_v25, 0.0  ;;  %v1297_v44 = vmul.f32 0.2, %v2585_v50  ;;  %3071 = vst [vmem:[#allocation2_spill] sm:$0xff] %v2699_v2 }
 0x21d   :  { %v1298_v54 = vmul.f32 0.2, %v2587_v20  ;;  %v1299_v1 = vmul.f32 0.2, %v2589_v29  ;;  %vm1277_vm4 = vcmp.gt.f32.partialorder %v2626_v52, 0.0  ;;  %vm1278_vm3 = vcmp.gt.f32.partialorder %v2632_v56, 0.0 }
 0x21e   :  { %v1300_v31 = vmul.f32 0.2, %v2591_v38  ;;  %v1301_v36 = vmul.f32 0.2, %v2593_v41  ;;  %v1302_v63 = vmul.f32 0.2, %v2595_v0  ;;  %v2709_v62 = vsel %vm1248_vm6, %v2559_v14, %v1284_v3 }
 0x21f   :  { %3072 = vst [vmem:[#allocation3_spill] sm:$0xff] %v2709_v62  ;;  %v1303_v48 = vmul.f32 0.2, %v2597_v10  ;;  %v1304_v12 = vmul.f32 0.2, %v2599_v28  ;;  %v2717_v53 = vsel %vm1249_vm7, %v2561_v18, %v1285_v19  ;;  %v2725_v14 = vsel %vm1250_vm8, %v2563_v9, %v1286_v16 }
 0x220   :  { %v1305_v21 = vmul.f32 0.2, %v2601_v37  ;;  %3073 = vst [vmem:[#allocation4_spill] sm:$0xff] %v2717_v53  ;;  %v1306_v22 = vmul.f32 0.2, %v2603_v39  ;;  %3074 = vst [vmem:[#allocation5_spill] sm:$0xff] %v2725_v14  ;;  %v1323_v18 = vsel %vm1251_vm9, %v2565_v8, %v1287_v24  ;;  %v1326_v14 = vsel %vm1254_vm12, %v2571_v26, %v1290_v7 }
 0x221   :  { %v1307_v51 = vmul.f32 0.2, %v2605_v58  ;;  %v1308_v55 = vmul.f32 0.2, %v2607_v49  ;;  %vm1495_vm5 = vcmask 257024   ;;  %vm3075_vm6 = vcmp.gt.f32.partialorder %v2567_v35, 0.0 }
 0x222   :  { %v1309_v61 = vmul.f32 0.2, %v2609_v4  ;;  %v1310_v3 = vmul.f32 0.2, %v2611_v32  ;;  %v1311_v62 = vmul.f32 0.2, %v2613_v45  ;;  %v1324_v9 = vsel %vm3075_vm6, %v2567_v35, %v1288_v46 }
 0x223   :  { %v1312_v19 = vmul.f32 0.2, %v2615_v25  ;;  %v1313_v53 = vmul.f32 0.2, %v2626_v52  ;;  %v1314_v2 = vmul.f32 0.2, %v2632_v56  ;;  %v1327_v8 = vsel %vm1255_vm13, %v2573_v42, %v1291_v13 }
 0x224   :  { %vm3076_vm7 = vcmp.gt.f32.partialorder %v2569_v11, 0.0  ;;  %vm3077_vm8 = vcmp.gt.f32.partialorder %v2575_v15, 0.0  ;;  %vm3078_vm9 = vcmp.gt.f32.partialorder %v2577_v30, 0.0  ;;  %vm3079_vm6 = vcmp.gt.f32.partialorder %v2579_v6, 0.0 }
 0x225   :  { %v1325_v16 = vsel %vm3076_vm7, %v2569_v11, %v1289_v60  ;;  %v1328_v24 = vsel %vm3077_vm8, %v2575_v15, %v1292_v27  ;;  %v2754_v35 = vsel %vm3078_vm9, %v2577_v30, %v1293_v43  ;;  %v2759_v11 = vsel %vm3079_vm6, %v2579_v6, %v1294_v57  ;;  %v3091_v60 = vld [vmem:[#allocation2_spill] sm:$0xff] }
 0x226   :  { %vm3080_vm12 = vcmp.gt.f32.partialorder %v2581_v34, 0.0  ;;  %v2769_v42 = vsel %vm1260_vm11, %v2583_v59, %v1296_v23  ;;  %vm3081_vm13 = vcmp.gt.f32.partialorder %v2585_v50, 0.0  ;;  %vm3082_vm7 = vcmp.gt.f32.partialorder %v2587_v20, 0.0  ;;  %v3092_v7 = vld [vmem:[#allocation3_spill] sm:$0xff] }
 0x227   :  { %v2764_v26 = vsel %vm3080_vm12, %v2581_v34, %v1295_v17  ;;  %v2774_v15 = vsel %vm3081_vm13, %v2585_v50, %v1297_v44  ;;  %v2779_v30 = vsel %vm3082_vm7, %v2587_v20, %v1298_v54  ;;  %vm3083_vm8 = vcmp.gt.f32.partialorder %v2589_v29, 0.0  ;;  %v3094_v43 = vld [vmem:[#allocation5_spill] sm:$0xff] }
 0x228   :  { %v2784_v6 = vsel %vm3083_vm8, %v2589_v29, %v1299_v1  ;;  %v2789_v34 = vsel %vm1264_vm10, %v2591_v38, %v1300_v31  ;;  %vm3084_vm11 = vcmp.gt.f32.partialorder %v2593_v41, 0.0  ;;  %vm3085_vm9 = vcmp.gt.f32.partialorder %v2595_v0, 0.0 }
 0x229   :  { %v2794_v59 = vsel %vm3084_vm11, %v2593_v41, %v1301_v36  ;;  %v2799_v50 = vsel %vm3085_vm9, %v2595_v0, %v1302_v63  ;;  %vm3086_vm6 = vcmp.gt.f32.partialorder %v2597_v10, 0.0  ;;  %v2809_v29 = vsel %vm1268_vm0, %v2599_v28, %v1304_v12 }
 0x22a   :  { %v2804_v20 = vsel %vm3086_vm6, %v2597_v10, %v1303_v48  ;;  %vm3087_vm10 = vcmp.gt.f32.partialorder %v2601_v37, 0.0  ;;  %vm3088_vm12 = vcmp.gt.f32.partialorder %v2603_v39, 0.0  ;;  %vm3089_vm13 = vcmp.gt.f32.partialorder %v2605_v58, 0.0 }
 0x22b   :  { %v2814_v38 = vsel %vm3087_vm10, %v2601_v37, %v1305_v21  ;;  %v2819_v41 = vsel %vm3088_vm12, %v2603_v39, %v1306_v22  ;;  %v2824_v0 = vsel %vm3089_vm13, %v2605_v58, %v1307_v51  ;;  %v2829_v10 = vsel %vm1272_vm15, %v2607_v49, %v1308_v55 }
 0x22c   :  { %vm3090_vm0 = vcmp.gt.f32.partialorder %v2609_v4, 0.0  ;;  %v2839_v37 = vsel %vm1274_vm2, %v2611_v32, %v1310_v3  ;;  %v2844_v39 = vsel %vm1275_vm1, %v2613_v45, %v1311_v62  ;;  %v2849_v58 = vsel %vm1276_vm14, %v2615_v25, %v1312_v19 }
 0x22d   :  { %v2834_v28 = vsel %vm3090_vm0, %v2609_v4, %v1309_v61  ;;  %v2854_v49 = vsel %vm1277_vm4, %v2626_v52, %v1313_v53  ;;  %v2859_v4 = vsel %vm1278_vm3, %v2632_v56, %v1314_v2  ;;  %v1663_v32 = vpack.c.bf16 %v2651_v40, %v2651_v40  ;;  %v3093_v56 = vld [vmem:[#allocation4_spill] sm:$0xff] }
 0x22e   :  { %v1664_v45 = vpack.c.bf16 %v2663_v5, %v2663_v5  ;;  %v1665_v25 = vpack.c.bf16 %v2675_v47, %v2675_v47  ;;  %v1666_v46 = vpack.c.bf16 %v2687_v33, %v2687_v33  ;;  %v1667_v52 = vpack.c.bf16 %v3091_v60, %v3091_v60 }
 0x22f   :  { %v1668_v13 = vpack.c.bf16 %v3092_v7, %v3092_v7  ;;  %v1669_v27 = vpack.c.bf16 %v3093_v56, %v3093_v56  ;;  %v1670_v40 = vpack.c.bf16 %v3094_v43, %v3094_v43  ;;  %v1671_v57 = vpack.c.bf16 %v1323_v18, %v1323_v18  ;;  %1496 = vst.msk [vmem:[%s3070_s5] sm:$0xf] %vm1495_vm5, %v1663_v32 }
 0x230   :  { %v1672_v5 = vpack.c.bf16 %v1324_v9, %v1324_v9  ;;  %1497 = vst.msk [vmem:[%s3070_s5 + $0x4] sm:$0xf] %vm1495_vm5, %v1664_v45  ;;  %v1673_v47 = vpack.c.bf16 %v1325_v16, %v1325_v16  ;;  %v1674_v17 = vpack.c.bf16 %v1326_v14, %v1326_v14  ;;  %v1675_v23 = vpack.c.bf16 %v1327_v8, %v1327_v8 }
 0x231   :  { %v1676_v33 = vpack.c.bf16 %v1328_v24, %v1328_v24  ;;  %1498 = vst.msk [vmem:[%s3070_s5 + $0x8] sm:$0xf] %vm1495_vm5, %v1665_v25  ;;  %1499 = vst.msk [vmem:[%s3070_s5 + $0xc] sm:$0xf] %vm1495_vm5, %v1666_v46  ;;  %v1677_v44 = vpack.c.bf16 %v2754_v35, %v2754_v35  ;;  %v1678_v54 = vpack.c.bf16 %v2759_v11, %v2759_v11 }
 0x232   :  { %1500 = vst.msk [vmem:[%s3070_s5 + $0x10] sm:$0xf] %vm1495_vm5, %v1667_v52  ;;  %1501 = vst.msk [vmem:[%s3070_s5 + $0x14] sm:$0xf] %vm1495_vm5, %v1668_v13  ;;  %v1679_v1 = vpack.c.bf16 %v2764_v26, %v2764_v26  ;;  %v1680_v2 = vpack.c.bf16 %v2769_v42, %v2769_v42  ;;  %v1681_v31 = vpack.c.bf16 %v2774_v15, %v2774_v15 }
 0x233   :  { %1502 = vst.msk [vmem:[%s3070_s5 + $0x18] sm:$0xf] %vm1495_vm5, %v1669_v27  ;;  %1503 = vst.msk [vmem:[%s3070_s5 + $0x1c] sm:$0xf] %vm1495_vm5, %v1670_v40  ;;  %v1682_v36 = vpack.c.bf16 %v2779_v30, %v2779_v30  ;;  %v1683_v63 = vpack.c.bf16 %v2784_v6, %v2784_v6  ;;  %v1684_v62 = vpack.c.bf16 %v2789_v34, %v2789_v34 }
 0x234   :  { %1504 = vst.msk [vmem:[%s3070_s5 + $0x20] sm:$0xf] %vm1495_vm5, %v1671_v57  ;;  %1505 = vst.msk [vmem:[%s3070_s5 + $0x24] sm:$0xf] %vm1495_vm5, %v1672_v5  ;;  %v1685_v48 = vpack.c.bf16 %v2794_v59, %v2794_v59  ;;  %v1686_v12 = vpack.c.bf16 %v2799_v50, %v2799_v50  ;;  %v1687_v21 = vpack.c.bf16 %v2804_v20, %v2804_v20 }
 0x235   :  { %1506 = vst.msk [vmem:[%s3070_s5 + $0x28] sm:$0xf] %vm1495_vm5, %v1673_v47  ;;  %1507 = vst.msk [vmem:[%s3070_s5 + $0x2c] sm:$0xf] %vm1495_vm5, %v1674_v17  ;;  %v1688_v53 = vpack.c.bf16 %v2809_v29, %v2809_v29  ;;  %v1689_v22 = vpack.c.bf16 %v2814_v38, %v2814_v38  ;;  %v1690_v51 = vpack.c.bf16 %v2819_v41, %v2819_v41 }
 0x236   :  { %1508 = vst.msk [vmem:[%s3070_s5 + $0x30] sm:$0xf] %vm1495_vm5, %v1675_v23  ;;  %1509 = vst.msk [vmem:[%s3070_s5 + $0x34] sm:$0xf] %vm1495_vm5, %v1676_v33  ;;  %v1691_v55 = vpack.c.bf16 %v2824_v0, %v2824_v0  ;;  %v1692_v14 = vpack.c.bf16 %v2829_v10, %v2829_v10  ;;  %v1693_v61 = vpack.c.bf16 %v2834_v28, %v2834_v28 }
 0x237   :  { %1510 = vst.msk [vmem:[%s3070_s5 + $0x38] sm:$0xf] %vm1495_vm5, %v1677_v44  ;;  %1511 = vst.msk [vmem:[%s3070_s5 + $0x3c] sm:$0xf] %vm1495_vm5, %v1678_v54  ;;  %v1694_v3 = vpack.c.bf16 %v2839_v37, %v2839_v37  ;;  %v1695_v18 = vpack.c.bf16 %v2844_v39, %v2844_v39  ;;  %v1696_v19 = vpack.c.bf16 %v2849_v58, %v2849_v58 }
 0x238   :  { %1512 = vst.msk [vmem:[%s3070_s5 + $0x40] sm:$0xf] %vm1495_vm5, %v1679_v1  ;;  %1513 = vst.msk [vmem:[%s3070_s5 + $0x44] sm:$0xf] %vm1495_vm5, %v1680_v2  ;;  %v1697_v9 = vpack.c.bf16 %v2854_v49, %v2854_v49  ;;  %v1698_v16 = vpack.c.bf16 %v2859_v4, %v2859_v4 }
 0x239   :  { %1514 = vst.msk [vmem:[%s3070_s5 + $0x48] sm:$0xf] %vm1495_vm5, %v1681_v31  ;;  %1515 = vst.msk [vmem:[%s3070_s5 + $0x4c] sm:$0xf] %vm1495_vm5, %v1682_v36 }
 0x23a   :  { %1516 = vst.msk [vmem:[%s3070_s5 + $0x50] sm:$0xf] %vm1495_vm5, %v1683_v63  ;;  %1517 = vst.msk [vmem:[%s3070_s5 + $0x54] sm:$0xf] %vm1495_vm5, %v1684_v62 }
 0x23b   :  { %1518 = vst.msk [vmem:[%s3070_s5 + $0x58] sm:$0xf] %vm1495_vm5, %v1685_v48  ;;  %1519 = vst.msk [vmem:[%s3070_s5 + $0x5c] sm:$0xf] %vm1495_vm5, %v1686_v12 }
 0x23c   :  { %1520 = vst.msk [vmem:[%s3070_s5 + $0x60] sm:$0xf] %vm1495_vm5, %v1687_v21  ;;  %1521 = vst.msk [vmem:[%s3070_s5 + $0x64] sm:$0xf] %vm1495_vm5, %v1688_v53 }
 0x23d   :  { %1522 = vst.msk [vmem:[%s3070_s5 + $0x68] sm:$0xf] %vm1495_vm5, %v1689_v22  ;;  %1523 = vst.msk [vmem:[%s3070_s5 + $0x6c] sm:$0xf] %vm1495_vm5, %v1690_v51 }
 0x23e   :  { %1524 = vst.msk [vmem:[%s3070_s5 + $0x70] sm:$0xf] %vm1495_vm5, %v1691_v55  ;;  %1525 = vst.msk [vmem:[%s3070_s5 + $0x74] sm:$0xf] %vm1495_vm5, %v1692_v14 }
 0x23f   :  { %1526 = vst.msk [vmem:[%s3070_s5 + $0x78] sm:$0xf] %vm1495_vm5, %v1693_v61  ;;  %1527 = vst.msk [vmem:[%s3070_s5 + $0x7c] sm:$0xf] %vm1495_vm5, %v1694_v3 }
 0x240   :  { %1528 = vst.msk [vmem:[%s3070_s5 + $0x80] sm:$0xf] %vm1495_vm5, %v1695_v18  ;;  %1529 = vst.msk [vmem:[%s3070_s5 + $0x84] sm:$0xf] %vm1495_vm5, %v1696_v19 }
 0x241   :  { %1530 = vst.msk [vmem:[%s3070_s5 + $0x88] sm:$0xf] %vm1495_vm5, %v1697_v9  ;;  %1531 = vst.msk [vmem:[%s3070_s5 + $0x8c] sm:$0xf] %vm1495_vm5, %v1698_v16 }

// kernel: _lambda_.7
= control target key start
LH: loop header
LB: loop body
LE: loop exit
PB: predicated region body
PF: predicated region fallthrough
CT: control target
= control target key end

     0   :  { %v1521_v1 = vmov 0.0   ;;  %vm1522_vm0 = vmmov 0   ;;  %vm412_vm1 = vcmask 261120   ;;  %vm1132_vm10 = vcmask 257024   ;;  %s2300_s1 = inlined_call_operand.vmem [shape: bf16[288,32], index: 1, kind: input, shape index: {}]   ;;  %s2301_s0 = inlined_call_operand.vmem [shape: bf16[200,288], index: 0, kind: input, shape index: {}]   ;;  %s2302_s2 = inlined_call_operand.vmem [shape: f32[1,32], index: 2, kind: input, shape index: {}]   ;;  %s2303_s3 = inlined_call_operand.vmem [shape: f32[1,32], index: 3, kind: input, shape index: {}]   ;;  %s2304_s4 = inlined_call_operand.vmem [shape: f32[1,32], index: 4, kind: input, shape index: {}]   ;;  %s2305_s5 = inlined_call_operand.vmem [shape: bf16[200,32], index: 5, kind: output, shape index: {}]  }
   0x1   :  { %v1450_v0 = vld [vmem:[%s2300_s1 + $0x78] sm:$0xff]   ;;  %1392 = vmatprep.subr.bf16.mxu1 %v1521_v1  ;;  %1396 = vmatprep.mubr.msk.bf16.mxu1 %vm1522_vm0, %v1521_v1  ;;  %v1452_v3 = vld [vmem:[%s2300_s1 + $0x70] sm:$0xff]   ;;  %v1454_v5 = vld [vmem:[%s2300_s1 + $0x68] sm:$0xff]  }
   0x2   :  { %v1451_v2 = vld [vmem:[%s2300_s1 + $0x38] sm:$0xff]   ;;  %1283 = vmatprep.subr.bf16.mxu0 %v1450_v0  ;;  %v1453_v4 = vld [vmem:[%s2300_s1 + $0x30] sm:$0xff]   ;;  %v1455_v6 = vld [vmem:[%s2300_s1 + $0x28] sm:$0xff]  }
   0x3   :  { %1284 = vmatpush3.bf16.msra.mxu0 %v1451_v2  ;;  %v1456_v7 = vld [vmem:[%s2300_s1 + $0x60] sm:$0xff]   ;;  %v1458_v9 = vld [vmem:[%s2300_s1 + $0x58] sm:$0xff]   ;;  %v1464_v10 = vld [vmem:[%s2300_s1 + $0x88] sm:$0xff]  }
   0x4   :  { %1285 = vmatprep.subr.bf16.mxu0 %v1452_v3  ;;  %v1457_v8 = vld [vmem:[%s2300_s1 + $0x20] sm:$0xff]   ;;  %v1459_v11 = vld [vmem:[%s2300_s1 + $0x18] sm:$0xff]   ;;  %v1460_v12 = vld [vmem:[%s2300_s1 + $0x50] sm:$0xff]   ;;  %1393 = vmatpush3.bf16.msra.mxu1 %v1464_v10 }
   0x5   :  { %v1461_v13 = vld [vmem:[%s2300_s1 + $0x10] sm:$0xff]   ;;  %1394 = vmatprep.subr.bf16.mxu1 %v1521_v1  ;;  %v1467_v14 = vld [vmem:[%s2300_s1 + $0x80] sm:$0xff]   ;;  %v1462_v15 = vld [vmem:[%s2300_s1 + $0x48] sm:$0xff]  }
   0x6   :  { %v1470_v16 = vld [vmem:[%s2301_s0 + $0x4] ss:$12 sps:$4 sm:$0xff]   ;;  %v1471_v17 = vld [vmem:[%s2301_s0 + $0x8] ss:$12 sps:$4 sm:$0xff]   ;;  %v1475_v21 = vld [vmem:[%s2301_s0 + $0x20] ss:$12 sps:$4 sm:$0xff]  }
   0x7   :  { %1286 = vmatpush3.bf16.msra.mxu0 %v1453_v4  ;;  %484 = vmatprep.mubr.bf16.mxu0 %v1470_v16  ;;  %v1463_v18 = vld [vmem:[%s2300_s1 + $0x8] sm:$0xff]   ;;  %v1465_v19 = vld [vmem:[%s2300_s1 + $0x40] sm:$0xff]   ;;  %v1483_v27 = vld [vmem:[%s2301_s0 + $0x50] ss:$12 sps:$4 sm:$0xff]  }
   0x8   :  { %1287 = vmatprep.subr.bf16.mxu0 %v1454_v5  ;;  %1395 = vmatpush3.bf16.msra.mxu1 %v1467_v14  ;;  %v1466_v20 = vld [vmem:[%s2300_s1] sm:$0xff]   ;;  %v1472_v23 = vld [vmem:[%s2301_s0 + $0x1c] ss:$12 sps:$4 sm:$0xff]   ;;  %v1480_v29 = vld [vmem:[%s2301_s0 + $0x4c] ss:$12 sps:$4 sm:$0xff]  }
   0x9   :  { %v1468_v22 = vld [vmem:[%s2301_s0] ss:$12 sps:$4 sm:$0xff]   ;;  %v1479_v24 = vld [vmem:[%s2301_s0 + $0x38] ss:$12 sps:$4 sm:$0xff]   ;;  %v1478_v28 = vld [vmem:[%s2301_s0 + $0x30] ss:$12 sps:$4 sm:$0xff]  }
   0xa   :  { %v1474_v25 = vld [vmem:[%s2301_s0 + $0x18] ss:$12 sps:$4 sm:$0xff]   ;;  %v1476_v26 = vld [vmem:[%s2301_s0 + $0x34] ss:$12 sps:$4 sm:$0xff]   ;;  %v1488_v35 = vld [vmem:[%s2301_s0 + $0x7c] ss:$12 sps:$4 sm:$0xff]  }
   0xb   :  { %1288 = vmatpush3.bf16.msra.mxu0 %v1455_v6  ;;  %1397 = vmatmul.mubr.msk.bf16.vlgmr.msra.gmra.mxu1 %vm412_vm1, %v1471_v17  ;;  %v1487_v30 = vld [vmem:[%s2301_s0 + $0x68] ss:$12 sps:$4 sm:$0xff]   ;;  %v1484_v32 = vld [vmem:[%s2301_s0 + $0x64] ss:$12 sps:$4 sm:$0xff]   ;;  %v1491_v33 = vld [vmem:[%s2301_s0 + $0x80] ss:$12 sps:$4 sm:$0xff]  }
   0xc   :  { %1289 = vmatprep.subr.bf16.mxu0 %v1456_v7  ;;  %1400 = vmatprep.mubr.msk.bf16.mxu1 %vm1522_vm0, %v1521_v1  ;;  %v1482_v31 = vld [vmem:[%s2301_s0 + $0x48] ss:$12 sps:$4 sm:$0xff]   ;;  %v1486_v34 = vld [vmem:[%s2301_s0 + $0x60] ss:$12 sps:$4 sm:$0xff]   ;;  %v1495_v36 = vld [vmem:[%s2301_s0 + $0x98] ss:$12 sps:$4 sm:$0xff]  }
   0xd   :  { %v1490_v37 = vld [vmem:[%s2301_s0 + $0x78] ss:$12 sps:$4 sm:$0xff]   ;;  %v1492_v38 = vld [vmem:[%s2301_s0 + $0x94] ss:$12 sps:$4 sm:$0xff]   ;;  %v1499_v39 = vld [vmem:[%s2301_s0 + $0xb0] ss:$12 sps:$4 sm:$0xff]  }
   0xe   :  { %v1494_v40 = vld [vmem:[%s2301_s0 + $0x90] ss:$12 sps:$4 sm:$0xff]   ;;  %v1496_v41 = vld [vmem:[%s2301_s0 + $0xac] ss:$12 sps:$4 sm:$0xff]   ;;  %v1503_v42 = vld [vmem:[%s2301_s0 + $0xc8] ss:$12 sps:$4 sm:$0xff]  }
   0xf   :  { %1290 = vmatpush3.bf16.msra.mxu0 %v1457_v8  ;;  %v1498_v43 = vld [vmem:[%s2301_s0 + $0xa8] ss:$12 sps:$4 sm:$0xff]   ;;  %v1500_v44 = vld [vmem:[%s2301_s0 + $0xc4] ss:$12 sps:$4 sm:$0xff]   ;;  %v1507_v45 = vld [vmem:[%s2301_s0 + $0xe0] ss:$12 sps:$4 sm:$0xff]  }
  0x10   :  { %1291 = vmatprep.subr.bf16.mxu0 %v1458_v9  ;;  %v1502_v46 = vld [vmem:[%s2301_s0 + $0xc0] ss:$12 sps:$4 sm:$0xff]   ;;  %v1504_v47 = vld [vmem:[%s2301_s0 + $0xdc] ss:$12 sps:$4 sm:$0xff]   ;;  %v1511_v48 = vld [vmem:[%s2301_s0 + $0xf8] ss:$12 sps:$4 sm:$0xff]  }
  0x11   :  { %v1506_v49 = vld [vmem:[%s2301_s0 + $0xd8] ss:$12 sps:$4 sm:$0xff]   ;;  %v1508_v50 = vld [vmem:[%s2301_s0 + $0xf4] ss:$12 sps:$4 sm:$0xff]   ;;  %v1515_v51 = vld [vmem:[%s2301_s0 + $0x110] ss:$12 sps:$4 sm:$0xff]  }
  0x12   :  { %v1510_v52 = vld [vmem:[%s2301_s0 + $0xf0] ss:$12 sps:$4 sm:$0xff]   ;;  %v1512_v53 = vld [vmem:[%s2301_s0 + $0x10c] ss:$12 sps:$4 sm:$0xff]   ;;  %v1518_v54 = vld [vmem:[%s2301_s0 + $0x128] ss:$0 sps:$4 sm:$0xff]  }
  0x13   :  { %1292 = vmatpush3.bf16.msra.mxu0 %v1459_v11  ;;  %1401 = vmatmul.mubr.msk.bf16.gmra.mxu1 %vm412_vm1, %v1475_v21  ;;  %v69_v55 = vld [vmem:[%s2301_s0 + $0x120] sm:$0xff]  ;;  %v1514_v56 = vld [vmem:[%s2301_s0 + $0x108] ss:$12 sps:$4 sm:$0xff]  }
  0x14   :  { %1293 = vmatprep.subr.bf16.mxu0 %v1460_v12  ;;  %1404 = vmatprep.mubr.msk.bf16.mxu1 %vm1522_vm0, %v1521_v1  ;;  %v1200_v57 = vcombine.high %v69_v55, %v69_v55  ;;  %v1199_v58 = vcombine.low %v69_v55, %v69_v55  ;;  %v1765_v3 = vld [vmem:[%s2302_s2] ss:$0 sm:$0xff] }
  0x17   :  { %1294 = vmatpush3.bf16.msra.mxu0 %v1461_v13 }
  0x18   :  { %1295 = vmatprep.subr.bf16.mxu0 %v1462_v15 }
  0x1b   :  { %1296 = vmatpush3.bf16.msra.mxu0 %v1463_v18  ;;  %1405 = vmatmul.mubr.msk.bf16.gmra.mxu1 %vm412_vm1, %v1479_v24 }
  0x1c   :  { %1297 = vmatprep.subr.bf16.mxu0 %v1465_v19  ;;  %1408 = vmatprep.mubr.msk.bf16.mxu1 %vm1522_vm0, %v1521_v1 }
  0x1f   :  { %1298 = vmatpush3.bf16.msra.mxu0 %v1466_v20 }
  0x22   :  { %485 = vmatmul.mubr.bf16.vlgmr.msra.gmra.mxu0 %v1468_v22 }
  0x23   :  { %492 = vmatprep.mubr.bf16.mxu0 %v1472_v23  ;;  %1409 = vmatmul.mubr.msk.bf16.gmra.mxu1 %vm412_vm1, %v1483_v27 }
  0x24   :  { %1412 = vmatprep.mubr.msk.bf16.mxu1 %vm1522_vm0, %v1521_v1 }
  0x2a   :  { %493 = vmatmul.mubr.bf16.gmra.mxu0 %v1474_v25 }
  0x2b   :  { %500 = vmatprep.mubr.bf16.mxu0 %v1476_v26  ;;  %1413 = vmatmul.mubr.msk.bf16.gmra.mxu1 %vm412_vm1, %v1487_v30 }
  0x2c   :  { %1416 = vmatprep.mubr.msk.bf16.mxu1 %vm1522_vm0, %v1521_v1 }
  0x32   :  { %501 = vmatmul.mubr.bf16.gmra.mxu0 %v1478_v28 }
  0x33   :  { %508 = vmatprep.mubr.bf16.mxu0 %v1480_v29  ;;  %1417 = vmatmul.mubr.msk.bf16.gmra.mxu1 %vm412_vm1, %v1491_v33 }
  0x34   :  { %1420 = vmatprep.mubr.msk.bf16.mxu1 %vm1522_vm0, %v1521_v1 }
  0x3a   :  { %509 = vmatmul.mubr.bf16.gmra.mxu0 %v1482_v31 }
  0x3b   :  { %516 = vmatprep.mubr.bf16.mxu0 %v1484_v32  ;;  %1421 = vmatmul.mubr.msk.bf16.gmra.mxu1 %vm412_vm1, %v1495_v36 }
  0x3c   :  { %1424 = vmatprep.mubr.msk.bf16.mxu1 %vm1522_vm0, %v1521_v1 }
  0x42   :  { %517 = vmatmul.mubr.bf16.gmra.mxu0 %v1486_v34 }
  0x43   :  { %524 = vmatprep.mubr.bf16.mxu0 %v1488_v35  ;;  %1425 = vmatmul.mubr.msk.bf16.gmra.mxu1 %vm412_vm1, %v1499_v39 }
  0x44   :  { %1428 = vmatprep.mubr.msk.bf16.mxu1 %vm1522_vm0, %v1521_v1 }
  0x4a   :  { %525 = vmatmul.mubr.bf16.gmra.mxu0 %v1490_v37 }
  0x4b   :  { %532 = vmatprep.mubr.bf16.mxu0 %v1492_v38  ;;  %1429 = vmatmul.mubr.msk.bf16.gmra.mxu1 %vm412_vm1, %v1503_v42 }
  0x4c   :  { %1432 = vmatprep.mubr.msk.bf16.mxu1 %vm1522_vm0, %v1521_v1 }
  0x52   :  { %533 = vmatmul.mubr.bf16.gmra.mxu0 %v1494_v40 }
  0x53   :  { %540 = vmatprep.mubr.bf16.mxu0 %v1496_v41  ;;  %1433 = vmatmul.mubr.msk.bf16.gmra.mxu1 %vm412_vm1, %v1507_v45 }
  0x54   :  { %1436 = vmatprep.mubr.msk.bf16.mxu1 %vm1522_vm0, %v1521_v1 }
  0x5a   :  { %541 = vmatmul.mubr.bf16.gmra.mxu0 %v1498_v43 }
  0x5b   :  { %548 = vmatprep.mubr.bf16.mxu0 %v1500_v44  ;;  %1437 = vmatmul.mubr.msk.bf16.gmra.mxu1 %vm412_vm1, %v1511_v48 }
  0x5c   :  { %1440 = vmatprep.mubr.msk.bf16.mxu1 %vm1522_vm0, %v1521_v1 }
  0x62   :  { %549 = vmatmul.mubr.bf16.gmra.mxu0 %v1502_v46 }
  0x63   :  { %556 = vmatprep.mubr.bf16.mxu0 %v1504_v47  ;;  %1441 = vmatmul.mubr.msk.bf16.gmra.mxu1 %vm412_vm1, %v1515_v51 }
  0x64   :  { %1444 = vmatprep.mubr.msk.bf16.mxu1 %vm1522_vm0, %v1521_v1 }
  0x6a   :  { %557 = vmatmul.mubr.bf16.gmra.mxu0 %v1506_v49 }
  0x6b   :  { %564 = vmatprep.mubr.bf16.mxu0 %v1508_v50  ;;  %1445 = vmatmul.mubr.msk.bf16.gmra.mxu1 %vm412_vm1, %v1518_v54 }
  0x72   :  { %565 = vmatmul.mubr.bf16.gmra.mxu0 %v1510_v52 }
  0x73   :  { %572 = vmatprep.mubr.bf16.mxu0 %v1512_v53 }
  0x7a   :  { %573 = vmatmul.mubr.bf16.gmra.mxu0 %v1514_v56 }
  0x7b   :  { %580 = vmatprep.mubr.bf16.mxu0 %v1200_v57 }
  0x82   :  { %581 = vmatmul.mubr.bf16.gmra.mxu0 %v1199_v58 }
  0xcb   :  { %v622_v59 = vpop.f32.mrf.mxu1 }
  0xcd   :  { %v1398_v60 = vpop.f32.mrf.mxu1 }
  0xcf   :  { %v625_v61 = vpop.f32.mrf.mxu1 }
  0xd1   :  { %v1399_v62 = vpop.f32.mrf.mxu1 }
  0xd3   :  { %v630_v63 = vpop.f32.mrf.mxu1 }
  0xd5   :  { %v1402_v0 = vpop.f32.mrf.mxu1 }
  0xd7   :  { %v633_v2 = vpop.f32.mrf.mxu1 }
  0xd9   :  { %v1403_v6 = vpop.f32.mrf.mxu1 }
  0xdb   :  { %v638_v9 = vpop.f32.mrf.mxu1 }
  0xdd   :  { %v1406_v13 = vpop.f32.mrf.mxu1 }
  0xdf   :  { %v641_v16 = vpop.f32.mrf.mxu1 }
  0xe1   :  { %v1407_v20 = vpop.f32.mrf.mxu1 }
  0xe2   :  { %v1299_v1 = vpop.f32.mrf.mxu0 }
  0xe3   :  { %v646_v23 = vpop.f32.mrf.mxu1 }
  0xe4   :  { %v1300_v4 = vpop.f32.mrf.mxu0 }
  0xe5   :  { %v1301_v5 = vadd.f32 %v1300_v4, %v1299_v1  ;;  %v1410_v27 = vpop.f32.mrf.mxu1 }
  0xe6   :  { %v1302_v7 = vpop.f32.mrf.mxu0 }
  0xe7   :  { %v487_v8 = vadd.f32 %v1301_v5, %v1765_v3  ;;  %v649_v30 = vpop.f32.mrf.mxu1 }
  0xe8   :  { %v1303_v10 = vpop.f32.mrf.mxu0 }
  0xe9   :  { %v1768_v11 = vadd.f32 %v622_v59, %v487_v8  ;;  %v1304_v12 = vadd.f32 %v1303_v10, %v1302_v7  ;;  %v1411_v34 = vpop.f32.mrf.mxu1 }
  0xea   :  { %v1305_v14 = vpop.f32.mrf.mxu0 }
  0xeb   :  { %v490_v15 = vadd.f32 %v1304_v12, %v1765_v3  ;;  %v654_v37 = vpop.f32.mrf.mxu1 }
  0xec   :  { %v1306_v17 = vpop.f32.mrf.mxu0 }
  0xed   :  { %v1771_v18 = vadd.f32 %v625_v61, %v490_v15  ;;  %v1307_v19 = vadd.f32 %v1306_v17, %v1305_v14  ;;  %v1414_v41 = vpop.f32.mrf.mxu1 }
  0xee   :  { %v1308_v21 = vpop.f32.mrf.mxu0 }
  0xef   :  { %v495_v22 = vadd.f32 %v1307_v19, %v1765_v3  ;;  %v657_v44 = vpop.f32.mrf.mxu1 }
  0xf0   :  { %v1309_v24 = vpop.f32.mrf.mxu0 }
  0xf1   :  { %v1774_v25 = vadd.f32 %v630_v63, %v495_v22  ;;  %v1310_v26 = vadd.f32 %v1309_v24, %v1308_v21  ;;  %v1415_v48 = vpop.f32.mrf.mxu1 }
  0xf2   :  { %v1311_v28 = vpop.f32.mrf.mxu0 }
  0xf3   :  { %v498_v29 = vadd.f32 %v1310_v26, %v1765_v3  ;;  %v1786_v51 = vpop.f32.mrf.mxu1  ;;  %v727_v34 = vsel %vm412_vm1, %v1774_v25, 0.0 }
  0xf4   :  { %v1312_v31 = vpop.f32.mrf.mxu0 }
  0xf5   :  { %v1777_v32 = vadd.f32 %v633_v2, %v498_v29  ;;  %v1313_v33 = vadd.f32 %v1312_v31, %v1311_v28  ;;  %v1418_v55 = vpop.f32.mrf.mxu1  ;;  %v725_v29 = vsel %vm412_vm1, %v1771_v18, 0.0 }
  0xf6   :  { %v1314_v35 = vpop.f32.mrf.mxu0 }
  0xf7   :  { %v503_v36 = vadd.f32 %v1313_v33, %v1765_v3  ;;  %v1791_v58 = vpop.f32.mrf.mxu1  ;;  %v724_v33 = vsel %vm412_vm1, %v1768_v11, 0.0 }
  0xf8   :  { %v1315_v38 = vpop.f32.mrf.mxu0 }
  0xf9   :  { %v1780_v39 = vadd.f32 %v638_v9, %v503_v36  ;;  %v1316_v40 = vadd.f32 %v1315_v38, %v1314_v35  ;;  %v1419_v62 = vpop.f32.mrf.mxu1  ;;  %v726_v36 = vadd.f32 %v725_v29, %v724_v33  ;;  %v729_v38 = vsel %vm412_vm1, %v1777_v32, 0.0 }
  0xfa   :  { %v1317_v42 = vpop.f32.mrf.mxu0 }
  0xfb   :  { %v506_v43 = vadd.f32 %v1316_v40, %v1765_v3  ;;  %v1796_v1 = vpop.f32.mrf.mxu1  ;;  %v728_v41 = vadd.f32 %v727_v34, %v726_v36 }
  0xfc   :  { %v1318_v45 = vpop.f32.mrf.mxu0 }
  0xfd   :  { %v1783_v46 = vadd.f32 %v641_v16, %v506_v43  ;;  %v1319_v47 = vadd.f32 %v1318_v45, %v1317_v42  ;;  %v1422_v6 = vpop.f32.mrf.mxu1  ;;  %v731_v43 = vsel %vm412_vm1, %v1780_v39, 0.0 }
  0xfe   :  { %v1320_v49 = vpop.f32.mrf.mxu0 }
  0xff   :  { %v511_v50 = vadd.f32 %v1319_v47, %v1765_v3  ;;  %v1801_v9 = vpop.f32.mrf.mxu1  ;;  %v730_v47 = vadd.f32 %v729_v38, %v728_v41 }
 0x100   :  { %v1321_v52 = vpop.f32.mrf.mxu0 }
 0x101   :  { %v1788_v53 = vadd.f32 %v646_v23, %v511_v50  ;;  %v1322_v54 = vadd.f32 %v1321_v52, %v1320_v49  ;;  %v1423_v13 = vpop.f32.mrf.mxu1  ;;  %v733_v49 = vsel %vm412_vm1, %v1783_v46, 0.0 }
 0x102   :  { %v1323_v56 = vpop.f32.mrf.mxu0 }
 0x103   :  { %v514_v57 = vadd.f32 %v1322_v54, %v1765_v3  ;;  %v1805_v15 = vpop.f32.mrf.mxu1  ;;  %v732_v54 = vadd.f32 %v731_v43, %v730_v47 }
 0x104   :  { %v1324_v59 = vpop.f32.mrf.mxu0 }
 0x105   :  { %v1793_v60 = vadd.f32 %v649_v30, %v514_v57  ;;  %v1325_v61 = vadd.f32 %v1324_v59, %v1323_v56  ;;  %v1426_v17 = vpop.f32.mrf.mxu1  ;;  %v735_v56 = vsel %vm412_vm1, %v1788_v53, 0.0  ;;  %v734_v62 = vadd.f32 %v733_v49, %v732_v54 }
 0x106   :  { %v1326_v63 = vpop.f32.mrf.mxu0 }
 0x107   :  { %v519_v0 = vadd.f32 %v1325_v61, %v1765_v3  ;;  %v1807_v20 = vpop.f32.mrf.mxu1 }
 0x108   :  { %v1327_v2 = vpop.f32.mrf.mxu0 }
 0x109   :  { %v1798_v4 = vadd.f32 %v654_v37, %v519_v0  ;;  %v1328_v5 = vadd.f32 %v1327_v2, %v1326_v63  ;;  %v1427_v22 = vpop.f32.mrf.mxu1  ;;  %v737_v0 = vsel %vm412_vm1, %v1793_v60, 0.0 }
 0x10a   :  { %v1329_v7 = vpop.f32.mrf.mxu0 }
 0x10b   :  { %v522_v8 = vadd.f32 %v1328_v5, %v1765_v3  ;;  %v1809_v24 = vpop.f32.mrf.mxu1 }
 0x10c   :  { %v1330_v10 = vpop.f32.mrf.mxu0 }
 0x10d   :  { %v1803_v12 = vadd.f32 %v657_v44, %v522_v8  ;;  %v1430_v27 = vpop.f32.mrf.mxu1  ;;  %v1331_v44 = vadd.f32 %v1330_v10, %v1329_v7  ;;  %v736_v7 = vadd.f32 %v735_v56, %v734_v62  ;;  %v739_v10 = vsel %vm412_vm1, %v1798_v4, 0.0 }
 0x10e   :  { %v1332_v14 = vpop.f32.mrf.mxu0 }
 0x10f   :  { %v1813_v30 = vpop.f32.mrf.mxu1  ;;  %v527_v57 = vadd.f32 %v1331_v44, %v1765_v3  ;;  %v741_v22 = vsel %vm412_vm1, %v1803_v12, 0.0 }
 0x110   :  { %v1333_v16 = vpop.f32.mrf.mxu0 }
 0x111   :  { %v1431_v35 = vpop.f32.mrf.mxu1  ;;  %v1334_v50 = vadd.f32 %v1333_v16, %v1332_v14  ;;  %v1840_v13 = vadd.f32 %v1786_v51, %v527_v57 }
 0x112   :  { %v1335_v19 = vpop.f32.mrf.mxu0 }
 0x113   :  { %v1821_v40 = vpop.f32.mrf.mxu1  ;;  %v530_v2 = vadd.f32 %v1334_v50, %v1765_v3  ;;  %v743_v34 = vsel %vm412_vm1, %v1840_v13, 0.0 }
 0x114   :  { %v1336_v21 = vpop.f32.mrf.mxu0 }
 0x115   :  { %v1434_v45 = vpop.f32.mrf.mxu1  ;;  %v1337_v59 = vadd.f32 %v1336_v21, %v1335_v19  ;;  %v738_v19 = vadd.f32 %v737_v0, %v736_v7 }
 0x116   :  { %v1338_v23 = vpop.f32.mrf.mxu0 }
 0x117   :  { %v1827_v52 = vpop.f32.mrf.mxu1  ;;  %v535_v14 = vadd.f32 %v1337_v59, %v1765_v3  ;;  %v740_v33 = vadd.f32 %v739_v10, %v738_v19 }
 0x118   :  { %v1339_v26 = vpop.f32.mrf.mxu0 }
 0x119   :  { %v1435_v61 = vpop.f32.mrf.mxu1  ;;  %v1340_v5 = vadd.f32 %v1339_v26, %v1338_v23  ;;  %v1846_v23 = vadd.f32 %v1791_v58, %v530_v2  ;;  %v742_v38 = vadd.f32 %v741_v22, %v740_v33 }
 0x11a   :  { %v1341_v28 = vpop.f32.mrf.mxu0 }
 0x11b   :  { %v1835_v6 = vpop.f32.mrf.mxu1  ;;  %v538_v26 = vadd.f32 %v1340_v5, %v1765_v3  ;;  %v745_v41 = vsel %vm412_vm1, %v1846_v23, 0.0  ;;  %v744_v45 = vadd.f32 %v743_v34, %v742_v38 }
 0x11c   :  { %v1342_v31 = vpop.f32.mrf.mxu0 }
 0x11d   :  { %v1343_v16 = vadd.f32 %v1342_v31, %v1341_v28  ;;  %v1438_v17 = vpop.f32.mrf.mxu1  ;;  %v1854_v28 = vadd.f32 %v1796_v1, %v535_v14 }
 0x11e   :  { %v1344_v37 = vpop.f32.mrf.mxu0 }
 0x11f   :  { %v1849_v29 = vpop.f32.mrf.mxu1  ;;  %v543_v31 = vadd.f32 %v1343_v16, %v1765_v3  ;;  %v747_v1 = vsel %vm412_vm1, %v1854_v28, 0.0 }
 0x120   :  { %v1345_v42 = vpop.f32.mrf.mxu0 }
 0x121   :  { %v1346_v27 = vadd.f32 %v1345_v42, %v1344_v37  ;;  %v1439_v36 = vpop.f32.mrf.mxu1  ;;  %v1860_v37 = vadd.f32 %v1801_v9, %v538_v26 }
 0x122   :  { %v1347_v48 = vpop.f32.mrf.mxu0 }
 0x123   :  { %v546_v42 = vadd.f32 %v1346_v27, %v1765_v3  ;;  %v710_v44 = vpop.f32.mrf.mxu1  ;;  %v749_v9 = vsel %vm412_vm1, %v1860_v37, 0.0 }
 0x124   :  { %v1348_v55 = vpop.f32.mrf.mxu0 }
 0x125   :  { %v1349_v35 = vadd.f32 %v1348_v55, %v1347_v48  ;;  %v1866_v48 = vadd.f32 %v1805_v15, %v543_v31  ;;  %v1442_v54 = vpop.f32.mrf.mxu1  ;;  %v746_v55 = vadd.f32 %v745_v41, %v744_v45  ;;  %v1872_v57 = vadd.f32 %v1807_v20, %v546_v42 }
 0x126   :  { %v1350_v63 = vpop.f32.mrf.mxu0 }
 0x127   :  { %v551_v49 = vadd.f32 %v1349_v35, %v1765_v3  ;;  %v713_v62 = vpop.f32.mrf.mxu1  ;;  %v751_v15 = vsel %vm412_vm1, %v1866_v48, 0.0  ;;  %v753_v20 = vsel %vm412_vm1, %v1872_v57, 0.0 }
 0x128   :  { %v1351_v8 = vpop.f32.mrf.mxu0 }
 0x129   :  { %v1352_v43 = vadd.f32 %v1351_v8, %v1350_v63  ;;  %v748_v63 = vadd.f32 %v747_v1, %v746_v55  ;;  %v1878_v2 = vadd.f32 %v1809_v24, %v551_v49  ;;  %v1443_v8 = vpop.f32.mrf.mxu1 }
 0x12a   :  { %v1353_v21 = vpop.f32.mrf.mxu0 }
 0x12b   :  { %v554_v59 = vadd.f32 %v1352_v43, %v1765_v3  ;;  %v750_v10 = vadd.f32 %v749_v9, %v748_v63  ;;  %v718_v19 = vpop.f32.mrf.mxu1  ;;  %v755_v24 = vsel %vm412_vm1, %v1878_v2, 0.0 }
 0x12c   :  { %v1354_v51 = vpop.f32.mrf.mxu0 }
 0x12d   :  { %v1355_v50 = vadd.f32 %v1354_v51, %v1353_v21  ;;  %v1884_v16 = vadd.f32 %v1813_v30, %v554_v59  ;;  %v752_v21 = vadd.f32 %v751_v15, %v750_v10  ;;  %v1446_v51 = vpop.f32.mrf.mxu1 }
 0x12e   :  { %v1356_v58 = vpop.f32.mrf.mxu0 }
 0x12f   :  { %v559_v5 = vadd.f32 %v1355_v50, %v1765_v3  ;;  %v754_v34 = vadd.f32 %v753_v20, %v752_v21  ;;  %v757_v30 = vsel %vm412_vm1, %v1884_v16, 0.0  ;;  %v721_v38 = vpop.f32.mrf.mxu1 }
 0x130   :  { %v1357_v47 = vpop.f32.mrf.mxu0 }
 0x131   :  { %v1358_v61 = vadd.f32 %v1357_v47, %v1356_v58  ;;  %v1890_v26 = vadd.f32 %v1821_v40, %v559_v5  ;;  %v756_v58 = vadd.f32 %v755_v24, %v754_v34  ;;  %v1447_v45 = vpop.f32.mrf.mxu1 }
 0x132   :  { %v1359_v56 = vpop.f32.mrf.mxu0 }
 0x133   :  { %v562_v17 = vadd.f32 %v1358_v61, %v1765_v3  ;;  %v759_v40 = vsel %vm412_vm1, %v1890_v26, 0.0  ;;  %v758_v47 = vadd.f32 %v757_v30, %v756_v58 }
 0x134   :  { %v1360_v0 = vpop.f32.mrf.mxu0 }
 0x135   :  { %v1361_v7 = vadd.f32 %v1360_v0, %v1359_v56  ;;  %v1896_v35 = vadd.f32 %v1827_v52, %v562_v17  ;;  %v760_v54 = vadd.f32 %v759_v40, %v758_v47 }
 0x136   :  { %v1362_v14 = vpop.f32.mrf.mxu0 }
 0x137   :  { %v567_v27 = vadd.f32 %v1361_v7, %v1765_v3  ;;  %v761_v49 = vsel %vm412_vm1, %v1896_v35, 0.0 }
 0x138   :  { %v1363_v22 = vpop.f32.mrf.mxu0  ;;  %v762_v59 = vadd.f32 %v761_v49, %v760_v54 }
 0x139   :  { %v1364_v33 = vadd.f32 %v1363_v22, %v1362_v14  ;;  %v1902_v42 = vadd.f32 %v1835_v6, %v567_v27 }
 0x13a   :  { %v1365_v31 = vpop.f32.mrf.mxu0 }
 0x13b   :  { %v570_v36 = vadd.f32 %v1364_v33, %v1765_v3  ;;  %v763_v56 = vsel %vm412_vm1, %v1902_v42, 0.0 }
 0x13c   :  { %v1366_v41 = vpop.f32.mrf.mxu0  ;;  %v764_v15 = vadd.f32 %v763_v56, %v762_v59 }
 0x13d   :  { %v1367_v43 = vadd.f32 %v1366_v41, %v1365_v31  ;;  %v1907_v52 = vadd.f32 %v1849_v29, %v570_v36 }
 0x13e   :  { %v1368_v1 = vpop.f32.mrf.mxu0 }
 0x13f   :  { %v575_v50 = vadd.f32 %v1367_v43, %v1765_v3  ;;  %v765_v63 = vsel %vm412_vm1, %v1907_v52, 0.0 }
 0x140   :  { %v1369_v55 = vpop.f32.mrf.mxu0  ;;  %v766_v10 = vadd.f32 %v765_v63, %v764_v15 }
 0x141   :  { %v1912_v9 = vadd.f32 %v710_v44, %v575_v50  ;;  %v1370_v6 = vadd.f32 %v1369_v55, %v1368_v1 }
 0x142   :  { %v1371_v61 = vpop.f32.mrf.mxu0 }
 0x143   :  { %v578_v0 = vadd.f32 %v1370_v6, %v1765_v3  ;;  %v767_v5 = vsel %vm412_vm1, %v1912_v9, 0.0 }
 0x144   :  { %v1372_v29 = vpop.f32.mrf.mxu0  ;;  %v768_v17 = vadd.f32 %v767_v5, %v766_v10 }
 0x145   :  { %v1919_v7 = vadd.f32 %v713_v62, %v578_v0  ;;  %v1373_v8 = vadd.f32 %v1372_v29, %v1371_v61 }
 0x146   :  { %v1374_v14 = vpop.f32.mrf.mxu0 }
 0x147   :  { %v769_v44 = vsel %vm412_vm1, %v1919_v7, 0.0  ;;  %v583_v20 = vadd.f32 %v1373_v8, %v1765_v3 }
 0x148   :  { %v1375_v21 = vpop.f32.mrf.mxu0  ;;  %v770_v24 = vadd.f32 %v769_v44, %v768_v17 }
 0x149   :  { %v1924_v22 = vadd.f32 %v718_v19, %v583_v20 }
 0x14b   :  { %v771_v27 = vsel %vm412_vm1, %v1924_v22, 0.0 }
 0x14c   :  { %v772_v33 = vadd.f32 %v771_v27, %v770_v24 }
 0x14e   :  { %v773_v51 = vrot.slane %v772_v33, 4 }
 0x150   :  { %v774_v62 = vadd.f32 %v773_v51, %v772_v33 }
 0x152   :  { %v775_v34 = vrot.slane %v774_v62, 2 }
 0x154   :  { %v776_v31 = vadd.f32 %v775_v34, %v774_v62 }
 0x156   :  { %v777_v30 = vrot.slane %v776_v31, 1 }
 0x158   :  { %v778_v36 = vadd.f32 %v777_v30, %v776_v31 }
 0x15a   :  { %v1928_v38 = vmul.f32 0.005, %v778_v36 }
 0x15c   :  { %v781_v3 = vsub.f32 %v1768_v11, %v1928_v38  ;;  %v782_v19 = vsub.f32 %v1771_v18, %v1928_v38  ;;  %v783_v58 = vsub.f32 %v1774_v25, %v1928_v38  ;;  %v784_v41 = vsub.f32 %v1777_v32, %v1928_v38 }
 0x15d   :  { %v785_v45 = vsub.f32 %v1780_v39, %v1928_v38  ;;  %v786_v1 = vsub.f32 %v1783_v46, %v1928_v38  ;;  %v787_v56 = vsub.f32 %v1788_v53, %v1928_v38  ;;  %v788_v63 = vsub.f32 %v1793_v60, %v1928_v38 }
 0x15e   :  { %v806_v40 = vmul.f32 %v781_v3, %v781_v3  ;;  %v807_v43 = vmul.f32 %v782_v19, %v782_v19  ;;  %v808_v47 = vmul.f32 %v783_v58, %v783_v58  ;;  %v809_v49 = vmul.f32 %v784_v41, %v784_v41 }
 0x15f   :  { %v810_v6 = vmul.f32 %v785_v45, %v785_v45  ;;  %v811_v0 = vmul.f32 %v786_v1, %v786_v1  ;;  %v789_v5 = vsub.f32 %v1798_v4, %v1928_v38  ;;  %v812_v8 = vmul.f32 %v787_v56, %v787_v56 }
 0x160   :  { %v831_v50 = vsel %vm412_vm1, %v806_v40, 0.0  ;;  %v832_v54 = vsel %vm412_vm1, %v807_v43, 0.0  ;;  %v834_v59 = vsel %vm412_vm1, %v808_v47, 0.0  ;;  %v836_v15 = vsel %vm412_vm1, %v809_v49, 0.0 }
 0x161   :  { %v833_v55 = vadd.f32 %v832_v54, %v831_v50  ;;  %v838_v10 = vsel %vm412_vm1, %v810_v6, 0.0  ;;  %v790_v44 = vsub.f32 %v1803_v12, %v1928_v38  ;;  %v813_v20 = vmul.f32 %v788_v63, %v788_v63 }
 0x162   :  { %v840_v17 = vsel %vm412_vm1, %v811_v0, 0.0  ;;  %v791_v24 = vsub.f32 %v1840_v13, %v1928_v38  ;;  %v814_v27 = vmul.f32 %v789_v5, %v789_v5  ;;  %v842_v33 = vsel %vm412_vm1, %v812_v8, 0.0 }
 0x163   :  { %v835_v61 = vadd.f32 %v834_v59, %v833_v55  ;;  %v792_v62 = vsub.f32 %v1846_v23, %v1928_v38  ;;  %v815_v34 = vmul.f32 %v790_v44, %v790_v44  ;;  %v844_v31 = vsel %vm412_vm1, %v813_v20, 0.0 }
 0x164   :  { %v793_v36 = vsub.f32 %v1854_v28, %v1928_v38  ;;  %v816_v3 = vmul.f32 %v791_v24, %v791_v24  ;;  %v846_v19 = vsel %vm412_vm1, %v814_v27, 0.0  ;;  %v794_v41 = vsub.f32 %v1860_v37, %v1928_v38 }
 0x165   :  { %v837_v29 = vadd.f32 %v836_v15, %v835_v61  ;;  %v817_v40 = vmul.f32 %v792_v62, %v792_v62  ;;  %v848_v43 = vsel %vm412_vm1, %v815_v34, 0.0  ;;  %v795_v47 = vsub.f32 %v1866_v48, %v1928_v38 }
 0x166   :  { %v818_v1 = vmul.f32 %v793_v36, %v793_v36  ;;  %v850_v49 = vsel %vm412_vm1, %v816_v3, 0.0  ;;  %v796_v54 = vsub.f32 %v1872_v57, %v1928_v38  ;;  %v819_v55 = vmul.f32 %v794_v41, %v794_v41 }
 0x167   :  { %v839_v14 = vadd.f32 %v838_v10, %v837_v29  ;;  %v852_v56 = vsel %vm412_vm1, %v817_v40, 0.0  ;;  %v797_v59 = vsub.f32 %v1878_v2, %v1928_v38  ;;  %v820_v61 = vmul.f32 %v795_v47, %v795_v47 }
 0x168   :  { %v854_v63 = vsel %vm412_vm1, %v818_v1, 0.0  ;;  %v798_v15 = vsub.f32 %v1884_v16, %v1928_v38  ;;  %v821_v29 = vmul.f32 %v796_v54, %v796_v54  ;;  %v856_v5 = vsel %vm412_vm1, %v819_v55, 0.0 }
 0x169   :  { %v841_v21 = vadd.f32 %v840_v17, %v839_v14  ;;  %v799_v10 = vsub.f32 %v1890_v26, %v1928_v38  ;;  %v822_v14 = vmul.f32 %v797_v59, %v797_v59  ;;  %v858_v44 = vsel %vm412_vm1, %v820_v61, 0.0 }
 0x16a   :  { %v800_v17 = vsub.f32 %v1896_v35, %v1928_v38  ;;  %v860_v24 = vsel %vm412_vm1, %v821_v29, 0.0 }
 0x16b   :  { %v843_v51 = vadd.f32 %v842_v33, %v841_v21  ;;  %v823_v21 = vmul.f32 %v798_v15, %v798_v15  ;;  %v801_v33 = vsub.f32 %v1902_v42, %v1928_v38  ;;  %v862_v62 = vsel %vm412_vm1, %v822_v14, 0.0 }
 0x16d   :  { %v845_v30 = vadd.f32 %v844_v31, %v843_v51  ;;  %v824_v51 = vmul.f32 %v799_v10, %v799_v10  ;;  %v802_v31 = vsub.f32 %v1907_v52, %v1928_v38  ;;  %v864_v36 = vsel %vm412_vm1, %v823_v21, 0.0 }
 0x16f   :  { %v847_v58 = vadd.f32 %v846_v19, %v845_v30  ;;  %v825_v30 = vmul.f32 %v800_v17, %v800_v17  ;;  %v803_v19 = vsub.f32 %v1912_v9, %v1928_v38  ;;  %v866_v41 = vsel %vm412_vm1, %v824_v51, 0.0 }
 0x171   :  { %v849_v45 = vadd.f32 %v848_v43, %v847_v58  ;;  %v826_v58 = vmul.f32 %v801_v33, %v801_v33  ;;  %v804_v43 = vsub.f32 %v1919_v7, %v1928_v38  ;;  %v868_v47 = vsel %vm412_vm1, %v825_v30, 0.0 }
 0x172   :  { %v895_v33 = vlaneseq }
 0x173   :  { %v851_v50 = vadd.f32 %v850_v49, %v849_v45  ;;  %v827_v45 = vmul.f32 %v802_v31, %v802_v31  ;;  %v805_v49 = vsub.f32 %v1924_v22, %v1928_v38  ;;  %v870_v54 = vsel %vm412_vm1, %v826_v58, 0.0 }
 0x174   :  { %v896_v51 = vshrl.u32 %v895_v33, 7 }
 0x175   :  { %v853_v6 = vadd.f32 %v852_v56, %v851_v50  ;;  %v828_v50 = vmul.f32 %v803_v19, %v803_v19  ;;  %v829_v56 = vmul.f32 %v804_v43, %v804_v43  ;;  %v830_v61 = vmul.f32 %v805_v49, %v805_v49 }
 0x176   :  { %v897_v31 = vsub.s32 0, %v896_v51 }
 0x177   :  { %v855_v0 = vadd.f32 %v854_v63, %v853_v6  ;;  %v872_v6 = vsel %vm412_vm1, %v827_v45, 0.0  ;;  %v874_v63 = vsel %vm412_vm1, %v828_v50, 0.0  ;;  %v876_v15 = vsel %vm412_vm1, %v829_v56, 0.0 }
 0x179   :  { %v857_v8 = vadd.f32 %v856_v5, %v855_v0  ;;  %v878_v5 = vsel %vm412_vm1, %v830_v61, 0.0 }
 0x17b   :  { %v859_v20 = vadd.f32 %v858_v44, %v857_v8 }
 0x17d   :  { %v861_v27 = vadd.f32 %v860_v24, %v859_v20 }
 0x17f   :  { %v863_v34 = vadd.f32 %v862_v62, %v861_v27  ;;  %v887_v62 = vld [vmem:[%s2303_s3] sm:$0x1] }
 0x181   :  { %v865_v3 = vadd.f32 %v864_v36, %v863_v34 }
 0x183   :  { %v867_v40 = vadd.f32 %v866_v41, %v865_v3  ;;  %v891_v3 = vld [vmem:[%s2304_s4] sm:$0x1] }
 0x185   :  { %v869_v1 = vadd.f32 %v868_v47, %v867_v40 }
 0x187   :  { %v871_v55 = vadd.f32 %v870_v54, %v869_v1 }
 0x189   :  { %v873_v59 = vadd.f32 %v872_v6, %v871_v55 }
 0x18b   :  { %v875_v0 = vadd.f32 %v874_v63, %v873_v59 }
 0x18d   :  { %v877_v29 = vadd.f32 %v876_v15, %v875_v0 }
 0x18f   :  { %v879_v8 = vadd.f32 %v878_v5, %v877_v29 }
 0x191   :  { %v880_v10 = vrot.slane %v879_v8, 4 }
 0x193   :  { %v881_v14 = vadd.f32 %v880_v10, %v879_v8 }
 0x195   :  { %v882_v44 = vrot.slane %v881_v14, 2 }
 0x197   :  { %v883_v20 = vadd.f32 %v882_v44, %v881_v14 }
 0x199   :  { %v884_v17 = vrot.slane %v883_v20, 1 }
 0x19b   :  { %v885_v21 = vadd.f32 %v884_v17, %v883_v20 }
 0x19d   :  { %v886_v24 = vmul.f32 0.005, %v885_v21 }
 0x19f   :  { %v888_v27 = vadd.f32 1e-05, %v886_v24 }
 0x1a1   :  { %1519 = vrsqrt.f32 %v888_v27 }
 0x1ae   :  { %v1520_v34 = vpop.eup %1519 }
 0x1af   :  { %v890_v30 = vmul.f32 %v1520_v34, %v887_v62 }
 0x1b1   :  { %v892_v36 = vmul.f32 %v890_v30, %v1928_v38  ;;  %v898_v19 = vrot.slane %v890_v30, %v897_v31 }
 0x1b3   :  { %v893_v58 = vsub.f32 %v891_v3, %v892_v36  ;;  %v900_v41 = vmul.f32 %v898_v19, %v1768_v11  ;;  %v901_v40 = vmul.f32 %v898_v19, %v1771_v18  ;;  %v902_v43 = vmul.f32 %v898_v19, %v1774_v25 }
 0x1b4   :  { %v903_v45 = vmul.f32 %v898_v19, %v1777_v32  ;;  %v904_v47 = vmul.f32 %v898_v19, %v1780_v39  ;;  %v905_v1 = vmul.f32 %v898_v19, %v1783_v46  ;;  %v906_v38 = vmul.f32 %v898_v19, %v1788_v53 }
 0x1b5   :  { %v907_v49 = vmul.f32 %v898_v19, %v1793_v60  ;;  %v908_v50 = vmul.f32 %v898_v19, %v1798_v4  ;;  %v909_v54 = vmul.f32 %v898_v19, %v1803_v12  ;;  %v910_v11 = vmul.f32 %v898_v19, %v1840_v13 }
 0x1b6   :  { %v911_v18 = vmul.f32 %v898_v19, %v1846_v23  ;;  %v912_v25 = vmul.f32 %v898_v19, %v1854_v28  ;;  %v913_v32 = vmul.f32 %v898_v19, %v1860_v37  ;;  %v929_v55 = vrot.slane %v893_v58, %v897_v31 }
 0x1b7   :  { %v914_v39 = vmul.f32 %v898_v19, %v1866_v48  ;;  %v915_v46 = vmul.f32 %v898_v19, %v1872_v57  ;;  %v916_v53 = vmul.f32 %v898_v19, %v1878_v2  ;;  %v917_v60 = vmul.f32 %v898_v19, %v1884_v16 }
 0x1b8   :  { %v918_v4 = vmul.f32 %v898_v19, %v1890_v26  ;;  %v919_v12 = vmul.f32 %v898_v19, %v1896_v35  ;;  %v920_v13 = vmul.f32 %v898_v19, %v1902_v42  ;;  %v921_v23 = vmul.f32 %v898_v19, %v1907_v52 }
 0x1b9   :  { %v922_v28 = vmul.f32 %v898_v19, %v1912_v9  ;;  %v923_v37 = vmul.f32 %v898_v19, %v1919_v7  ;;  %v924_v48 = vmul.f32 %v898_v19, %v1924_v22  ;;  %v931_v56 = vadd.f32 %v929_v55, %v900_v41 }
 0x1ba   :  { %v932_v57 = vadd.f32 %v929_v55, %v901_v40  ;;  %v2037_v6 = vadd.f32 %v929_v55, %v902_v43  ;;  %v2039_v2 = vadd.f32 %v929_v55, %v903_v45  ;;  %v2041_v16 = vadd.f32 %v929_v55, %v904_v47 }
 0x1bb   :  { %v2043_v26 = vadd.f32 %v929_v55, %v905_v1  ;;  %v2045_v35 = vadd.f32 %v929_v55, %v906_v38  ;;  %v2047_v42 = vadd.f32 %v929_v55, %v907_v49  ;;  %v2049_v52 = vadd.f32 %v929_v55, %v908_v50 }
 0x1bc   :  { %v2051_v9 = vadd.f32 %v929_v55, %v909_v54  ;;  %v2053_v7 = vadd.f32 %v929_v55, %v910_v11  ;;  %v2055_v22 = vadd.f32 %v929_v55, %v911_v18  ;;  %v2057_v59 = vadd.f32 %v929_v55, %v912_v25 }
 0x1bd   :  { %v2059_v61 = vadd.f32 %v929_v55, %v913_v32  ;;  %v2061_v63 = vadd.f32 %v929_v55, %v914_v39  ;;  %v2063_v0 = vadd.f32 %v929_v55, %v915_v46  ;;  %v2065_v15 = vadd.f32 %v929_v55, %v916_v53 }
 0x1be   :  { %v2067_v29 = vadd.f32 %v929_v55, %v917_v60  ;;  %v2069_v5 = vadd.f32 %v929_v55, %v918_v4  ;;  %v2071_v8 = vadd.f32 %v929_v55, %v919_v12  ;;  %v2073_v10 = vadd.f32 %v929_v55, %v920_v13 }
 0x1bf   :  { %v2075_v14 = vadd.f32 %v929_v55, %v921_v23  ;;  %v2077_v44 = vadd.f32 %v929_v55, %v922_v28  ;;  %v2079_v20 = vadd.f32 %v929_v55, %v923_v37  ;;  %v2081_v17 = vadd.f32 %v929_v55, %v924_v48 }
 0x1c0   :  { %vm956_vm2 = vcmp.gt.f32.partialorder %v931_v56, 0.0  ;;  %vm957_vm3 = vcmp.gt.f32.partialorder %v932_v57, 0.0  ;;  %vm958_vm4 = vcmp.gt.f32.partialorder %v2037_v6, 0.0  ;;  %vm959_vm5 = vcmp.gt.f32.partialorder %v2039_v2, 0.0 }
 0x1c1   :  { %vm960_vm6 = vcmp.gt.f32.partialorder %v2041_v16, 0.0  ;;  %vm961_vm7 = vcmp.gt.f32.partialorder %v2043_v26, 0.0  ;;  %vm966_vm12 = vcmp.gt.f32.partialorder %v2053_v7, 0.0  ;;  %vm971_vm1 = vcmp.gt.f32.partialorder %v2063_v0, 0.0 }
 0x1c2   :  { %vm972_vm8 = vcmp.gt.f32.partialorder %v2065_v15, 0.0  ;;  %vm973_vm9 = vcmp.gt.f32.partialorder %v2067_v29, 0.0  ;;  %vm975_vm11 = vcmp.gt.f32.partialorder %v2071_v8, 0.0  ;;  %v981_v21 = vmul.f32 0.2, %v931_v56 }
 0x1c3   :  { %v982_v24 = vmul.f32 0.2, %v932_v57  ;;  %vm976_vm13 = vcmp.gt.f32.partialorder %v2073_v10, 0.0  ;;  %vm977_vm14 = vcmp.gt.f32.partialorder %v2075_v14, 0.0  ;;  %vm978_vm15 = vcmp.gt.f32.partialorder %v2077_v44, 0.0 }
 0x1c4   :  { %vm979_vm0 = vcmp.gt.f32.partialorder %v2079_v20, 0.0  ;;  %v983_v27 = vmul.f32 0.2, %v2037_v6  ;;  %v984_v33 = vmul.f32 0.2, %v2039_v2  ;;  %v1006_v30 = vsel %vm956_vm2, %v931_v56, %v981_v21 }
 0x1c5   :  { %v985_v51 = vmul.f32 0.2, %v2041_v16  ;;  %v986_v62 = vmul.f32 0.2, %v2043_v26  ;;  %v987_v34 = vmul.f32 0.2, %v2045_v35  ;;  %v1007_v58 = vsel %vm957_vm3, %v932_v57, %v982_v24 }
 0x1c6   :  { %v988_v31 = vmul.f32 0.2, %v2047_v42  ;;  %v989_v36 = vmul.f32 0.2, %v2049_v52  ;;  %v990_v3 = vmul.f32 0.2, %v2051_v9  ;;  %v1008_v45 = vsel %vm958_vm4, %v2037_v6, %v983_v27 }
 0x1c7   :  { %v991_v19 = vmul.f32 0.2, %v2053_v7  ;;  %v992_v41 = vmul.f32 0.2, %v2055_v22  ;;  %v993_v40 = vmul.f32 0.2, %v2057_v59  ;;  %v1009_v49 = vsel %vm959_vm5, %v2039_v2, %v984_v33 }
 0x1c8   :  { %v994_v43 = vmul.f32 0.2, %v2059_v61  ;;  %v995_v47 = vmul.f32 0.2, %v2061_v63  ;;  %v996_v1 = vmul.f32 0.2, %v2063_v0  ;;  %v1010_v18 = vsel %vm960_vm6, %v2041_v16, %v985_v51 }
 0x1c9   :  { %v997_v38 = vmul.f32 0.2, %v2065_v15  ;;  %v998_v50 = vmul.f32 0.2, %v2067_v29  ;;  %v999_v54 = vmul.f32 0.2, %v2069_v5  ;;  %v1011_v39 = vsel %vm961_vm7, %v2043_v26, %v986_v62 }
 0x1ca   :  { %v1000_v11 = vmul.f32 0.2, %v2071_v8  ;;  %v1001_v25 = vmul.f32 0.2, %v2073_v10  ;;  %v1002_v32 = vmul.f32 0.2, %v2075_v14  ;;  %v1016_v23 = vsel %vm966_vm12, %v2053_v7, %v991_v19 }
 0x1cb   :  { %v1003_v55 = vmul.f32 0.2, %v2077_v44  ;;  %v1004_v46 = vmul.f32 0.2, %v2079_v20  ;;  %v1005_v53 = vmul.f32 0.2, %v2081_v17  ;;  %v1021_v57 = vsel %vm971_vm1, %v2063_v0, %v996_v1 }
 0x1cc   :  { %vm2306_vm2 = vcmp.gt.f32.partialorder %v2045_v35, 0.0  ;;  %vm2307_vm3 = vcmp.gt.f32.partialorder %v2047_v42, 0.0  ;;  %vm2308_vm4 = vcmp.gt.f32.partialorder %v2049_v52, 0.0  ;;  %vm2309_vm5 = vcmp.gt.f32.partialorder %v2051_v9, 0.0 }
 0x1cd   :  { %v1012_v60 = vsel %vm2306_vm2, %v2045_v35, %v987_v34  ;;  %v1013_v4 = vsel %vm2307_vm3, %v2047_v42, %v988_v31  ;;  %v1014_v12 = vsel %vm2308_vm4, %v2049_v52, %v989_v36  ;;  %v1015_v13 = vsel %vm2309_vm5, %v2051_v9, %v990_v3 }
 0x1ce   :  { %vm2310_vm6 = vcmp.gt.f32.partialorder %v2055_v22, 0.0  ;;  %vm2311_vm7 = vcmp.gt.f32.partialorder %v2057_v59, 0.0  ;;  %vm2312_vm2 = vcmp.gt.f32.partialorder %v2059_v61, 0.0  ;;  %vm2313_vm3 = vcmp.gt.f32.partialorder %v2061_v63, 0.0 }
 0x1cf   :  { %v1017_v28 = vsel %vm2310_vm6, %v2055_v22, %v992_v41  ;;  %v1018_v37 = vsel %vm2311_vm7, %v2057_v59, %v993_v40  ;;  %v1019_v48 = vsel %vm2312_vm2, %v2059_v61, %v994_v43  ;;  %v1020_v56 = vsel %vm2313_vm3, %v2061_v63, %v995_v47 }
 0x1d0   :  { %v1022_v6 = vsel %vm972_vm8, %v2065_v15, %v997_v38  ;;  %v1023_v2 = vsel %vm973_vm9, %v2067_v29, %v998_v50  ;;  %vm2314_vm12 = vcmp.gt.f32.partialorder %v2069_v5, 0.0  ;;  %v1025_v26 = vsel %vm975_vm11, %v2071_v8, %v1000_v11 }
 0x1d1   :  { %v1024_v16 = vsel %vm2314_vm12, %v2069_v5, %v999_v54  ;;  %v1026_v35 = vsel %vm976_vm13, %v2073_v10, %v1001_v25  ;;  %v1027_v42 = vsel %vm977_vm14, %v2075_v14, %v1002_v32  ;;  %v1028_v52 = vsel %vm978_vm15, %v2077_v44, %v1003_v55 }
 0x1d2   :  { %v1029_v9 = vsel %vm979_vm0, %v2079_v20, %v1004_v46  ;;  %vm2315_vm8 = vcmp.gt.f32.partialorder %v2081_v17, 0.0  ;;  %v1258_v22 = vpack.c.bf16 %v1006_v30, %v1006_v30  ;;  %v1259_v59 = vpack.c.bf16 %v1007_v58, %v1007_v58 }
 0x1d3   :  { %v1030_v7 = vsel %vm2315_vm8, %v2081_v17, %v1005_v53  ;;  %v1260_v61 = vpack.c.bf16 %v1008_v45, %v1008_v45  ;;  %v1261_v63 = vpack.c.bf16 %v1009_v49, %v1009_v49  ;;  %v1262_v0 = vpack.c.bf16 %v1010_v18, %v1010_v18 }
 0x1d4   :  { %v1263_v15 = vpack.c.bf16 %v1011_v39, %v1011_v39  ;;  %v1264_v29 = vpack.c.bf16 %v1012_v60, %v1012_v60  ;;  %v1265_v5 = vpack.c.bf16 %v1013_v4, %v1013_v4  ;;  %v1266_v8 = vpack.c.bf16 %v1014_v12, %v1014_v12  ;;  %1133 = vst.msk [vmem:[%s2305_s5] sm:$0xf] %vm1132_vm10, %v1258_v22 }
 0x1d5   :  { %v1267_v10 = vpack.c.bf16 %v1015_v13, %v1015_v13  ;;  %v1268_v14 = vpack.c.bf16 %v1016_v23, %v1016_v23  ;;  %1134 = vst.msk [vmem:[%s2305_s5 + $0x4] sm:$0xf] %vm1132_vm10, %v1259_v59  ;;  %1135 = vst.msk [vmem:[%s2305_s5 + $0x8] sm:$0xf] %vm1132_vm10, %v1260_v61  ;;  %v1269_v44 = vpack.c.bf16 %v1017_v28, %v1017_v28 }
 0x1d6   :  { %v1270_v20 = vpack.c.bf16 %v1018_v37, %v1018_v37  ;;  %v1271_v17 = vpack.c.bf16 %v1019_v48, %v1019_v48  ;;  %v1272_v21 = vpack.c.bf16 %v1020_v56, %v1020_v56  ;;  %1136 = vst.msk [vmem:[%s2305_s5 + $0xc] sm:$0xf] %vm1132_vm10, %v1261_v63  ;;  %1137 = vst.msk [vmem:[%s2305_s5 + $0x10] sm:$0xf] %vm1132_vm10, %v1262_v0 }
 0x1d7   :  { %1138 = vst.msk [vmem:[%s2305_s5 + $0x14] sm:$0xf] %vm1132_vm10, %v1263_v15  ;;  %1139 = vst.msk [vmem:[%s2305_s5 + $0x18] sm:$0xf] %vm1132_vm10, %v1264_v29  ;;  %v1273_v24 = vpack.c.bf16 %v1021_v57, %v1021_v57  ;;  %v1274_v27 = vpack.c.bf16 %v1022_v6, %v1022_v6  ;;  %v1275_v33 = vpack.c.bf16 %v1023_v2, %v1023_v2 }
 0x1d8   :  { %v1276_v51 = vpack.c.bf16 %v1024_v16, %v1024_v16  ;;  %1140 = vst.msk [vmem:[%s2305_s5 + $0x1c] sm:$0xf] %vm1132_vm10, %v1265_v5  ;;  %1141 = vst.msk [vmem:[%s2305_s5 + $0x20] sm:$0xf] %vm1132_vm10, %v1266_v8  ;;  %v1277_v62 = vpack.c.bf16 %v1025_v26, %v1025_v26  ;;  %v1278_v34 = vpack.c.bf16 %v1026_v35, %v1026_v35 }
 0x1d9   :  { %1142 = vst.msk [vmem:[%s2305_s5 + $0x24] sm:$0xf] %vm1132_vm10, %v1267_v10  ;;  %1143 = vst.msk [vmem:[%s2305_s5 + $0x28] sm:$0xf] %vm1132_vm10, %v1268_v14  ;;  %v1279_v31 = vpack.c.bf16 %v1027_v42, %v1027_v42  ;;  %v1280_v30 = vpack.c.bf16 %v1028_v52, %v1028_v52  ;;  %v1281_v36 = vpack.c.bf16 %v1029_v9, %v1029_v9 }
 0x1da   :  { %1144 = vst.msk [vmem:[%s2305_s5 + $0x2c] sm:$0xf] %vm1132_vm10, %v1269_v44  ;;  %1145 = vst.msk [vmem:[%s2305_s5 + $0x30] sm:$0xf] %vm1132_vm10, %v1270_v20  ;;  %v1282_v3 = vpack.c.bf16 %v1030_v7, %v1030_v7 }
 0x1db   :  { %1146 = vst.msk [vmem:[%s2305_s5 + $0x34] sm:$0xf] %vm1132_vm10, %v1271_v17  ;;  %1147 = vst.msk [vmem:[%s2305_s5 + $0x38] sm:$0xf] %vm1132_vm10, %v1272_v21 }
 0x1dc   :  { %1148 = vst.msk [vmem:[%s2305_s5 + $0x3c] sm:$0xf] %vm1132_vm10, %v1273_v24  ;;  %1149 = vst.msk [vmem:[%s2305_s5 + $0x40] sm:$0xf] %vm1132_vm10, %v1274_v27 }
 0x1dd   :  { %1150 = vst.msk [vmem:[%s2305_s5 + $0x44] sm:$0xf] %vm1132_vm10, %v1275_v33  ;;  %1151 = vst.msk [vmem:[%s2305_s5 + $0x48] sm:$0xf] %vm1132_vm10, %v1276_v51 }
 0x1de   :  { %1152 = vst.msk [vmem:[%s2305_s5 + $0x4c] sm:$0xf] %vm1132_vm10, %v1277_v62  ;;  %1153 = vst.msk [vmem:[%s2305_s5 + $0x50] sm:$0xf] %vm1132_vm10, %v1278_v34 }
 0x1df   :  { %1154 = vst.msk [vmem:[%s2305_s5 + $0x54] sm:$0xf] %vm1132_vm10, %v1279_v31  ;;  %1155 = vst.msk [vmem:[%s2305_s5 + $0x58] sm:$0xf] %vm1132_vm10, %v1280_v30 }
 0x1e0   :  { %1156 = vst.msk [vmem:[%s2305_s5 + $0x5c] sm:$0xf] %vm1132_vm10, %v1281_v36  ;;  %1157 = vst.msk [vmem:[%s2305_s5 + $0x60] sm:$0xf] %vm1132_vm10, %v1282_v3 }

// kernel: _lambda_.8
= control target key start
LH: loop header
LB: loop body
LE: loop exit
PB: predicated region body
PF: predicated region fallthrough
CT: control target
= control target key end

     0   :  { %vm324_vm0 = vcmask 261120   ;;  %s1507_s1 = inlined_call_operand.vmem [shape: bf16[288,32], index: 1, kind: input, shape index: {}]   ;;  %s1508_s0 = inlined_call_operand.vmem [shape: bf16[128,288], index: 0, kind: input, shape index: {}]   ;;  %s1509_s2 = inlined_call_operand.vmem [shape: f32[1,32], index: 2, kind: input, shape index: {}]   ;;  %s1510_s3 = inlined_call_operand.vmem [shape: f32[1,32], index: 3, kind: input, shape index: {}]   ;;  %s1511_s4 = inlined_call_operand.vmem [shape: f32[1,32], index: 4, kind: input, shape index: {}]   ;;  %s1512_s5 = inlined_call_operand.vmem [shape: bf16[128,32], index: 5, kind: output, shape index: {}]  }
   0x1   :  { %v1029_v0 = vld [vmem:[%s1507_s1 + $0x78] sm:$0xff]   ;;  %v1031_v2 = vld [vmem:[%s1507_s1 + $0x70] sm:$0xff]   ;;  %v1033_v4 = vld [vmem:[%s1507_s1 + $0x68] sm:$0xff]  }
   0x2   :  { %v1030_v1 = vld [vmem:[%s1507_s1 + $0x38] sm:$0xff]   ;;  %919 = vmatprep.subr.bf16.mxu0 %v1029_v0  ;;  %1013 = vmatprep.subr.bf16.mxu1 %v1029_v0  ;;  %v1032_v3 = vld [vmem:[%s1507_s1 + $0x30] sm:$0xff]   ;;  %v1034_v5 = vld [vmem:[%s1507_s1 + $0x28] sm:$0xff]  }
   0x3   :  { %920 = vmatpush3.bf16.msra.mxu0 %v1030_v1  ;;  %1021 = vmatpush3.bf16.msra.mxu1 %v1030_v1  ;;  %v1035_v6 = vld [vmem:[%s1507_s1 + $0x60] sm:$0xff]   ;;  %v1037_v8 = vld [vmem:[%s1507_s1 + $0x58] sm:$0xff]   ;;  %v1039_v10 = vld [vmem:[%s1507_s1 + $0x50] sm:$0xff]  }
   0x4   :  { %921 = vmatprep.subr.bf16.mxu0 %v1031_v2  ;;  %1014 = vmatprep.subr.bf16.mxu1 %v1031_v2  ;;  %v1036_v7 = vld [vmem:[%s1507_s1 + $0x20] sm:$0xff]   ;;  %v1038_v9 = vld [vmem:[%s1507_s1 + $0x18] sm:$0xff]   ;;  %v1040_v13 = vld [vmem:[%s1507_s1 + $0x10] sm:$0xff]  }
   0x5   :  { %v1047_v11 = vld [vmem:[%s1508_s0 + $0x4] ss:$12 sps:$4 sm:$0xff]   ;;  %v1050_v12 = vld [vmem:[%s1508_s0 + $0x94] ss:$12 sps:$4 sm:$0xff]   ;;  %v1041_v14 = vld [vmem:[%s1507_s1 + $0x48] sm:$0xff]  }
   0x6   :  { %381 = vmatprep.mubr.bf16.mxu0 %v1047_v11  ;;  %429 = vmatprep.mubr.bf16.mxu1 %v1050_v12  ;;  %v1042_v15 = vld [vmem:[%s1507_s1 + $0x8] sm:$0xff]   ;;  %v1043_v16 = vld [vmem:[%s1507_s1 + $0x40] sm:$0xff]   ;;  %v1048_v20 = vld [vmem:[%s1508_s0 + $0x90] ss:$12 sps:$4 sm:$0xff]  }
   0x7   :  { %922 = vmatpush3.bf16.msra.mxu0 %v1032_v3  ;;  %1022 = vmatpush3.bf16.msra.mxu1 %v1032_v3  ;;  %v1044_v17 = vld [vmem:[%s1507_s1] sm:$0xff]   ;;  %v1055_v19 = vld [vmem:[%s1507_s1 + $0x88] sm:$0xff]   ;;  %v1062_v28 = vld [vmem:[%s1508_s0 + $0x30] ss:$12 sps:$4 sm:$0xff]  }
   0x8   :  { %923 = vmatprep.subr.bf16.mxu0 %v1033_v4  ;;  %1015 = vmatprep.subr.bf16.mxu1 %v1033_v4  ;;  %v1045_v18 = vld [vmem:[%s1508_s0] ss:$12 sps:$4 sm:$0xff]   ;;  %v1051_v21 = vld [vmem:[%s1508_s0 + $0x1c] ss:$12 sps:$4 sm:$0xff]   ;;  %v1056_v24 = vld [vmem:[%s1508_s0 + $0x18] ss:$12 sps:$4 sm:$0xff]  }
   0x9   :  { %v1053_v22 = vld [vmem:[%s1508_s0 + $0xac] ss:$12 sps:$4 sm:$0xff]   ;;  %v1058_v23 = vld [vmem:[%s1507_s1 + $0x80] sm:$0xff]   ;;  %v1057_v25 = vld [vmem:[%s1508_s0 + $0xa8] ss:$12 sps:$4 sm:$0xff]  }
   0xa   :  { %v1059_v26 = vld [vmem:[%s1508_s0 + $0x34] ss:$12 sps:$4 sm:$0xff]   ;;  %v1064_v30 = vld [vmem:[%s1508_s0 + $0x4c] ss:$12 sps:$4 sm:$0xff]   ;;  %v1068_v33 = vld [vmem:[%s1508_s0 + $0x50] ss:$12 sps:$4 sm:$0xff]  }
   0xb   :  { %924 = vmatpush3.bf16.msra.mxu0 %v1034_v5  ;;  %1023 = vmatpush3.bf16.msra.mxu1 %v1034_v5  ;;  %v1061_v27 = vld [vmem:[%s1508_s0 + $0x8] ss:$12 sps:$4 sm:$0xff]   ;;  %v1063_v29 = vld [vmem:[%s1508_s0 + $0x20] ss:$12 sps:$4 sm:$0xff]   ;;  %v1066_v31 = vld [vmem:[%s1508_s0 + $0x38] ss:$12 sps:$4 sm:$0xff]  }
   0xc   :  { %925 = vmatprep.subr.bf16.mxu0 %v1035_v6  ;;  %1016 = vmatprep.subr.bf16.mxu1 %v1035_v6  ;;  %v1067_v32 = vld [vmem:[%s1508_s0 + $0x48] ss:$12 sps:$4 sm:$0xff]   ;;  %v1069_v34 = vld [vmem:[%s1508_s0 + $0x64] ss:$12 sps:$4 sm:$0xff]   ;;  %v1072_v36 = vld [vmem:[%s1508_s0 + $0x60] ss:$12 sps:$4 sm:$0xff]  }
   0xd   :  { %v1071_v35 = vld [vmem:[%s1508_s0 + $0x68] ss:$12 sps:$4 sm:$0xff]   ;;  %v1073_v37 = vld [vmem:[%s1508_s0 + $0x80] ss:$12 sps:$4 sm:$0xff]   ;;  %v1076_v39 = vld [vmem:[%s1508_s0 + $0x98] ss:$12 sps:$4 sm:$0xff]  }
   0xe   :  { %v1074_v38 = vld [vmem:[%s1508_s0 + $0x7c] ss:$12 sps:$4 sm:$0xff]   ;;  %v1077_v40 = vld [vmem:[%s1508_s0 + $0x78] ss:$12 sps:$4 sm:$0xff]   ;;  %v1264_v60 = vld [vmem:[%s1509_s2] ss:$0 sm:$0xff] }
   0xf   :  { %926 = vmatpush3.bf16.msra.mxu0 %v1036_v7  ;;  %1024 = vmatpush3.bf16.msra.mxu1 %v1036_v7  ;;  %v1078_v41 = vld [vmem:[%s1508_s0 + $0xb0] ss:$12 sps:$4 sm:$0xff]  }
  0x10   :  { %927 = vmatprep.subr.bf16.mxu0 %v1037_v8  ;;  %1017 = vmatprep.subr.bf16.mxu1 %v1037_v8 }
  0x13   :  { %928 = vmatpush3.bf16.msra.mxu0 %v1038_v9  ;;  %1025 = vmatpush3.bf16.msra.mxu1 %v1038_v9 }
  0x14   :  { %929 = vmatprep.subr.bf16.mxu0 %v1039_v10  ;;  %1018 = vmatprep.subr.bf16.mxu1 %v1039_v10 }
  0x17   :  { %930 = vmatpush3.bf16.msra.mxu0 %v1040_v13  ;;  %1026 = vmatpush3.bf16.msra.mxu1 %v1040_v13 }
  0x18   :  { %931 = vmatprep.subr.bf16.mxu0 %v1041_v14  ;;  %1019 = vmatprep.subr.bf16.mxu1 %v1041_v14 }
  0x1b   :  { %932 = vmatpush3.bf16.msra.mxu0 %v1042_v15  ;;  %1027 = vmatpush3.bf16.msra.mxu1 %v1042_v15 }
  0x1c   :  { %933 = vmatprep.subr.bf16.mxu0 %v1043_v16  ;;  %1020 = vmatprep.subr.bf16.mxu1 %v1043_v16 }
  0x1f   :  { %934 = vmatpush3.bf16.msra.mxu0 %v1044_v17  ;;  %1028 = vmatpush3.bf16.msra.mxu1 %v1044_v17 }
  0x20   :  { %993 = vmatprep.subr.bf16.mxu1 %v1055_v19 }
  0x22   :  { %382 = vmatmul.mubr.bf16.vlgmr.msra.gmra.mxu0 %v1045_v18  ;;  %430 = vmatmul.mubr.bf16.vlgmr.msra.gmra.mxu1 %v1048_v20 }
  0x23   :  { %389 = vmatprep.mubr.bf16.mxu0 %v1051_v21  ;;  %437 = vmatprep.mubr.bf16.mxu1 %v1053_v22 }
  0x24   :  { %994 = vmatpush3.bf16.msra.mxu1 %v1055_v19 }
  0x25   :  { %995 = vmatprep.subr.bf16.mxu1 %v1058_v23 }
  0x28   :  { %996 = vmatpush3.bf16.msra.mxu1 %v1058_v23 }
  0x2a   :  { %390 = vmatmul.mubr.bf16.gmra.mxu0 %v1056_v24  ;;  %438 = vmatmul.mubr.bf16.gmra.mxu1 %v1057_v25 }
  0x2b   :  { %397 = vmatprep.mubr.bf16.mxu0 %v1059_v26  ;;  %997 = vmatprep.mubr.msk.bf16.mxu1 %vm324_vm0, %v1061_v27 }
  0x32   :  { %398 = vmatmul.mubr.bf16.gmra.mxu0 %v1062_v28  ;;  %998 = vmatmul.mubr.msk.bf16.vlgmr.msra.gmra.mxu1 %vm324_vm0, %v1063_v29 }
  0x33   :  { %405 = vmatprep.mubr.bf16.mxu0 %v1064_v30  ;;  %1001 = vmatprep.mubr.msk.bf16.mxu1 %vm324_vm0, %v1066_v31 }
  0x3a   :  { %406 = vmatmul.mubr.bf16.gmra.mxu0 %v1067_v32  ;;  %1002 = vmatmul.mubr.msk.bf16.gmra.mxu1 %vm324_vm0, %v1068_v33 }
  0x3b   :  { %413 = vmatprep.mubr.bf16.mxu0 %v1069_v34  ;;  %1005 = vmatprep.mubr.msk.bf16.mxu1 %vm324_vm0, %v1071_v35 }
  0x42   :  { %414 = vmatmul.mubr.bf16.gmra.mxu0 %v1072_v36  ;;  %1006 = vmatmul.mubr.msk.bf16.gmra.mxu1 %vm324_vm0, %v1073_v37 }
  0x43   :  { %421 = vmatprep.mubr.bf16.mxu0 %v1074_v38  ;;  %1009 = vmatprep.mubr.msk.bf16.mxu1 %vm324_vm0, %v1076_v39 }
  0x4a   :  { %422 = vmatmul.mubr.bf16.gmra.mxu0 %v1077_v40  ;;  %1010 = vmatmul.mubr.msk.bf16.gmra.mxu1 %vm324_vm0, %v1078_v41 }
  0xe2   :  { %v935_v42 = vpop.f32.mrf.mxu0  ;;  %v1245_v43 = vpop.f32.mrf.mxu1 }
  0xe4   :  { %v936_v44 = vpop.f32.mrf.mxu0  ;;  %v1247_v45 = vpop.f32.mrf.mxu1 }
  0xe5   :  { %v937_v58 = vadd.f32 %v936_v44, %v935_v42 }
  0xe6   :  { %v938_v46 = vpop.f32.mrf.mxu0  ;;  %v1249_v47 = vpop.f32.mrf.mxu1 }
  0xe7   :  { %v384_v3 = vadd.f32 %v937_v58, %v1264_v60 }
  0xe8   :  { %v939_v48 = vpop.f32.mrf.mxu0  ;;  %v1251_v49 = vpop.f32.mrf.mxu1 }
  0xe9   :  { %v940_v62 = vadd.f32 %v939_v48, %v938_v46 }
  0xea   :  { %v941_v50 = vpop.f32.mrf.mxu0  ;;  %v1253_v51 = vpop.f32.mrf.mxu1 }
  0xeb   :  { %v387_v8 = vadd.f32 %v940_v62, %v1264_v60 }
  0xec   :  { %v942_v52 = vpop.f32.mrf.mxu0  ;;  %v1255_v53 = vpop.f32.mrf.mxu1 }
  0xed   :  { %v943_v63 = vadd.f32 %v942_v52, %v941_v50 }
  0xee   :  { %v944_v54 = vpop.f32.mrf.mxu0  ;;  %v1257_v55 = vpop.f32.mrf.mxu1 }
  0xef   :  { %v392_v6 = vadd.f32 %v943_v63, %v1264_v60 }
  0xf0   :  { %v945_v56 = vpop.f32.mrf.mxu0  ;;  %v1259_v57 = vpop.f32.mrf.mxu1 }
  0xf1   :  { %v946_v2 = vadd.f32 %v945_v56, %v944_v54 }
  0xf2   :  { %v947_v59 = vpop.f32.mrf.mxu0  ;;  %v999_v61 = vpop.f32.mrf.mxu1 }
  0xf3   :  { %v1271_v11 = vadd.f32 %v999_v61, %v392_v6  ;;  %v395_v13 = vadd.f32 %v946_v2, %v1264_v60 }
  0xf4   :  { %v948_v0 = vpop.f32.mrf.mxu0  ;;  %v480_v1 = vpop.f32.mrf.mxu1 }
  0xf5   :  { %v1268_v7 = vadd.f32 %v480_v1, %v384_v3  ;;  %v949_v12 = vadd.f32 %v948_v0, %v947_v59  ;;  %v546_v24 = vsel %vm324_vm0, %v1271_v11, 0.0 }
  0xf6   :  { %v950_v4 = vpop.f32.mrf.mxu0  ;;  %v1000_v5 = vpop.f32.mrf.mxu1 }
  0xf7   :  { %v543_v17 = vsel %vm324_vm0, %v1268_v7, 0.0  ;;  %v1278_v18 = vadd.f32 %v1000_v5, %v395_v13  ;;  %v400_v25 = vadd.f32 %v949_v12, %v1264_v60 }
  0xf8   :  { %v951_v9 = vpop.f32.mrf.mxu0  ;;  %v483_v10 = vpop.f32.mrf.mxu1 }
  0xf9   :  { %v1274_v14 = vadd.f32 %v483_v10, %v387_v8  ;;  %v952_v19 = vadd.f32 %v951_v9, %v950_v4  ;;  %v548_v29 = vsel %vm324_vm0, %v1278_v18, 0.0 }
  0xfa   :  { %v953_v15 = vpop.f32.mrf.mxu0  ;;  %v1003_v16 = vpop.f32.mrf.mxu1 }
  0xfb   :  { %v544_v20 = vsel %vm324_vm0, %v1274_v14, 0.0  ;;  %v403_v32 = vadd.f32 %v952_v19, %v1264_v60 }
  0xfc   :  { %v545_v21 = vadd.f32 %v544_v20, %v543_v17  ;;  %v954_v22 = vpop.f32.mrf.mxu0  ;;  %v496_v23 = vpop.f32.mrf.mxu1  ;;  %v973_v17 = vadd.f32 %v1247_v45, %v1245_v43  ;;  %v979_v43 = vadd.f32 %v1255_v53, %v1253_v51 }
  0xfd   :  { %v955_v30 = vadd.f32 %v954_v22, %v953_v15  ;;  %v1287_v31 = vadd.f32 %v496_v23, %v400_v25 }
  0xfe   :  { %v547_v26 = vadd.f32 %v546_v24, %v545_v21  ;;  %v956_v27 = vpop.f32.mrf.mxu0  ;;  %v1004_v28 = vpop.f32.mrf.mxu1  ;;  %v976_v24 = vadd.f32 %v1251_v49, %v1249_v47  ;;  %v982_v47 = vadd.f32 %v1259_v57, %v1257_v55  ;;  %v440_v51 = vadd.f32 %v979_v43, %v1264_v60 }
  0xff   :  { %v408_v40 = vadd.f32 %v955_v30, %v1264_v60  ;;  %v550_v41 = vsel %vm324_vm0, %v1287_v31, 0.0 }
 0x100   :  { %v549_v33 = vadd.f32 %v548_v29, %v547_v26  ;;  %v957_v34 = vpop.f32.mrf.mxu0  ;;  %v499_v35 = vpop.f32.mrf.mxu1  ;;  %v432_v29 = vadd.f32 %v973_v17, %v1264_v60  ;;  %v443_v57 = vadd.f32 %v982_v47, %v1264_v60 }
 0x101   :  { %v958_v36 = vadd.f32 %v957_v34, %v956_v27  ;;  %v1290_v37 = vadd.f32 %v499_v35, %v403_v32  ;;  %v1298_v58 = vadd.f32 %v1003_v16, %v408_v40  ;;  %v435_v35 = vadd.f32 %v976_v24, %v1264_v60 }
 0x102   :  { %v959_v38 = vpop.f32.mrf.mxu0  ;;  %v1007_v39 = vpop.f32.mrf.mxu1  ;;  %v551_v42 = vadd.f32 %v550_v41, %v549_v33 }
 0x103   :  { %v411_v48 = vadd.f32 %v958_v36, %v1264_v60  ;;  %v552_v50 = vsel %vm324_vm0, %v1290_v37, 0.0  ;;  %v554_v4 = vsel %vm324_vm0, %v1298_v58, 0.0 }
 0x104   :  { %v960_v44 = vpop.f32.mrf.mxu0  ;;  %v512_v46 = vpop.f32.mrf.mxu1  ;;  %v553_v61 = vadd.f32 %v552_v50, %v551_v42 }
 0x105   :  { %v961_v52 = vadd.f32 %v960_v44, %v959_v38  ;;  %v1301_v0 = vadd.f32 %v1004_v28, %v411_v48 }
 0x106   :  { %v962_v54 = vpop.f32.mrf.mxu0  ;;  %v1008_v56 = vpop.f32.mrf.mxu1  ;;  %v555_v8 = vadd.f32 %v554_v4, %v553_v61 }
 0x107   :  { %v416_v59 = vadd.f32 %v961_v52, %v1264_v60  ;;  %v556_v12 = vsel %vm324_vm0, %v1301_v0, 0.0 }
 0x108   :  { %v963_v62 = vpop.f32.mrf.mxu0  ;;  %v515_v63 = vpop.f32.mrf.mxu1  ;;  %v557_v21 = vadd.f32 %v556_v12, %v555_v8 }
 0x109   :  { %v964_v1 = vadd.f32 %v963_v62, %v962_v54  ;;  %v1305_v5 = vadd.f32 %v512_v46, %v416_v59 }
 0x10a   :  { %v965_v2 = vpop.f32.mrf.mxu0  ;;  %v1011_v3 = vpop.f32.mrf.mxu1 }
 0x10b   :  { %v419_v6 = vadd.f32 %v964_v1, %v1264_v60  ;;  %v558_v19 = vsel %vm324_vm0, %v1305_v5, 0.0  ;;  %v1341_v40 = vadd.f32 %v1011_v3, %v440_v51 }
 0x10c   :  { %v966_v9 = vpop.f32.mrf.mxu0  ;;  %v528_v10 = vpop.f32.mrf.mxu1  ;;  %v559_v28 = vadd.f32 %v558_v19, %v557_v21 }
 0x10d   :  { %v1310_v13 = vadd.f32 %v515_v63, %v419_v6  ;;  %v967_v15 = vadd.f32 %v966_v9, %v965_v2  ;;  %v1331_v49 = vadd.f32 %v528_v10, %v432_v29  ;;  %v570_v48 = vsel %vm324_vm0, %v1341_v40, 0.0 }
 0x10e   :  { %v968_v16 = vpop.f32.mrf.mxu0  ;;  %v1012_v22 = vpop.f32.mrf.mxu1 }
 0x10f   :  { %v424_v20 = vadd.f32 %v967_v15, %v1264_v60  ;;  %v560_v25 = vsel %vm324_vm0, %v1310_v13, 0.0  ;;  %v566_v55 = vsel %vm324_vm0, %v1331_v49, 0.0  ;;  %v1346_v42 = vadd.f32 %v1012_v22, %v443_v57 }
 0x110   :  { %v969_v23 = vpop.f32.mrf.mxu0  ;;  %v561_v32 = vadd.f32 %v560_v25, %v559_v28  ;;  %v531_v33 = vpop.f32.mrf.mxu1 }
 0x111   :  { %v1321_v26 = vadd.f32 %v1007_v39, %v424_v20  ;;  %v970_v27 = vadd.f32 %v969_v23, %v968_v16  ;;  %v1339_v38 = vadd.f32 %v531_v33, %v435_v35  ;;  %v572_v52 = vsel %vm324_vm0, %v1346_v42, 0.0 }
 0x113   :  { %v562_v45 = vsel %vm324_vm0, %v1321_v26, 0.0  ;;  %v427_v30 = vadd.f32 %v970_v27, %v1264_v60  ;;  %v568_v44 = vsel %vm324_vm0, %v1339_v38, 0.0 }
 0x114   :  { %v563_v36 = vadd.f32 %v562_v45, %v561_v32 }
 0x115   :  { %v1333_v34 = vadd.f32 %v1008_v56, %v427_v30 }
 0x117   :  { %v564_v53 = vsel %vm324_vm0, %v1333_v34, 0.0 }
 0x118   :  { %v565_v39 = vadd.f32 %v564_v53, %v563_v36 }
 0x11a   :  { %v567_v41 = vadd.f32 %v566_v55, %v565_v39 }
 0x11c   :  { %v569_v46 = vadd.f32 %v568_v44, %v567_v41 }
 0x11e   :  { %v571_v50 = vadd.f32 %v570_v48, %v569_v46 }
 0x120   :  { %v573_v54 = vadd.f32 %v572_v52, %v571_v50 }
 0x122   :  { %v574_v56 = vrot.slane %v573_v54, 4 }
 0x124   :  { %v575_v59 = vadd.f32 %v574_v56, %v573_v54 }
 0x126   :  { %v576_v61 = vrot.slane %v575_v59, 2 }
 0x128   :  { %v577_v62 = vadd.f32 %v576_v61, %v575_v59 }
 0x12a   :  { %v578_v60 = vrot.slane %v577_v62, 1 }
 0x12c   :  { %v579_v63 = vadd.f32 %v578_v60, %v577_v62 }
 0x12e   :  { %v1354_v1 = vmul.f32 0.0078125, %v579_v63 }
 0x130   :  { %v582_v2 = vsub.f32 %v1268_v7, %v1354_v1  ;;  %v583_v3 = vsub.f32 %v1274_v14, %v1354_v1  ;;  %v584_v4 = vsub.f32 %v1271_v11, %v1354_v1  ;;  %v585_v6 = vsub.f32 %v1278_v18, %v1354_v1 }
 0x131   :  { %v586_v10 = vsub.f32 %v1287_v31, %v1354_v1  ;;  %v587_v15 = vsub.f32 %v1290_v37, %v1354_v1  ;;  %v588_v21 = vsub.f32 %v1298_v58, %v1354_v1  ;;  %v589_v25 = vsub.f32 %v1301_v0, %v1354_v1 }
 0x132   :  { %v598_v8 = vmul.f32 %v582_v2, %v582_v2  ;;  %v599_v9 = vmul.f32 %v583_v3, %v583_v3  ;;  %v600_v12 = vmul.f32 %v584_v4, %v584_v4  ;;  %v601_v16 = vmul.f32 %v585_v6, %v585_v6 }
 0x133   :  { %v602_v22 = vmul.f32 %v586_v10, %v586_v10  ;;  %v603_v27 = vmul.f32 %v587_v15, %v587_v15  ;;  %v590_v45 = vsub.f32 %v1305_v5, %v1354_v1  ;;  %v604_v29 = vmul.f32 %v588_v21, %v588_v21 }
 0x134   :  { %v614_v17 = vsel %vm324_vm0, %v598_v8, 0.0  ;;  %v615_v19 = vsel %vm324_vm0, %v599_v9, 0.0  ;;  %v617_v23 = vsel %vm324_vm0, %v600_v12, 0.0  ;;  %v619_v28 = vsel %vm324_vm0, %v601_v16, 0.0 }
 0x135   :  { %v616_v20 = vadd.f32 %v615_v19, %v614_v17  ;;  %v621_v30 = vsel %vm324_vm0, %v602_v22, 0.0  ;;  %v591_v33 = vsub.f32 %v1310_v13, %v1354_v1  ;;  %v605_v47 = vmul.f32 %v589_v25, %v589_v25 }
 0x136   :  { %v623_v35 = vsel %vm324_vm0, %v603_v27, 0.0  ;;  %v592_v51 = vsub.f32 %v1321_v26, %v1354_v1  ;;  %v606_v53 = vmul.f32 %v590_v45, %v590_v45  ;;  %v625_v39 = vsel %vm324_vm0, %v604_v29, 0.0 }
 0x137   :  { %v618_v24 = vadd.f32 %v617_v23, %v616_v20  ;;  %v593_v57 = vsub.f32 %v1333_v34, %v1354_v1  ;;  %v607_v41 = vmul.f32 %v591_v33, %v591_v33  ;;  %v627_v44 = vsel %vm324_vm0, %v605_v47, 0.0  ;;  %v652_v47 = vld [vmem:[%s1510_s3] sm:$0x1] }
 0x138   :  { %v594_v48 = vsub.f32 %v1331_v49, %v1354_v1  ;;  %v608_v50 = vmul.f32 %v592_v51, %v592_v51  ;;  %v629_v52 = vsel %vm324_vm0, %v606_v53, 0.0  ;;  %v595_v56 = vsub.f32 %v1339_v38, %v1354_v1  ;;  %v656_v53 = vld [vmem:[%s1511_s4] sm:$0x1] }
 0x139   :  { %v620_v43 = vadd.f32 %v619_v28, %v618_v24  ;;  %v609_v59 = vmul.f32 %v593_v57, %v593_v57  ;;  %v631_v61 = vsel %vm324_vm0, %v607_v41, 0.0  ;;  %v596_v60 = vsub.f32 %v1341_v40, %v1354_v1 }
 0x13a   :  { %v610_v63 = vmul.f32 %v594_v48, %v594_v48  ;;  %v633_v2 = vsel %vm324_vm0, %v608_v50, 0.0  ;;  %v597_v4 = vsub.f32 %v1346_v42, %v1354_v1  ;;  %v611_v6 = vmul.f32 %v595_v56, %v595_v56 }
 0x13b   :  { %v622_v32 = vadd.f32 %v621_v30, %v620_v43  ;;  %v635_v8 = vsel %vm324_vm0, %v609_v59, 0.0  ;;  %v612_v10 = vmul.f32 %v596_v60, %v596_v60 }
 0x13c   :  { %v637_v12 = vsel %vm324_vm0, %v610_v63, 0.0  ;;  %v613_v16 = vmul.f32 %v597_v4, %v597_v4  ;;  %v639_v17 = vsel %vm324_vm0, %v611_v6, 0.0 }
 0x13d   :  { %v624_v36 = vadd.f32 %v623_v35, %v622_v32  ;;  %v641_v20 = vsel %vm324_vm0, %v612_v10, 0.0  ;;  %v660_v32 = vlaneseq }
 0x13e   :  { %v643_v22 = vsel %vm324_vm0, %v613_v16, 0.0 }
 0x13f   :  { %v626_v55 = vadd.f32 %v625_v39, %v624_v36  ;;  %v661_v33 = vshrl.u32 %v660_v32, 7 }
 0x141   :  { %v628_v46 = vadd.f32 %v627_v44, %v626_v55  ;;  %v662_v35 = vsub.s32 0, %v661_v33 }
 0x143   :  { %v630_v54 = vadd.f32 %v629_v52, %v628_v46 }
 0x145   :  { %v632_v62 = vadd.f32 %v631_v61, %v630_v54 }
 0x147   :  { %v634_v3 = vadd.f32 %v633_v2, %v632_v62 }
 0x149   :  { %v636_v9 = vadd.f32 %v635_v8, %v634_v3 }
 0x14b   :  { %v638_v15 = vadd.f32 %v637_v12, %v636_v9 }
 0x14d   :  { %v640_v19 = vadd.f32 %v639_v17, %v638_v15 }
 0x14f   :  { %v642_v21 = vadd.f32 %v641_v20, %v640_v19 }
 0x151   :  { %v644_v23 = vadd.f32 %v643_v22, %v642_v21 }
 0x153   :  { %v645_v24 = vrot.slane %v644_v23, 4 }
 0x155   :  { %v646_v25 = vadd.f32 %v645_v24, %v644_v23 }
 0x157   :  { %v647_v27 = vrot.slane %v646_v25, 2 }
 0x159   :  { %v648_v28 = vadd.f32 %v647_v27, %v646_v25 }
 0x15b   :  { %v649_v43 = vrot.slane %v648_v28, 1 }
 0x15d   :  { %v650_v45 = vadd.f32 %v649_v43, %v648_v28 }
 0x15f   :  { %v651_v29 = vmul.f32 0.0078125, %v650_v45 }
 0x161   :  { %v653_v30 = vadd.f32 1e-05, %v651_v29 }
 0x163   :  { %1079 = vrsqrt.f32 %v653_v30 }
 0x170   :  { %v1080_v36 = vpop.eup %1079 }
 0x171   :  { %v655_v51 = vmul.f32 %v1080_v36, %v652_v47 }
 0x173   :  { %v657_v39 = vmul.f32 %v655_v51, %v1354_v1  ;;  %v663_v55 = vrot.slane %v655_v51, %v662_v35 }
 0x175   :  { %v658_v57 = vsub.f32 %v656_v53, %v657_v39  ;;  %v665_v41 = vmul.f32 %v663_v55, %v1268_v7  ;;  %v666_v44 = vmul.f32 %v663_v55, %v1274_v14  ;;  %v667_v46 = vmul.f32 %v663_v55, %v1271_v11 }
 0x176   :  { %v668_v48 = vmul.f32 %v663_v55, %v1278_v18  ;;  %v669_v50 = vmul.f32 %v663_v55, %v1287_v31  ;;  %v670_v52 = vmul.f32 %v663_v55, %v1290_v37  ;;  %v671_v54 = vmul.f32 %v663_v55, %v1298_v58 }
 0x177   :  { %v672_v56 = vmul.f32 %v663_v55, %v1301_v0  ;;  %v673_v1 = vmul.f32 %v663_v55, %v1305_v5  ;;  %v674_v59 = vmul.f32 %v663_v55, %v1310_v13  ;;  %v675_v7 = vmul.f32 %v663_v55, %v1321_v26 }
 0x178   :  { %v676_v14 = vmul.f32 %v663_v55, %v1333_v34  ;;  %v685_v61 = vrot.slane %v658_v57, %v662_v35  ;;  %v677_v11 = vmul.f32 %v663_v55, %v1331_v49  ;;  %v678_v18 = vmul.f32 %v663_v55, %v1339_v38 }
 0x179   :  { %v679_v31 = vmul.f32 %v663_v55, %v1341_v40  ;;  %v680_v37 = vmul.f32 %v663_v55, %v1346_v42 }
 0x17a   :  { %v687_v58 = vadd.f32 %v685_v61, %v665_v41  ;;  %v688_v62 = vadd.f32 %v685_v61, %v666_v44  ;;  %v689_v0 = vadd.f32 %v685_v61, %v667_v46  ;;  %v690_v60 = vadd.f32 %v685_v61, %v668_v48 }
 0x17b   :  { %v691_v5 = vadd.f32 %v685_v61, %v669_v50  ;;  %v692_v63 = vadd.f32 %v685_v61, %v670_v52  ;;  %v693_v13 = vadd.f32 %v685_v61, %v671_v54  ;;  %v694_v2 = vadd.f32 %v685_v61, %v672_v56 }
 0x17c   :  { %v695_v26 = vadd.f32 %v685_v61, %v673_v1  ;;  %v696_v3 = vadd.f32 %v685_v61, %v674_v59  ;;  %v697_v34 = vadd.f32 %v685_v61, %v675_v7  ;;  %v698_v4 = vadd.f32 %v685_v61, %v676_v14 }
 0x17d   :  { %v699_v6 = vadd.f32 %v685_v61, %v677_v11  ;;  %v700_v49 = vadd.f32 %v685_v61, %v678_v18  ;;  %v701_v8 = vadd.f32 %v685_v61, %v679_v31  ;;  %v702_v38 = vadd.f32 %v685_v61, %v680_v37 }
 0x17e   :  { %vm704_vm2 = vcmp.gt.f32.partialorder %v688_v62, 0.0  ;;  %vm705_vm3 = vcmp.gt.f32.partialorder %v689_v0, 0.0  ;;  %vm706_vm4 = vcmp.gt.f32.partialorder %v690_v60, 0.0  ;;  %vm707_vm5 = vcmp.gt.f32.partialorder %v691_v5, 0.0 }
 0x17f   :  { %vm708_vm6 = vcmp.gt.f32.partialorder %v692_v63, 0.0  ;;  %vm710_vm8 = vcmp.gt.f32.partialorder %v694_v2, 0.0  ;;  %vm711_vm9 = vcmp.gt.f32.partialorder %v695_v26, 0.0  ;;  %vm712_vm10 = vcmp.gt.f32.partialorder %v696_v3, 0.0 }
 0x180   :  { %vm713_vm11 = vcmp.gt.f32.partialorder %v697_v34, 0.0  ;;  %vm714_vm12 = vcmp.gt.f32.partialorder %v698_v4, 0.0  ;;  %vm715_vm13 = vcmp.gt.f32.partialorder %v699_v6, 0.0  ;;  %vm716_vm14 = vcmp.gt.f32.partialorder %v700_v49, 0.0 }
 0x181   :  { %vm717_vm15 = vcmp.gt.f32.partialorder %v701_v8, 0.0  ;;  %vm718_vm0 = vcmp.gt.f32.partialorder %v702_v38, 0.0  ;;  %v719_v40 = vmul.f32 0.2, %v687_v58  ;;  %v720_v42 = vmul.f32 0.2, %v688_v62 }
 0x182   :  { %v721_v9 = vmul.f32 0.2, %v689_v0  ;;  %v722_v10 = vmul.f32 0.2, %v690_v60  ;;  %v723_v12 = vmul.f32 0.2, %v691_v5 }
 0x183   :  { %v724_v15 = vmul.f32 0.2, %v692_v63  ;;  %v725_v16 = vmul.f32 0.2, %v693_v13  ;;  %v726_v17 = vmul.f32 0.2, %v694_v2  ;;  %v736_v24 = vsel %vm704_vm2, %v688_v62, %v720_v42 }
 0x184   :  { %v727_v19 = vmul.f32 0.2, %v695_v26  ;;  %vm1513_vm7 = vcmp.gt.f32.partialorder %v687_v58, 0.0  ;;  %v728_v21 = vmul.f32 0.2, %v696_v3  ;;  %v737_v43 = vsel %vm705_vm3, %v689_v0, %v721_v9 }
 0x185   :  { %v735_v20 = vsel %vm1513_vm7, %v687_v58, %v719_v40  ;;  %v729_v22 = vmul.f32 0.2, %v697_v34  ;;  %v730_v23 = vmul.f32 0.2, %v698_v4  ;;  %v731_v25 = vmul.f32 0.2, %v699_v6 }
 0x186   :  { %v732_v27 = vmul.f32 0.2, %v700_v49  ;;  %v733_v28 = vmul.f32 0.2, %v701_v8  ;;  %v734_v45 = vmul.f32 0.2, %v702_v38  ;;  %v738_v29 = vsel %vm706_vm4, %v690_v60, %v722_v10 }
 0x187   :  { %v739_v30 = vsel %vm707_vm5, %v691_v5, %v723_v12  ;;  %v740_v32 = vsel %vm708_vm6, %v692_v63, %v724_v15  ;;  %vm1514_vm1 = vcmp.gt.f32.partialorder %v693_v13, 0.0  ;;  %v742_v47 = vsel %vm710_vm8, %v694_v2, %v726_v17 }
 0x188   :  { %v741_v33 = vsel %vm1514_vm1, %v693_v13, %v725_v16  ;;  %v743_v35 = vsel %vm711_vm9, %v695_v26, %v727_v19  ;;  %v744_v36 = vsel %vm712_vm10, %v696_v3, %v728_v21  ;;  %v745_v51 = vsel %vm713_vm11, %v697_v34, %v729_v22 }
 0x189   :  { %v746_v53 = vsel %vm714_vm12, %v698_v4, %v730_v23  ;;  %v747_v39 = vsel %vm715_vm13, %v699_v6, %v731_v25  ;;  %v748_v55 = vsel %vm716_vm14, %v700_v49, %v732_v27  ;;  %v749_v57 = vsel %vm717_vm15, %v701_v8, %v733_v28 }
 0x18a   :  { %v750_v41 = vsel %vm718_vm0, %v702_v38, %v734_v45  ;;  %v903_v44 = vpack.c.bf16 %v735_v20, %v735_v20  ;;  %v904_v46 = vpack.c.bf16 %v736_v24, %v736_v24  ;;  %v905_v48 = vpack.c.bf16 %v737_v43, %v737_v43 }
 0x18b   :  { %v906_v50 = vpack.c.bf16 %v738_v29, %v738_v29  ;;  %v907_v52 = vpack.c.bf16 %v739_v30, %v739_v30  ;;  %v908_v54 = vpack.c.bf16 %v740_v32, %v740_v32  ;;  %v909_v56 = vpack.c.bf16 %v741_v33, %v741_v33 }
 0x18c   :  { %v910_v1 = vpack.c.bf16 %v742_v47, %v742_v47  ;;  %v911_v59 = vpack.c.bf16 %v743_v35, %v743_v35  ;;  %v912_v7 = vpack.c.bf16 %v744_v36, %v744_v36  ;;  %vm1515_vm1 = vcmask 257024  }
 0x18d   :  { %816 = vst.msk [vmem:[%s1512_s5] sm:$0xf] %vm1515_vm1, %v903_v44  ;;  %vm1516_vm2 = vmmov %vm1515_vm1  ;;  %v913_v14 = vpack.c.bf16 %v745_v51, %v745_v51  ;;  %v914_v61 = vpack.c.bf16 %v746_v53, %v746_v53  ;;  %v915_v11 = vpack.c.bf16 %v747_v39, %v747_v39  ;;  %v916_v18 = vpack.c.bf16 %v748_v55, %v748_v55 }
 0x18e   :  { %817 = vst.msk [vmem:[%s1512_s5 + $0x4] sm:$0xf] %vm1516_vm2, %v904_v46  ;;  %vm1517_vm3 = vmmov %vm1515_vm1  ;;  %v917_v31 = vpack.c.bf16 %v749_v57, %v749_v57  ;;  %v918_v37 = vpack.c.bf16 %v750_v41, %v750_v41 }
 0x18f   :  { %818 = vst.msk [vmem:[%s1512_s5 + $0x8] sm:$0xf] %vm1517_vm3, %v905_v48  ;;  %vm1518_vm4 = vmmov %vm1515_vm1 }
 0x190   :  { %819 = vst.msk [vmem:[%s1512_s5 + $0xc] sm:$0xf] %vm1518_vm4, %v906_v50  ;;  %vm1519_vm5 = vmmov %vm1515_vm1 }
 0x191   :  { %820 = vst.msk [vmem:[%s1512_s5 + $0x10] sm:$0xf] %vm1519_vm5, %v907_v52  ;;  %vm1520_vm6 = vmmov %vm1515_vm1 }
 0x192   :  { %821 = vst.msk [vmem:[%s1512_s5 + $0x14] sm:$0xf] %vm1520_vm6, %v908_v54  ;;  %vm1521_vm7 = vmmov %vm1515_vm1 }
 0x193   :  { %822 = vst.msk [vmem:[%s1512_s5 + $0x18] sm:$0xf] %vm1521_vm7, %v909_v56  ;;  %vm1522_vm8 = vmmov %vm1515_vm1 }
 0x194   :  { %823 = vst.msk [vmem:[%s1512_s5 + $0x1c] sm:$0xf] %vm1522_vm8, %v910_v1  ;;  %vm1523_vm9 = vmmov %vm1515_vm1 }
 0x195   :  { %824 = vst.msk [vmem:[%s1512_s5 + $0x20] sm:$0xf] %vm1523_vm9, %v911_v59  ;;  %vm1524_vm10 = vmmov %vm1515_vm1 }
 0x196   :  { %825 = vst.msk [vmem:[%s1512_s5 + $0x24] sm:$0xf] %vm1524_vm10, %v912_v7  ;;  %vm1525_vm11 = vmmov %vm1515_vm1 }
 0x197   :  { %826 = vst.msk [vmem:[%s1512_s5 + $0x28] sm:$0xf] %vm1525_vm11, %v913_v14  ;;  %vm1526_vm12 = vmmov %vm1515_vm1 }
 0x198   :  { %827 = vst.msk [vmem:[%s1512_s5 + $0x2c] sm:$0xf] %vm1526_vm12, %v914_v61  ;;  %vm1527_vm13 = vmmov %vm1515_vm1 }
 0x199   :  { %828 = vst.msk [vmem:[%s1512_s5 + $0x30] sm:$0xf] %vm1527_vm13, %v915_v11  ;;  %vm1528_vm14 = vmmov %vm1515_vm1 }
 0x19a   :  { %829 = vst.msk [vmem:[%s1512_s5 + $0x34] sm:$0xf] %vm1528_vm14, %v916_v18  ;;  %vm1529_vm15 = vmmov %vm1515_vm1 }
 0x19b   :  { %830 = vst.msk [vmem:[%s1512_s5 + $0x38] sm:$0xf] %vm1529_vm15, %v917_v31  ;;  %vm1530_vm0 = vmmov %vm1515_vm1 }
 0x19c   :  { %831 = vst.msk [vmem:[%s1512_s5 + $0x3c] sm:$0xf] %vm1530_vm0, %v918_v37 }

// kernel: _lambda_.9
= control target key start
LH: loop header
LB: loop body
LE: loop exit
PB: predicated region body
PF: predicated region fallthrough
CT: control target
= control target key end

     0   :  { %v585_v1 = vmov 0.0   ;;  %vm586_vm0 = vmmov 0   ;;  %vm256_vm1 = vcmask 261120   ;;  %vm416_vm2 = vcmask 7168   ;;  %s770_s1 = inlined_call_operand.vmem [shape: bf16[288,1], index: 1, kind: input, shape index: {}]   ;;  %s771_s0 = inlined_call_operand.vmem [shape: bf16[72,288], index: 0, kind: input, shape index: {}]   ;;  %s772_s2 = inlined_call_operand.<no memory space> [shape: f32[1,1], index: 2, kind: input, shape index: {}]   ;;  %s773_s3 = inlined_call_operand.vmem [shape: f32[72,1], index: 3, kind: output, shape index: {}]  }
   0x1   :  { %v548_v0 = vld [vmem:[%s770_s1 + $0x78] sm:$0xff]   ;;  %522 = vmatprep.subr.bf16.mxu1 %v585_v1  ;;  %526 = vmatprep.mubr.msk.bf16.mxu1 %vm586_vm0, %v585_v1  ;;  %v550_v3 = vld [vmem:[%s770_s1 + $0x70] sm:$0xff]   ;;  %v552_v5 = vld [vmem:[%s770_s1 + $0x68] sm:$0xff]   ;;  %v8_v35 = vstv %s772_s2 }
   0x2   :  { %v549_v2 = vld [vmem:[%s770_s1 + $0x38] sm:$0xff]   ;;  %469 = vmatprep.subr.bf16.mxu0 %v548_v0  ;;  %v551_v4 = vld [vmem:[%s770_s1 + $0x30] sm:$0xff]   ;;  %v553_v6 = vld [vmem:[%s770_s1 + $0x28] sm:$0xff]   ;;  %9 = vst [vmem:[#allocation2] sm:$0x1] %v8_v35 }
   0x3   :  { %470 = vmatpush3.bf16.msra.mxu0 %v549_v2  ;;  %v554_v7 = vld [vmem:[%s770_s1 + $0x60] sm:$0xff]   ;;  %v556_v9 = vld [vmem:[%s770_s1 + $0x58] sm:$0xff]   ;;  %v560_v10 = vld [vmem:[%s770_s1 + $0x88] sm:$0xff]  }
   0x4   :  { %471 = vmatprep.subr.bf16.mxu0 %v550_v3  ;;  %v555_v8 = vld [vmem:[%s770_s1 + $0x20] sm:$0xff]   ;;  %v557_v11 = vld [vmem:[%s770_s1 + $0x18] sm:$0xff]   ;;  %523 = vmatpush3.bf16.msra.mxu1 %v560_v10  ;;  %v558_v13 = vld [vmem:[%s770_s1 + $0x50] sm:$0xff]  }
   0x5   :  { %524 = vmatprep.subr.bf16.mxu1 %v585_v1  ;;  %v563_v12 = vld [vmem:[%s770_s1 + $0x80] sm:$0xff]   ;;  %v559_v14 = vld [vmem:[%s770_s1 + $0x10] sm:$0xff]   ;;  %v561_v16 = vld [vmem:[%s770_s1 + $0x48] sm:$0xff]  }
   0x6   :  { %v566_v15 = vld [vmem:[%s771_s0 + $0x8] ss:$12 sps:$4 sm:$0xff]   ;;  %v569_v17 = vld [vmem:[%s771_s0 + $0x4] ss:$12 sps:$4 sm:$0xff]   ;;  %v570_v20 = vld [vmem:[%s771_s0 + $0x20] ss:$12 sps:$4 sm:$0xff]  }
   0x7   :  { %472 = vmatpush3.bf16.msra.mxu0 %v551_v4  ;;  %304 = vmatprep.mubr.bf16.mxu0 %v569_v17  ;;  %v562_v18 = vld [vmem:[%s770_s1 + $0x8] sm:$0xff]   ;;  %v564_v19 = vld [vmem:[%s770_s1 + $0x40] sm:$0xff]   ;;  %v578_v27 = vld [vmem:[%s771_s0 + $0x50] ss:$12 sps:$4 sm:$0xff]  }
   0x8   :  { %473 = vmatprep.subr.bf16.mxu0 %v552_v5  ;;  %525 = vmatpush3.bf16.msra.mxu1 %v563_v12  ;;  %v565_v21 = vld [vmem:[%s770_s1] sm:$0xff]   ;;  %v571_v23 = vld [vmem:[%s771_s0 + $0x1c] ss:$12 sps:$4 sm:$0xff]   ;;  %v579_v29 = vld [vmem:[%s771_s0 + $0x4c] ss:$12 sps:$4 sm:$0xff]  }
   0x9   :  { %v567_v22 = vld [vmem:[%s771_s0] ss:$12 sps:$4 sm:$0xff]   ;;  %v574_v24 = vld [vmem:[%s771_s0 + $0x38] ss:$12 sps:$4 sm:$0xff]   ;;  %v577_v28 = vld [vmem:[%s771_s0 + $0x30] ss:$12 sps:$4 sm:$0xff]  }
   0xa   :  { %v573_v25 = vld [vmem:[%s771_s0 + $0x18] ss:$12 sps:$4 sm:$0xff]   ;;  %v575_v26 = vld [vmem:[%s771_s0 + $0x34] ss:$12 sps:$4 sm:$0xff]   ;;  %v582_v30 = vld [vmem:[%s771_s0 + $0x68] ss:$0 sps:$4 sm:$0xff]  }
   0xb   :  { %474 = vmatpush3.bf16.msra.mxu0 %v553_v6  ;;  %527 = vmatmul.mubr.msk.bf16.vlgmr.msra.gmra.mxu1 %vm256_vm1, %v566_v15  ;;  %v33_v31 = vld [vmem:[%s771_s0 + $0x60] sm:$0xff]  ;;  %v581_v32 = vld [vmem:[%s771_s0 + $0x48] ss:$12 sps:$4 sm:$0xff]  }
   0xc   :  { %475 = vmatprep.subr.bf16.mxu0 %v554_v7  ;;  %530 = vmatprep.mubr.msk.bf16.mxu1 %vm586_vm0, %v585_v1  ;;  %v444_v33 = vcombine.high %v33_v31, %v33_v31  ;;  %v443_v34 = vcombine.low %v33_v31, %v33_v31  ;;  %v723_v45 = vld [vmem:[#allocation2] ss:$0 sm:$0xff] }
   0xf   :  { %476 = vmatpush3.bf16.msra.mxu0 %v555_v8 }
  0x10   :  { %477 = vmatprep.subr.bf16.mxu0 %v556_v9 }
  0x13   :  { %478 = vmatpush3.bf16.msra.mxu0 %v557_v11  ;;  %531 = vmatmul.mubr.msk.bf16.gmra.mxu1 %vm256_vm1, %v570_v20 }
  0x14   :  { %479 = vmatprep.subr.bf16.mxu0 %v558_v13  ;;  %534 = vmatprep.mubr.msk.bf16.mxu1 %vm586_vm0, %v585_v1 }
  0x17   :  { %480 = vmatpush3.bf16.msra.mxu0 %v559_v14 }
  0x18   :  { %481 = vmatprep.subr.bf16.mxu0 %v561_v16 }
  0x1b   :  { %482 = vmatpush3.bf16.msra.mxu0 %v562_v18  ;;  %535 = vmatmul.mubr.msk.bf16.gmra.mxu1 %vm256_vm1, %v574_v24 }
  0x1c   :  { %483 = vmatprep.subr.bf16.mxu0 %v564_v19  ;;  %538 = vmatprep.mubr.msk.bf16.mxu1 %vm586_vm0, %v585_v1 }
  0x1f   :  { %484 = vmatpush3.bf16.msra.mxu0 %v565_v21 }
  0x22   :  { %305 = vmatmul.mubr.bf16.vlgmr.msra.gmra.mxu0 %v567_v22 }
  0x23   :  { %312 = vmatprep.mubr.bf16.mxu0 %v571_v23  ;;  %539 = vmatmul.mubr.msk.bf16.gmra.mxu1 %vm256_vm1, %v578_v27 }
  0x24   :  { %542 = vmatprep.mubr.msk.bf16.mxu1 %vm586_vm0, %v585_v1 }
  0x2a   :  { %313 = vmatmul.mubr.bf16.gmra.mxu0 %v573_v25 }
  0x2b   :  { %320 = vmatprep.mubr.bf16.mxu0 %v575_v26  ;;  %543 = vmatmul.mubr.msk.bf16.gmra.mxu1 %vm256_vm1, %v582_v30 }
  0x32   :  { %321 = vmatmul.mubr.bf16.gmra.mxu0 %v577_v28 }
  0x33   :  { %328 = vmatprep.mubr.bf16.mxu0 %v579_v29 }
  0x3a   :  { %329 = vmatmul.mubr.bf16.gmra.mxu0 %v581_v32 }
  0x3b   :  { %336 = vmatprep.mubr.bf16.mxu0 %v444_v33 }
  0x42   :  { %337 = vmatmul.mubr.bf16.gmra.mxu0 %v443_v34 }
  0xcb   :  { %v378_v36 = vpop.f32.mrf.mxu1 }
  0xcd   :  { %v528_v37 = vpop.f32.mrf.mxu1 }
  0xcf   :  { %v381_v38 = vpop.f32.mrf.mxu1 }
  0xd1   :  { %v529_v39 = vpop.f32.mrf.mxu1 }
  0xd3   :  { %v386_v40 = vpop.f32.mrf.mxu1 }
  0xd5   :  { %v532_v41 = vpop.f32.mrf.mxu1 }
  0xd7   :  { %v389_v42 = vpop.f32.mrf.mxu1 }
  0xd9   :  { %v533_v44 = vpop.f32.mrf.mxu1 }
  0xdb   :  { %v394_v48 = vpop.f32.mrf.mxu1 }
  0xdd   :  { %v536_v51 = vpop.f32.mrf.mxu1 }
  0xdf   :  { %v397_v55 = vpop.f32.mrf.mxu1 }
  0xe1   :  { %v537_v58 = vpop.f32.mrf.mxu1 }
  0xe2   :  { %v485_v43 = vpop.f32.mrf.mxu0 }
  0xe3   :  { %v402_v62 = vpop.f32.mrf.mxu1 }
  0xe4   :  { %v486_v46 = vpop.f32.mrf.mxu0 }
  0xe5   :  { %v487_v47 = vadd.f32 %v486_v46, %v485_v43  ;;  %v540_v1 = vpop.f32.mrf.mxu1 }
  0xe6   :  { %v488_v49 = vpop.f32.mrf.mxu0 }
  0xe7   :  { %v307_v50 = vadd.f32 %v487_v47, %v723_v45  ;;  %v405_v5 = vpop.f32.mrf.mxu1 }
  0xe8   :  { %v489_v52 = vpop.f32.mrf.mxu0 }
  0xe9   :  { %v379_v53 = vadd.f32 %v378_v36, %v307_v50  ;;  %v490_v54 = vadd.f32 %v489_v52, %v488_v49  ;;  %v541_v8 = vpop.f32.mrf.mxu1 }
  0xea   :  { %v491_v56 = vpop.f32.mrf.mxu0 }
  0xeb   :  { %417 = vst.msk [vmem:[%s773_s3] sm:$0xff] %vm416_vm2, %v379_v53  ;;  %v310_v57 = vadd.f32 %v490_v54, %v723_v45  ;;  %v410_v12 = vpop.f32.mrf.mxu1 }
  0xec   :  { %v492_v59 = vpop.f32.mrf.mxu0 }
  0xed   :  { %v382_v60 = vadd.f32 %v381_v38, %v310_v57  ;;  %v493_v61 = vadd.f32 %v492_v59, %v491_v56  ;;  %v544_v15 = vpop.f32.mrf.mxu1 }
  0xee   :  { %v494_v63 = vpop.f32.mrf.mxu0 }
  0xef   :  { %418 = vst.msk [vmem:[%s773_s3 + $0x8] sm:$0xff] %vm416_vm2, %v382_v60  ;;  %v315_v0 = vadd.f32 %v493_v61, %v723_v45  ;;  %v413_v19 = vpop.f32.mrf.mxu1 }
  0xf0   :  { %v495_v2 = vpop.f32.mrf.mxu0 }
  0xf1   :  { %v387_v3 = vadd.f32 %v386_v40, %v315_v0  ;;  %v496_v4 = vadd.f32 %v495_v2, %v494_v63  ;;  %v545_v22 = vpop.f32.mrf.mxu1 }
  0xf2   :  { %v497_v6 = vpop.f32.mrf.mxu0 }
  0xf3   :  { %419 = vst.msk [vmem:[%s773_s3 + $0x10] sm:$0xff] %vm416_vm2, %v387_v3  ;;  %v318_v7 = vadd.f32 %v496_v4, %v723_v45 }
  0xf4   :  { %v498_v9 = vpop.f32.mrf.mxu0 }
  0xf5   :  { %v390_v10 = vadd.f32 %v389_v42, %v318_v7  ;;  %v499_v11 = vadd.f32 %v498_v9, %v497_v6 }
  0xf6   :  { %v500_v13 = vpop.f32.mrf.mxu0 }
  0xf7   :  { %420 = vst.msk [vmem:[%s773_s3 + $0x18] sm:$0xff] %vm416_vm2, %v390_v10  ;;  %v323_v14 = vadd.f32 %v499_v11, %v723_v45 }
  0xf8   :  { %v501_v16 = vpop.f32.mrf.mxu0 }
  0xf9   :  { %v395_v17 = vadd.f32 %v394_v48, %v323_v14  ;;  %v502_v18 = vadd.f32 %v501_v16, %v500_v13 }
  0xfa   :  { %v503_v20 = vpop.f32.mrf.mxu0 }
  0xfb   :  { %421 = vst.msk [vmem:[%s773_s3 + $0x20] sm:$0xff] %vm416_vm2, %v395_v17  ;;  %v326_v21 = vadd.f32 %v502_v18, %v723_v45 }
  0xfc   :  { %v504_v23 = vpop.f32.mrf.mxu0 }
  0xfd   :  { %v398_v24 = vadd.f32 %v397_v55, %v326_v21  ;;  %v505_v25 = vadd.f32 %v504_v23, %v503_v20 }
  0xfe   :  { %v506_v26 = vpop.f32.mrf.mxu0 }
  0xff   :  { %422 = vst.msk [vmem:[%s773_s3 + $0x28] sm:$0xff] %vm416_vm2, %v398_v24  ;;  %v331_v27 = vadd.f32 %v505_v25, %v723_v45 }
 0x100   :  { %v507_v28 = vpop.f32.mrf.mxu0 }
 0x101   :  { %v403_v29 = vadd.f32 %v402_v62, %v331_v27  ;;  %v508_v30 = vadd.f32 %v507_v28, %v506_v26 }
 0x102   :  { %v509_v31 = vpop.f32.mrf.mxu0 }
 0x103   :  { %423 = vst.msk [vmem:[%s773_s3 + $0x30] sm:$0xff] %vm416_vm2, %v403_v29  ;;  %v334_v32 = vadd.f32 %v508_v30, %v723_v45 }
 0x104   :  { %v510_v33 = vpop.f32.mrf.mxu0 }
 0x105   :  { %v406_v34 = vadd.f32 %v405_v5, %v334_v32  ;;  %v511_v35 = vadd.f32 %v510_v33, %v509_v31 }
 0x106   :  { %v512_v36 = vpop.f32.mrf.mxu0 }
 0x107   :  { %424 = vst.msk [vmem:[%s773_s3 + $0x38] sm:$0xff] %vm416_vm2, %v406_v34  ;;  %v339_v37 = vadd.f32 %v511_v35, %v723_v45 }
 0x108   :  { %v513_v38 = vpop.f32.mrf.mxu0 }
 0x109   :  { %v411_v39 = vadd.f32 %v410_v12, %v339_v37 }
 0x10b   :  { %425 = vst.msk [vmem:[%s773_s3 + $0x40] sm:$0xff] %vm416_vm2, %v411_v39 }

</bundles_post_ra>
